<compile_context>
chip_gen: v5e
topology: v5e:2x2
jax: 0.10.0
libtpu: 0.0.40
codegen_flags: <defaults>
</compile_context>

<pallas_src>
import jax
import jax.numpy as jnp
from jax.experimental import pallas as pl
from jax.experimental.pallas import tpu as pltpu

IN_DIM = 1024
HID = 512
OUT_DIM = 1
BN_EPS = 1e-5


def _bn_relu(h, gamma, beta):
    # BatchNorm1d (training-mode: batch statistics, biased variance) + ReLU, in f32.
    mu = jnp.mean(h, axis=0, keepdims=True)
    var = jnp.mean((h - mu) * (h - mu), axis=0, keepdims=True)
    h_hat = (h - mu) * jax.lax.rsqrt(var + BN_EPS)
    return jnp.maximum(h_hat * gamma + beta, 0.0)


def domain_classifier_kernel(
    x_ref,                       # (B, 1024) bf16
    w1_ref, g1_ref, be1_ref,     # (1024,512) bf16, (1,512) f32, (1,512) f32
    w2_ref, g2_ref, be2_ref,
    w3_ref, g3_ref, be3_ref,
    w4_ref, b4_ref,              # (1,512) f32 row, (1,1) f32
    out_ref,                     # (B, 1) f32
):
    # Layer 1: bf16 MXU matmul with f32 accumulation. Bias omitted (cancels under BN).
    h = jnp.dot(x_ref[...], w1_ref[...], preferred_element_type=jnp.float32)
    h = _bn_relu(h, g1_ref[...], be1_ref[...])

    # Layer 2
    h = jnp.dot(h.astype(jnp.bfloat16), w2_ref[...], preferred_element_type=jnp.float32)
    h = _bn_relu(h, g2_ref[...], be2_ref[...])

    # Layer 3
    h = jnp.dot(h.astype(jnp.bfloat16), w3_ref[...], preferred_element_type=jnp.float32)
    h = _bn_relu(h, g3_ref[...], be3_ref[...])

    # Final Linear(512, 1): N=1 would waste an MXU pass; use VPU multiply + lane reduce.
    out = jnp.sum(h * w4_ref[...], axis=-1, keepdims=True) + b4_ref[...]
    out_ref[...] = out.astype(out_ref.dtype)


def lower_discriminator(x_nchw, params):
    """x_nchw: [B, C, H, W] with C*H*W == 1024. Returns [B, 1] (f32)."""
    B = x_nchw.shape[0]
    x_flat = x_nchw.reshape(B, -1)  # feature_extractor = flatten
    assert x_flat.shape[1] == IN_DIM, f"expected {IN_DIM} features, got {x_flat.shape[1]}"

    args = (
        x_flat.astype(jnp.bfloat16),
        params["w1"].astype(jnp.bfloat16), params["g1"], params["be1"],
        params["w2"].astype(jnp.bfloat16), params["g2"], params["be2"],
        params["w3"].astype(jnp.bfloat16), params["g3"], params["be3"],
        params["w4"].reshape(1, HID).astype(jnp.float32),   # (512,1) -> (1,512) row
        params["b4"].astype(jnp.float32),
    )

    # Whole problem fits comfortably in VMEM (~2.1 MiB of bf16 weights + activations),
    # so a single grid-less invocation with full-array blocks is used at small B.
    full_spec = lambda a: pl.BlockSpec(a.shape, lambda: (0,) * a.ndim)
    in_specs = [full_spec(a) for a in args]
    out_spec = pl.BlockSpec((B, OUT_DIM), lambda: (0, 0))

    return pl.pallas_call(
        domain_classifier_kernel,
        out_shape=jax.ShapeDtypeStruct((B, OUT_DIM), jnp.float32),
        in_specs=in_specs,
        out_specs=out_spec,
        compiler_params=pltpu.CompilerParams(vmem_limit_bytes=16 << 20),
    )(*args)


def init_params(key):
    """Deterministic synthetic parameters matching DomainClassifier shapes.

    Linear weights stored as (in, out) so the computation is x @ W + b.
    BatchNorm affine params initialized like PyTorch (gamma=1, beta=0).
    Biases b1-b3 are generated for PyTorch fidelity (the reference adds them);
    the kernel omits them because they cancel exactly under BatchNorm.
    """
    ks = jax.random.split(key, 8)

    def lin(kw, kb, fan_in, fan_out):
        bound = 1.0 / jnp.sqrt(fan_in)
        w = jax.random.uniform(kw, (fan_in, fan_out), jnp.float32, -bound, bound)
        b = jax.random.uniform(kb, (1, fan_out), jnp.float32, -bound, bound)
        return w, b

    w1, b1 = lin(ks[0], ks[1], IN_DIM, HID)
    w2, b2 = lin(ks[2], ks[3], HID, HID)
    w3, b3 = lin(ks[4], ks[5], HID, HID)
    w4, b4 = lin(ks[6], ks[7], HID, OUT_DIM)

    ones = jnp.ones((1, HID), jnp.float32)
    zeros = jnp.zeros((1, HID), jnp.float32)

    return {
        "w1": w1, "b1": b1, "g1": ones, "be1": zeros,
        "w2": w2, "b2": b2, "g2": ones, "be2": zeros,
        "w3": w3, "b3": b3, "g3": ones, "be3": zeros,
        "w4": w4, "b4": b4,
    }


def _reference(x_nchw, p):
    # Pure-JAX reference. Mirrors the kernel's bf16 quantization of the matmul operands
    # (f32 accumulation) so the comparison is tight, but keeps the PyTorch-exact
    # structure: biases b1-b3 are ADDED here (they cancel under BN, which is what the
    # kernel exploits by omitting them).
    x = x_nchw.reshape(x_nchw.shape[0], -1).astype(jnp.float32)

    def lin_bf16(a, w, b):
        return jnp.dot(a.astype(jnp.bfloat16), w.astype(jnp.bfloat16),
                       preferred_element_type=jnp.float32) + b

    def bn_relu(h, g, b):
        mu = jnp.mean(h, axis=0, keepdims=True)
        var = jnp.mean((h - mu) ** 2, axis=0, keepdims=True)
        return jnp.maximum((h - mu) * jax.lax.rsqrt(var + BN_EPS) * g + b, 0.0)

    h = bn_relu(lin_bf16(x, p["w1"], p["b1"]), p["g1"], p["be1"])
    h = bn_relu(lin_bf16(h, p["w2"], p["b2"]), p["g2"], p["be2"])
    h = bn_relu(lin_bf16(h, p["w3"], p["b3"]), p["g3"], p["be3"])
    return h @ p["w4"] + p["b4"]


if __name__ == "__main__":
    key = jax.random.PRNGKey(0)
    k_x, k_p = jax.random.split(key)

    # NCHW input: [batch=8, channels=4, H=16, W=16] -> 4*16*16 = 1024 features.
    # (8 rows = one full f32 sublane tile; keeps batch-norm statistics well-behaved.)
    x = jax.random.normal(k_x, (8, 4, 16, 16), dtype=jnp.float32)
    params = init_params(k_p)

    out = lower_discriminator(x, params)
    out = jax.block_until_ready(out)

    ref = _reference(x, params)
    assert out.shape == (8, 1), out.shape
    assert jnp.allclose(out, ref, atol=2e-3, rtol=2e-3), (out, ref)

    print("KERNEL_OK")
</pallas_src>

<mosaic_0001>
module attributes {stable_mosaic.version = 11 : i64} {
  func.func @domain_classifier_kernel(%arg0: memref<8x1024xbf16, #tpu.memory_space<vmem>>, %arg1: memref<1024x512xbf16, #tpu.memory_space<vmem>>, %arg2: memref<1x512xf32, #tpu.memory_space<vmem>>, %arg3: memref<1x512xf32, #tpu.memory_space<vmem>>, %arg4: memref<512x512xbf16, #tpu.memory_space<vmem>>, %arg5: memref<1x512xf32, #tpu.memory_space<vmem>>, %arg6: memref<1x512xf32, #tpu.memory_space<vmem>>, %arg7: memref<512x512xbf16, #tpu.memory_space<vmem>>, %arg8: memref<1x512xf32, #tpu.memory_space<vmem>>, %arg9: memref<1x512xf32, #tpu.memory_space<vmem>>, %arg10: memref<1x512xf32, #tpu.memory_space<vmem>>, %arg11: memref<1x1xf32, #tpu.memory_space<vmem>>, %arg12: memref<8x1xf32, #tpu.memory_space<vmem>>) attributes {dimension_semantics = [], scalar_prefetch = 0 : i64, scratch_operands = 0 : i64, tpu.core_type = #tpu.core_type<tc>} {
    %c0 = arith.constant 0 : index
    %c0_0 = arith.constant 0 : index
    %0 = vector.load %arg0[%c0, %c0_0] : memref<8x1024xbf16, #tpu.memory_space<vmem>>, vector<8x1024xbf16>
    %c0_1 = arith.constant 0 : index
    %c0_2 = arith.constant 0 : index
    %1 = vector.load %arg1[%c0_1, %c0_2] : memref<1024x512xbf16, #tpu.memory_space<vmem>>, vector<1024x512xbf16>
    %cst = arith.constant dense<0.000000e+00> : vector<8x512xf32>
    %2 = tpu.matmul %0, %1, %cst {dimension_numbers = #tpu.dot_dimension_numbers<[1], [0], [0], [1], [0, 0, 1, 1], [], []>} : vector<8x1024xbf16>, vector<1024x512xbf16>, vector<8x512xf32> -> vector<8x512xf32>
    %c0_3 = arith.constant 0 : index
    %c0_4 = arith.constant 0 : index
    %3 = vector.load %arg2[%c0_3, %c0_4] : memref<1x512xf32, #tpu.memory_space<vmem>>, vector<1x512xf32>
    %c0_5 = arith.constant 0 : index
    %c0_6 = arith.constant 0 : index
    %4 = vector.load %arg3[%c0_5, %c0_6] : memref<1x512xf32, #tpu.memory_space<vmem>>, vector<1x512xf32>
    %cst_7 = arith.constant dense<0.000000e+00> : vector<512xf32>
    %5 = vector.multi_reduction <add>, %2, %cst_7 [0] : vector<8x512xf32> to vector<512xf32>
    %6 = vector.shape_cast %5 : vector<512xf32> to vector<1x512xf32>
    %cst_8 = arith.constant 8.000000e+00 : f32
    %7 = vector.broadcast %cst_8 : f32 to vector<1x512xf32>
    %8 = arith.divf %6, %7 : vector<1x512xf32>
    %9 = vector.broadcast %8 : vector<1x512xf32> to vector<8x512xf32>
    %10 = arith.subf %2, %9 : vector<8x512xf32>
    %11 = vector.broadcast %8 : vector<1x512xf32> to vector<8x512xf32>
    %12 = arith.subf %2, %11 : vector<8x512xf32>
    %13 = arith.mulf %10, %12 : vector<8x512xf32>
    %cst_9 = arith.constant dense<0.000000e+00> : vector<512xf32>
    %14 = vector.multi_reduction <add>, %13, %cst_9 [0] : vector<8x512xf32> to vector<512xf32>
    %15 = vector.shape_cast %14 : vector<512xf32> to vector<1x512xf32>
    %cst_10 = arith.constant 8.000000e+00 : f32
    %16 = vector.broadcast %cst_10 : f32 to vector<1x512xf32>
    %17 = arith.divf %15, %16 : vector<1x512xf32>
    %18 = vector.broadcast %8 : vector<1x512xf32> to vector<8x512xf32>
    %19 = arith.subf %2, %18 : vector<8x512xf32>
    %cst_11 = arith.constant 9.99999974E-6 : f32
    %20 = vector.broadcast %cst_11 : f32 to vector<1x512xf32>
    %21 = arith.addf %17, %20 : vector<1x512xf32>
    %22 = math.rsqrt %21 : vector<1x512xf32>
    %23 = vector.broadcast %22 : vector<1x512xf32> to vector<8x512xf32>
    %24 = arith.mulf %19, %23 : vector<8x512xf32>
    %25 = vector.broadcast %3 : vector<1x512xf32> to vector<8x512xf32>
    %26 = arith.mulf %24, %25 : vector<8x512xf32>
    %27 = vector.broadcast %4 : vector<1x512xf32> to vector<8x512xf32>
    %28 = arith.addf %26, %27 : vector<8x512xf32>
    %cst_12 = arith.constant 0.000000e+00 : f32
    %29 = vector.broadcast %cst_12 : f32 to vector<8x512xf32>
    %30 = arith.maximumf %28, %29 : vector<8x512xf32>
    %31 = arith.truncf %30 : vector<8x512xf32> to vector<8x512xbf16>
    %c0_13 = arith.constant 0 : index
    %c0_14 = arith.constant 0 : index
    %32 = vector.load %arg4[%c0_13, %c0_14] : memref<512x512xbf16, #tpu.memory_space<vmem>>, vector<512x512xbf16>
    %cst_15 = arith.constant dense<0.000000e+00> : vector<8x512xf32>
    %33 = tpu.matmul %31, %32, %cst_15 {dimension_numbers = #tpu.dot_dimension_numbers<[1], [0], [0], [1], [0, 0, 1, 1], [], []>} : vector<8x512xbf16>, vector<512x512xbf16>, vector<8x512xf32> -> vector<8x512xf32>
    %c0_16 = arith.constant 0 : index
    %c0_17 = arith.constant 0 : index
    %34 = vector.load %arg5[%c0_16, %c0_17] : memref<1x512xf32, #tpu.memory_space<vmem>>, vector<1x512xf32>
    %c0_18 = arith.constant 0 : index
    %c0_19 = arith.constant 0 : index
    %35 = vector.load %arg6[%c0_18, %c0_19] : memref<1x512xf32, #tpu.memory_space<vmem>>, vector<1x512xf32>
    %cst_20 = arith.constant dense<0.000000e+00> : vector<512xf32>
    %36 = vector.multi_reduction <add>, %33, %cst_20 [0] : vector<8x512xf32> to vector<512xf32>
    %37 = vector.shape_cast %36 : vector<512xf32> to vector<1x512xf32>
    %cst_21 = arith.constant 8.000000e+00 : f32
    %38 = vector.broadcast %cst_21 : f32 to vector<1x512xf32>
    %39 = arith.divf %37, %38 : vector<1x512xf32>
    %40 = vector.broadcast %39 : vector<1x512xf32> to vector<8x512xf32>
    %41 = arith.subf %33, %40 : vector<8x512xf32>
    %42 = vector.broadcast %39 : vector<1x512xf32> to vector<8x512xf32>
    %43 = arith.subf %33, %42 : vector<8x512xf32>
    %44 = arith.mulf %41, %43 : vector<8x512xf32>
    %cst_22 = arith.constant dense<0.000000e+00> : vector<512xf32>
    %45 = vector.multi_reduction <add>, %44, %cst_22 [0] : vector<8x512xf32> to vector<512xf32>
    %46 = vector.shape_cast %45 : vector<512xf32> to vector<1x512xf32>
    %cst_23 = arith.constant 8.000000e+00 : f32
    %47 = vector.broadcast %cst_23 : f32 to vector<1x512xf32>
    %48 = arith.divf %46, %47 : vector<1x512xf32>
    %49 = vector.broadcast %39 : vector<1x512xf32> to vector<8x512xf32>
    %50 = arith.subf %33, %49 : vector<8x512xf32>
    %cst_24 = arith.constant 9.99999974E-6 : f32
    %51 = vector.broadcast %cst_24 : f32 to vector<1x512xf32>
    %52 = arith.addf %48, %51 : vector<1x512xf32>
    %53 = math.rsqrt %52 : vector<1x512xf32>
    %54 = vector.broadcast %53 : vector<1x512xf32> to vector<8x512xf32>
    %55 = arith.mulf %50, %54 : vector<8x512xf32>
    %56 = vector.broadcast %34 : vector<1x512xf32> to vector<8x512xf32>
    %57 = arith.mulf %55, %56 : vector<8x512xf32>
    %58 = vector.broadcast %35 : vector<1x512xf32> to vector<8x512xf32>
    %59 = arith.addf %57, %58 : vector<8x512xf32>
    %cst_25 = arith.constant 0.000000e+00 : f32
    %60 = vector.broadcast %cst_25 : f32 to vector<8x512xf32>
    %61 = arith.maximumf %59, %60 : vector<8x512xf32>
    %62 = arith.truncf %61 : vector<8x512xf32> to vector<8x512xbf16>
    %c0_26 = arith.constant 0 : index
    %c0_27 = arith.constant 0 : index
    %63 = vector.load %arg7[%c0_26, %c0_27] : memref<512x512xbf16, #tpu.memory_space<vmem>>, vector<512x512xbf16>
    %cst_28 = arith.constant dense<0.000000e+00> : vector<8x512xf32>
    %64 = tpu.matmul %62, %63, %cst_28 {dimension_numbers = #tpu.dot_dimension_numbers<[1], [0], [0], [1], [0, 0, 1, 1], [], []>} : vector<8x512xbf16>, vector<512x512xbf16>, vector<8x512xf32> -> vector<8x512xf32>
    %c0_29 = arith.constant 0 : index
    %c0_30 = arith.constant 0 : index
    %65 = vector.load %arg8[%c0_29, %c0_30] : memref<1x512xf32, #tpu.memory_space<vmem>>, vector<1x512xf32>
    %c0_31 = arith.constant 0 : index
    %c0_32 = arith.constant 0 : index
    %66 = vector.load %arg9[%c0_31, %c0_32] : memref<1x512xf32, #tpu.memory_space<vmem>>, vector<1x512xf32>
    %cst_33 = arith.constant dense<0.000000e+00> : vector<512xf32>
    %67 = vector.multi_reduction <add>, %64, %cst_33 [0] : vector<8x512xf32> to vector<512xf32>
    %68 = vector.shape_cast %67 : vector<512xf32> to vector<1x512xf32>
    %cst_34 = arith.constant 8.000000e+00 : f32
    %69 = vector.broadcast %cst_34 : f32 to vector<1x512xf32>
    %70 = arith.divf %68, %69 : vector<1x512xf32>
    %71 = vector.broadcast %70 : vector<1x512xf32> to vector<8x512xf32>
    %72 = arith.subf %64, %71 : vector<8x512xf32>
    %73 = vector.broadcast %70 : vector<1x512xf32> to vector<8x512xf32>
    %74 = arith.subf %64, %73 : vector<8x512xf32>
    %75 = arith.mulf %72, %74 : vector<8x512xf32>
    %cst_35 = arith.constant dense<0.000000e+00> : vector<512xf32>
    %76 = vector.multi_reduction <add>, %75, %cst_35 [0] : vector<8x512xf32> to vector<512xf32>
    %77 = vector.shape_cast %76 : vector<512xf32> to vector<1x512xf32>
    %cst_36 = arith.constant 8.000000e+00 : f32
    %78 = vector.broadcast %cst_36 : f32 to vector<1x512xf32>
    %79 = arith.divf %77, %78 : vector<1x512xf32>
    %80 = vector.broadcast %70 : vector<1x512xf32> to vector<8x512xf32>
    %81 = arith.subf %64, %80 : vector<8x512xf32>
    %cst_37 = arith.constant 9.99999974E-6 : f32
    %82 = vector.broadcast %cst_37 : f32 to vector<1x512xf32>
    %83 = arith.addf %79, %82 : vector<1x512xf32>
    %84 = math.rsqrt %83 : vector<1x512xf32>
    %85 = vector.broadcast %84 : vector<1x512xf32> to vector<8x512xf32>
    %86 = arith.mulf %81, %85 : vector<8x512xf32>
    %87 = vector.broadcast %65 : vector<1x512xf32> to vector<8x512xf32>
    %88 = arith.mulf %86, %87 : vector<8x512xf32>
    %89 = vector.broadcast %66 : vector<1x512xf32> to vector<8x512xf32>
    %90 = arith.addf %88, %89 : vector<8x512xf32>
    %cst_38 = arith.constant 0.000000e+00 : f32
    %91 = vector.broadcast %cst_38 : f32 to vector<8x512xf32>
    %92 = arith.maximumf %90, %91 : vector<8x512xf32>
    %c0_39 = arith.constant 0 : index
    %c0_40 = arith.constant 0 : index
    %93 = vector.load %arg10[%c0_39, %c0_40] : memref<1x512xf32, #tpu.memory_space<vmem>>, vector<1x512xf32>
    %94 = vector.broadcast %93 : vector<1x512xf32> to vector<8x512xf32>
    %95 = arith.mulf %92, %94 : vector<8x512xf32>
    %cst_41 = arith.constant dense<0.000000e+00> : vector<8xf32>
    %96 = vector.multi_reduction <add>, %95, %cst_41 [1] : vector<8x512xf32> to vector<8xf32>
    %97 = vector.shape_cast %96 : vector<8xf32> to vector<8x1xf32>
    %c0_42 = arith.constant 0 : index
    %c0_43 = arith.constant 0 : index
    %98 = vector.load %arg11[%c0_42, %c0_43] : memref<1x1xf32, #tpu.memory_space<vmem>>, vector<1x1xf32>
    %99 = vector.broadcast %98 : vector<1x1xf32> to vector<8x1xf32>
    %100 = arith.addf %97, %99 : vector<8x1xf32>
    %c0_44 = arith.constant 0 : index
    %c0_45 = arith.constant 0 : index
    %101 = vector.load %arg12[%c0_44, %c0_45] : memref<8x1xf32, #tpu.memory_space<vmem>>, vector<8x1xf32>
    tpu.vector_store %arg12[%c0_44, %c0_45], %100 {strides = array<i32>} : memref<8x1xf32, #tpu.memory_space<vmem>>, vector<8x1xf32>,
    return
  }
}

</mosaic_0001>

<bundles_post_ra>
// kernel: tpu_custom_call.1
= control target key start
LH: loop header
LB: loop body
LE: loop exit
PB: predicated region body
PF: predicated region fallthrough
CT: control target
= control target key end

     0   :  { %s7894_s0 = inlined_call_operand.hbm [shape: bf16[8,1024], index: 0, kind: input, shape index: {}]   ;;  %s7895_s1 = inlined_call_operand.hbm [shape: bf16[1024,512], index: 1, kind: input, shape index: {}]   ;;  %s7896_s2 = inlined_call_operand.hbm [shape: f32[1,512], index: 2, kind: input, shape index: {}]   ;;  %s7897_s3 = inlined_call_operand.vmem [shape: f32[1,512], index: 3, kind: input, shape index: {}]   ;;  %s7898_s4 = inlined_call_operand.hbm [shape: bf16[512,512], index: 4, kind: input, shape index: {}]   ;;  %s7899_s5 = inlined_call_operand.hbm [shape: f32[1,512], index: 5, kind: input, shape index: {}]   ;;  %s7900_s6 = inlined_call_operand.hbm [shape: f32[1,512], index: 6, kind: input, shape index: {}]   ;;  %s7901_s7 = inlined_call_operand.hbm [shape: bf16[512,512], index: 7, kind: input, shape index: {}]   ;;  %s7902_s8 = inlined_call_operand.vmem [shape: f32[1,512], index: 8, kind: input, shape index: {}]   ;;  %s7903_s9 = inlined_call_operand.hbm [shape: f32[1,512], index: 9, kind: input, shape index: {}]   ;;  %s7904_s10 = inlined_call_operand.hbm [shape: f32[1,512], index: 10, kind: input, shape index: {}]   ;;  %s7905_s11 = inlined_call_operand.<no memory space> [shape: f32[1,1], index: 11, kind: input, shape index: {}]   ;;  %s7906_s12 = inlined_call_operand.vmem [shape: f32[8,1], index: 12, kind: output, shape index: {}]  }
   0x1   :  { %v17_v0 = vstv %s7905_s11 }
   0x2   :  { %18 = vst [vmem:[#allocation2] sm:$0x1] %v17_v0 }
   0x3   :  { %19 = vsyncpa [#allocation4], 0 }
   0x4   :  { %20 = vsyncpa [#allocation6], 0 }
   0x5   :  { %21 = vsyncpa [#allocation9], 0 }
   0x6   :  { %22 = vsyncpa [#allocation12], 0  ;;  %s39_s25 = sshll.u32 %s7895_s1, 4  ;;  %s40_s25 = int_to_ptr.hbm [resolvable:$true] %s39_s25 }
   0x7   :  { %23 = vsyncpa [#allocation15], 0  ;;  %s7416_s26 = smov [#allocation5]   ;;  %s65_s30 = sshll.u32 %s7898_s4, 4  ;;  %s66_s30 = int_to_ptr.hbm [resolvable:$true] %s65_s30 }
   0x8   :  { %s41_s27 = sshll.u32 %s7416_s26, 4  ;;  %s7417_s13 = smov 256   ;;  %s42_s27 = int_to_ptr.vmem [resolvable:$true] %s41_s27 }
   0x9   :  { %s7418_s11 = smov 16   ;;  %s7419_s14 = smov [#allocation8]  }
   0xa   :  { %47 = dma.hbm_to_vmem [thread:$0]  %s40_s25, 32768, %s42_s27, [#allocation6], %s7417_s13, %s7417_s13, %s7418_s11  }
   0xb   :  { %s67_s15 = sshll.u32 %s7419_s14, 4  ;;  %s90_s17 = sshll.u32 %s7900_s6, 4  ;;  %s68_s15 = int_to_ptr.vmem [resolvable:$true] %s67_s15  ;;  %s91_s17 = int_to_ptr.hbm [resolvable:$true] %s90_s17 }
   0xc   :  { %73 = dma.hbm_to_vmem [thread:$0]  %s66_s30, 16384, %s68_s15, [#allocation9], %s7417_s13, %s7417_s13, %s7418_s11  }
   0xd   :  { %s116_s19 = sshll.u32 %s7903_s9, 4  ;;  %s7420_s20 = smov [#allocation11]   ;;  %s117_s19 = int_to_ptr.hbm [resolvable:$true] %s116_s19 }
   0xe   :  { %s92_s21 = sshll.u32 %s7420_s20, 4  ;;  %s7421_s22 = smov [#allocation14]   ;;  %s93_s21 = int_to_ptr.vmem [resolvable:$true] %s92_s21 }
   0xf   :  { %95 = dma.hbm_to_vmem [thread:$0]  %s91_s17, 64, %s93_s21, [#allocation12]  }
  0x10   :  { %s118_s23 = sshll.u32 %s7421_s22, 4  ;;  %s29_s6 = sshll.u32 %s7894_s0, 4  ;;  %s119_s23 = int_to_ptr.vmem [resolvable:$true] %s118_s23  ;;  %s30_s6 = int_to_ptr.hbm [resolvable:$true] %s29_s6 }
  0x11   :  { %121 = dma.hbm_to_vmem [thread:$0]  %s117_s19, 64, %s119_s23, [#allocation15]  }
  0x12   :  { %s53_s28 = sshll.u32 %s7896_s2, 4  ;;  %s7422_s29 = smov [#allocation3]   ;;  %s54_s28 = int_to_ptr.hbm [resolvable:$true] %s53_s28 }
  0x13   :  { %s31_s9 = sshll.u32 %s7422_s29, 4  ;;  %s7423_s30 = smov [#allocation7]   ;;  %s32_s9 = int_to_ptr.vmem [resolvable:$true] %s31_s9 }
  0x14   :  { %34 = dma.hbm_to_vmem [thread:$0]  %s30_s6, 512, %s32_s9, [#allocation4]  }
  0x15   :  { %s55_s14 = sshll.u32 %s7423_s30, 4  ;;  %s79_s1 = sshll.u32 %s7899_s5, 4  ;;  %s56_s14 = int_to_ptr.vmem [resolvable:$true] %s55_s14  ;;  %s80_s1 = int_to_ptr.hbm [resolvable:$true] %s79_s1 }
  0x16   :  { %58 = dma.hbm_to_vmem [thread:$0]  %s54_s28, 64, %s56_s14, [#allocation6]  }
  0x17   :  { %s100_s4 = sshll.u32 %s7901_s7, 4  ;;  %s7424_s18 = smov [#allocation10]   ;;  %s101_s4 = int_to_ptr.hbm [resolvable:$true] %s100_s4 }
  0x18   :  { %s81_s2 = sshll.u32 %s7424_s18, 4  ;;  %s7425_s19 = smov [#allocation13]   ;;  %s82_s2 = int_to_ptr.vmem [resolvable:$true] %s81_s2 }
  0x19   :  { %84 = dma.hbm_to_vmem [thread:$0]  %s80_s1, 64, %s82_s2, [#allocation9]  }
  0x1a   :  { %s102_s20 = sshll.u32 %s7425_s19, 4  ;;  %s127_s23 = sshll.u32 %s7904_s10, 4  ;;  %s103_s20 = int_to_ptr.vmem [resolvable:$true] %s102_s20  ;;  %s128_s23 = int_to_ptr.hbm [resolvable:$true] %s127_s23 }
  0x1b   :  { %108 = dma.hbm_to_vmem [thread:$0]  %s101_s4, 16384, %s103_s20, [#allocation12], %s7417_s13, %s7417_s13, %s7418_s11  }
  0x1c   :  { %s7426_s5 = smov [#allocation16]  }
  0x1d   :  { %s129_s24 = sshll.u32 %s7426_s5, 4  ;;  %s130_s24 = int_to_ptr.vmem [resolvable:$true] %s129_s24 }
  0x1e   :  { %132 = dma.hbm_to_vmem [thread:$0]  %s128_s23, 64, %s130_s24, [#allocation15]  }
  0x1f   :  { %7406 = dma.done.wait [#allocation4], 512  }
  0x20   :  { %7407 = vsyncadd [#allocation4], 4294966784 }
  0x21   :  { %7408 = dma.done.wait [#allocation6], 32832  }
  0x22   :  { %7409 = vsyncadd [#allocation6], 4294934464 }
  0x23   :  { %7410 = dma.done.wait [#allocation9], 16448  }
  0x24   :  { %7411 = vsyncadd [#allocation9], 4294950848 }
  0x25   :  { %7412 = dma.done.wait [#allocation12], 16448  }
  0x26   :  { %7413 = vsyncadd [#allocation12], 4294950848 }
  0x27   :  { %7414 = dma.done.wait [#allocation15], 128  }
  0x28   :  { %7415 = vsyncadd [#allocation15], 4294967168  ;;  %v4703_v1 = vld [vmem:[#allocation5 + $0xe0] sm:$0xf]  ;;  %v6667_v2 = vld [vmem:[#allocation5 + $0xec] sm:$0xf0] }
  0x29   :  { %v4831_v3 = vld [vmem:[#allocation5 + $0x1e0] sm:$0xf]  ;;  %v4704_v4 = vor.u32 %v6667_v2, %v4703_v1  ;;  %v6699_v5 = vld [vmem:[#allocation5 + $0x1ec] sm:$0xf0] }
  0x2a   :  { %v4959_v6 = vld [vmem:[#allocation5 + $0x2e0] sm:$0xf]  ;;  %v6731_v7 = vld [vmem:[#allocation5 + $0x2ec] sm:$0xf0]  ;;  %v4832_v8 = vor.u32 %v6699_v5, %v4831_v3 }
  0x2b   :  { %v4960_v9 = vor.u32 %v6731_v7, %v4959_v6  ;;  %v5087_v10 = vld [vmem:[#allocation5 + $0x3e0] sm:$0xf]  ;;  %v6763_v11 = vld [vmem:[#allocation5 + $0x3ec] sm:$0xf0]  ;;  %1739 = vmatpush.bf16.msra.mxu0 %v4704_v4 }
  0x2c   :  { %v4687_v12 = vld [vmem:[#allocation5 + $0xc0] sm:$0xf]  ;;  %v5088_v13 = vor.u32 %v6763_v11, %v5087_v10  ;;  %v6663_v14 = vld [vmem:[#allocation5 + $0xcc] sm:$0xf0]  ;;  %1752 = vmatpush.bf16.msra.mxu1 %v4832_v8 }
  0x2d   :  { %v4815_v15 = vld [vmem:[#allocation5 + $0x1c0] sm:$0xf]  ;;  %v6695_v16 = vld [vmem:[#allocation5 + $0x1cc] sm:$0xf0]  ;;  %1765 = vmatpush.bf16.msra.mxu2 %v4960_v9  ;;  %v4688_v17 = vor.u32 %v6663_v14, %v4687_v12 }
  0x2e   :  { %v4816_v18 = vor.u32 %v6695_v16, %v4815_v15  ;;  %v4943_v19 = vld [vmem:[#allocation5 + $0x2c0] sm:$0xf]  ;;  %v6727_v20 = vld [vmem:[#allocation5 + $0x2cc] sm:$0xf0]  ;;  %1778 = vmatpush.bf16.msra.mxu3 %v5088_v13 }
  0x2f   :  { %v5071_v21 = vld [vmem:[#allocation5 + $0x3c0] sm:$0xf]  ;;  %v4944_v22 = vor.u32 %v6727_v20, %v4943_v19  ;;  %v6759_v23 = vld [vmem:[#allocation5 + $0x3cc] sm:$0xf0]  ;;  %1740 = vmatpush.bf16.msra.mxu0 %v4688_v17 }
  0x30   :  { %v4671_v24 = vld [vmem:[#allocation5 + $0xa0] sm:$0xf]  ;;  %v6659_v25 = vld [vmem:[#allocation5 + $0xac] sm:$0xf0]  ;;  %v5072_v26 = vor.u32 %v6759_v23, %v5071_v21  ;;  %1753 = vmatpush.bf16.msra.mxu1 %v4816_v18 }
  0x31   :  { %v4799_v27 = vld [vmem:[#allocation5 + $0x1a0] sm:$0xf]  ;;  %v6691_v28 = vld [vmem:[#allocation5 + $0x1ac] sm:$0xf0]  ;;  %v4672_v30 = vor.u32 %v6659_v25, %v4671_v24  ;;  %1766 = vmatpush.bf16.msra.mxu2 %v4944_v22 }
  0x32   :  { %v4927_v29 = vld [vmem:[#allocation5 + $0x2a0] sm:$0xf]  ;;  %v6723_v31 = vld [vmem:[#allocation5 + $0x2ac] sm:$0xf0]  ;;  %v4800_v34 = vor.u32 %v6691_v28, %v4799_v27  ;;  %1779 = vmatpush.bf16.msra.mxu3 %v5072_v26 }
  0x33   :  { %v5055_v32 = vld [vmem:[#allocation5 + $0x3a0] sm:$0xf]  ;;  %v6755_v33 = vld [vmem:[#allocation5 + $0x3ac] sm:$0xf0]  ;;  %v4928_v35 = vor.u32 %v6723_v31, %v4927_v29  ;;  %1741 = vmatpush.bf16.msra.mxu0 %v4672_v30 }
  0x34   :  { %v4655_v36 = vld [vmem:[#allocation5 + $0x80] sm:$0xf]  ;;  %v6655_v37 = vld [vmem:[#allocation5 + $0x8c] sm:$0xf0]  ;;  %v5056_v39 = vor.u32 %v6755_v33, %v5055_v32  ;;  %1754 = vmatpush.bf16.msra.mxu1 %v4800_v34 }
  0x35   :  { %v4783_v38 = vld [vmem:[#allocation5 + $0x180] sm:$0xf]  ;;  %v6687_v40 = vld [vmem:[#allocation5 + $0x18c] sm:$0xf0]  ;;  %v4656_v45 = vor.u32 %v6655_v37, %v4655_v36  ;;  %1767 = vmatpush.bf16.msra.mxu2 %v4928_v35 }
  0x36   :  { %v4911_v41 = vld [vmem:[#allocation5 + $0x280] sm:$0xf]  ;;  %v6719_v42 = vld [vmem:[#allocation5 + $0x28c] sm:$0xf0]  ;;  %v4784_v46 = vor.u32 %v6687_v40, %v4783_v38  ;;  %1780 = vmatpush.bf16.msra.mxu3 %v5056_v39 }
  0x37   :  { %v5039_v43 = vld [vmem:[#allocation5 + $0x380] sm:$0xf]  ;;  %v6751_v44 = vld [vmem:[#allocation5 + $0x38c] sm:$0xf0]  ;;  %v4912_v47 = vor.u32 %v6719_v42, %v4911_v41  ;;  %1742 = vmatpush.bf16.msra.mxu0 %v4656_v45 }
  0x38   :  { %v4639_v48 = vld [vmem:[#allocation5 + $0x60] sm:$0xf]  ;;  %v6651_v49 = vld [vmem:[#allocation5 + $0x6c] sm:$0xf0]  ;;  %v5040_v51 = vor.u32 %v6751_v44, %v5039_v43  ;;  %1755 = vmatpush.bf16.msra.mxu1 %v4784_v46 }
  0x39   :  { %v4767_v50 = vld [vmem:[#allocation5 + $0x160] sm:$0xf]  ;;  %v6683_v52 = vld [vmem:[#allocation5 + $0x16c] sm:$0xf0]  ;;  %v4640_v57 = vor.u32 %v6651_v49, %v4639_v48  ;;  %1768 = vmatpush.bf16.msra.mxu2 %v4912_v47 }
  0x3a   :  { %v4895_v53 = vld [vmem:[#allocation5 + $0x260] sm:$0xf]  ;;  %v6715_v54 = vld [vmem:[#allocation5 + $0x26c] sm:$0xf0]  ;;  %v4768_v58 = vor.u32 %v6683_v52, %v4767_v50  ;;  %1781 = vmatpush.bf16.msra.mxu3 %v5040_v51 }
  0x3b   :  { %v5023_v55 = vld [vmem:[#allocation5 + $0x360] sm:$0xf]  ;;  %v6747_v56 = vld [vmem:[#allocation5 + $0x36c] sm:$0xf0]  ;;  %v4896_v59 = vor.u32 %v6715_v54, %v4895_v53  ;;  %1743 = vmatpush.bf16.msra.mxu0 %v4640_v57  ;;  %v172_v53 = vld [vmem:[#allocation3 + $0x8] sm:$0xff] }
  0x3c   :  { %v4623_v60 = vld [vmem:[#allocation5 + $0x40] sm:$0xf]  ;;  %v6647_v61 = vld [vmem:[#allocation5 + $0x4c] sm:$0xf0]  ;;  %v5024_v63 = vor.u32 %v6747_v56, %v5023_v55  ;;  %1756 = vmatpush.bf16.msra.mxu1 %v4768_v58  ;;  %v437_v56 = vunpack.c.l.b16 %v172_v53  ;;  %v438_v57 = vunpack.c.h.b16 %v172_v53 }
  0x3d   :  { %v4751_v62 = vld [vmem:[#allocation5 + $0x140] sm:$0xf]  ;;  %v6679_v0 = vld [vmem:[#allocation5 + $0x14c] sm:$0xf0]  ;;  %v4624_v5 = vor.u32 %v6647_v61, %v4623_v60  ;;  %1769 = vmatpush.bf16.msra.mxu2 %v4896_v59 }
  0x3e   :  { %v4879_v1 = vld [vmem:[#allocation5 + $0x240] sm:$0xf]  ;;  %v6711_v2 = vld [vmem:[#allocation5 + $0x24c] sm:$0xf0]  ;;  %v4752_v6 = vor.u32 %v6679_v0, %v4751_v62  ;;  %1782 = vmatpush.bf16.msra.mxu3 %v5024_v63 }
  0x3f   :  { %v5007_v3 = vld [vmem:[#allocation5 + $0x340] sm:$0xf]  ;;  %v6743_v4 = vld [vmem:[#allocation5 + $0x34c] sm:$0xf0]  ;;  %v4880_v7 = vor.u32 %v6711_v2, %v4879_v1  ;;  %1744 = vmatpush.bf16.msra.mxu0 %v4624_v5  ;;  %v7532_v2 = vpack.c.b16 %v437_v56, %v437_v56 }
  0x40   :  { %v4607_v8 = vld [vmem:[#allocation5 + $0x20] sm:$0xf]  ;;  %v6643_v9 = vld [vmem:[#allocation5 + $0x2c] sm:$0xf0]  ;;  %v5008_v11 = vor.u32 %v6743_v4, %v5007_v3  ;;  %1757 = vmatpush.bf16.msra.mxu1 %v4752_v6 }
  0x41   :  { %v4735_v10 = vld [vmem:[#allocation5 + $0x120] sm:$0xf]  ;;  %v6675_v12 = vld [vmem:[#allocation5 + $0x12c] sm:$0xf0]  ;;  %v4608_v17 = vor.u32 %v6643_v9, %v4607_v8  ;;  %1770 = vmatpush.bf16.msra.mxu2 %v4880_v7  ;;  %v7534_v7 = vpack.c.b16 %v438_v57, %v438_v57 }
  0x42   :  { %v4863_v13 = vld [vmem:[#allocation5 + $0x220] sm:$0xf]  ;;  %v6707_v14 = vld [vmem:[#allocation5 + $0x22c] sm:$0xf0]  ;;  %v4736_v20 = vor.u32 %v6675_v12, %v4735_v10  ;;  %1783 = vmatpush.bf16.msra.mxu3 %v5008_v11 }
  0x43   :  { %v4991_v15 = vld [vmem:[#allocation5 + $0x320] sm:$0xf]  ;;  %v6739_v16 = vld [vmem:[#allocation5 + $0x32c] sm:$0xf0]  ;;  %v4864_v21 = vor.u32 %v6707_v14, %v4863_v13  ;;  %1745 = vmatpush.bf16.msra.mxu0 %v4608_v17 }
  0x44   :  { %v4591_v18 = vld [vmem:[#allocation5] sm:$0xf]  ;;  %v6639_v19 = vld [vmem:[#allocation5 + $0xc] sm:$0xf0]  ;;  %v4992_v25 = vor.u32 %v6739_v16, %v4991_v15  ;;  %1758 = vmatpush.bf16.msra.mxu1 %v4736_v20 }
  0x45   :  { %v4719_v22 = vld [vmem:[#allocation5 + $0x100] sm:$0xf]  ;;  %v6671_v23 = vld [vmem:[#allocation5 + $0x10c] sm:$0xf0]  ;;  %v4592_v32 = vor.u32 %v6639_v19, %v4591_v18  ;;  %1771 = vmatpush.bf16.msra.mxu2 %v4864_v21 }
  0x46   :  { %v4847_v24 = vld [vmem:[#allocation5 + $0x200] sm:$0xf]  ;;  %v6703_v26 = vld [vmem:[#allocation5 + $0x20c] sm:$0xf0]  ;;  %v4720_v36 = vor.u32 %v6671_v23, %v4719_v22  ;;  %1784 = vmatpush.bf16.msra.mxu3 %v4992_v25 }
  0x47   :  { %v4975_v27 = vld [vmem:[#allocation5 + $0x300] sm:$0xf]  ;;  %v6735_v28 = vld [vmem:[#allocation5 + $0x30c] sm:$0xf0]  ;;  %v4848_v37 = vor.u32 %v6703_v26, %v4847_v24  ;;  %1746 = vmatpush.bf16.msra.mxu0 %v4592_v32 }
  0x48   :  { %v5215_v29 = vld [vmem:[#allocation5 + $0x4e0] sm:$0xf]  ;;  %v6795_v30 = vld [vmem:[#allocation5 + $0x4ec] sm:$0xf0]  ;;  %v4976_v40 = vor.u32 %v6735_v28, %v4975_v27  ;;  %1759 = vmatpush.bf16.msra.mxu1 %v4720_v36 }
  0x49   :  { %v5343_v31 = vld [vmem:[#allocation5 + $0x5e0] sm:$0xf]  ;;  %v6827_v33 = vld [vmem:[#allocation5 + $0x5ec] sm:$0xf0]  ;;  %v5216_v41 = vor.u32 %v6795_v30, %v5215_v29  ;;  %1772 = vmatpush.bf16.msra.mxu2 %v4848_v37 }
  0x4a   :  { %v5471_v34 = vld [vmem:[#allocation5 + $0x6e0] sm:$0xf]  ;;  %v6859_v35 = vld [vmem:[#allocation5 + $0x6ec] sm:$0xf0]  ;;  %v5344_v42 = vor.u32 %v6827_v33, %v5343_v31  ;;  %1785 = vmatpush.bf16.msra.mxu3 %v4976_v40 }
  0x4b   :  { %v5599_v38 = vld [vmem:[#allocation5 + $0x7e0] sm:$0xf]  ;;  %v6891_v39 = vld [vmem:[#allocation5 + $0x7ec] sm:$0xf0]  ;;  %v5472_v43 = vor.u32 %v6859_v35, %v5471_v34  ;;  %1791 = vmatpush.bf16.msrb.mxu0 %v5216_v41 }
  0x4c   :  { %v5199_v44 = vld [vmem:[#allocation5 + $0x4c0] sm:$0xf]  ;;  %v6791_v45 = vld [vmem:[#allocation5 + $0x4cc] sm:$0xf0]  ;;  %v5600_v47 = vor.u32 %v6891_v39, %v5599_v38  ;;  %1804 = vmatpush.bf16.msrb.mxu1 %v5344_v42  ;;  %1773 = vmatmul.bf16.vlgmr.msra.gmra.mxu2 %v7532_v2 }
  0x4d   :  { %v5327_v46 = vld [vmem:[#allocation5 + $0x5c0] sm:$0xf]  ;;  %v6823_v48 = vld [vmem:[#allocation5 + $0x5cc] sm:$0xf0]  ;;  %v5200_v54 = vor.u32 %v6791_v45, %v5199_v44  ;;  %1817 = vmatpush.bf16.msrb.mxu2 %v5472_v43  ;;  %1786 = vmatmul.bf16.vlgmr.msra.gmra.mxu3 %v7534_v7 }
  0x4e   :  { %v5455_v49 = vld [vmem:[#allocation5 + $0x6c0] sm:$0xf]  ;;  %v6855_v50 = vld [vmem:[#allocation5 + $0x6cc] sm:$0xf0]  ;;  %v5328_v58 = vor.u32 %v6823_v48, %v5327_v46  ;;  %1830 = vmatpush.bf16.msrb.mxu3 %v5600_v47 }
  0x4f   :  { %v5583_v51 = vld [vmem:[#allocation5 + $0x7c0] sm:$0xf]  ;;  %v6887_v52 = vld [vmem:[#allocation5 + $0x7cc] sm:$0xf0]  ;;  %v5456_v59 = vor.u32 %v6855_v50, %v5455_v49  ;;  %1792 = vmatpush.bf16.msrb.mxu0 %v5200_v54 }
  0x50   :  { %v5183_v55 = vld [vmem:[#allocation5 + $0x4a0] sm:$0xf]  ;;  %v6787_v60 = vld [vmem:[#allocation5 + $0x4ac] sm:$0xf0]  ;;  %v5584_v63 = vor.u32 %v6887_v52, %v5583_v51  ;;  %1805 = vmatpush.bf16.msrb.mxu1 %v5328_v58 }
  0x51   :  { %v5311_v61 = vld [vmem:[#allocation5 + $0x5a0] sm:$0xf]  ;;  %v6819_v62 = vld [vmem:[#allocation5 + $0x5ac] sm:$0xf0]  ;;  %v5184_v9 = vor.u32 %v6787_v60, %v5183_v55  ;;  %1818 = vmatpush.bf16.msrb.mxu2 %v5456_v59 }
  0x52   :  { %v5439_v0 = vld [vmem:[#allocation5 + $0x6a0] sm:$0xf]  ;;  %v6851_v1 = vld [vmem:[#allocation5 + $0x6ac] sm:$0xf0]  ;;  %v5312_v10 = vor.u32 %v6819_v62, %v5311_v61  ;;  %1831 = vmatpush.bf16.msrb.mxu3 %v5584_v63 }
  0x53   :  { %v171_v3 = vld [vmem:[#allocation3] sm:$0xff]  ;;  %v6883_v5 = vld [vmem:[#allocation5 + $0x7ac] sm:$0xf0]  ;;  %v5440_v11 = vor.u32 %v6851_v1, %v5439_v0  ;;  %1793 = vmatpush.bf16.msrb.mxu0 %v5184_v9 }
  0x54   :  { %v5567_v4 = vld [vmem:[#allocation5 + $0x7a0] sm:$0xf]  ;;  %v435_v6 = vunpack.c.l.b16 %v171_v3  ;;  %v436_v8 = vunpack.c.h.b16 %v171_v3  ;;  %v6783_v13 = vld [vmem:[#allocation5 + $0x48c] sm:$0xf0]  ;;  %1806 = vmatpush.bf16.msrb.mxu1 %v5312_v10 }
  0x55   :  { %v5167_v12 = vld [vmem:[#allocation5 + $0x480] sm:$0xf]  ;;  %v5568_v17 = vor.u32 %v6883_v5, %v5567_v4  ;;  %v6815_v18 = vld [vmem:[#allocation5 + $0x58c] sm:$0xf0]  ;;  %1819 = vmatpush.bf16.msrb.mxu2 %v5440_v11  ;;  %v174_v5 = vld [vmem:[#allocation3 + $0x18] sm:$0xff] }
  0x56   :  { %v5295_v14 = vld [vmem:[#allocation5 + $0x580] sm:$0xf]  ;;  %v7537_v15 = vpack.c.b16 %v435_v6, %v435_v6  ;;  %v7539_v16 = vpack.c.b16 %v436_v8, %v436_v8  ;;  %v6847_v20 = vld [vmem:[#allocation5 + $0x68c] sm:$0xf0]  ;;  %v5168_v23 = vor.u32 %v6783_v13, %v5167_v12  ;;  %v6665_v11 = vld [vmem:[#allocation5 + $0xe4] sm:$0xf] }
  0x57   :  { %v5423_v19 = vld [vmem:[#allocation5 + $0x680] sm:$0xf]  ;;  %v6879_v22 = vld [vmem:[#allocation5 + $0x78c] sm:$0xf0]  ;;  %v5296_v24 = vor.u32 %v6815_v18, %v5295_v14  ;;  %1832 = vmatpush.bf16.msrb.mxu3 %v5568_v17  ;;  %v4705_v12 = vld [vmem:[#allocation5 + $0xf0] sm:$0xf0] }
  0x58   :  { %v5551_v21 = vld [vmem:[#allocation5 + $0x780] sm:$0xf]  ;;  %1747 = vmatmul.bf16.vlgmr.msra.gmra.mxu0 %v7537_v15  ;;  %1760 = vmatmul.bf16.vlgmr.msra.gmra.mxu1 %v7539_v16  ;;  %v5424_v25 = vor.u32 %v6847_v20, %v5423_v19  ;;  %v6779_v27 = vld [vmem:[#allocation5 + $0x46c] sm:$0xf0]  ;;  %v6697_v13 = vld [vmem:[#allocation5 + $0x1e4] sm:$0xf]  ;;  %v441_v20 = vunpack.c.l.b16 %v174_v5 }
  0x59   :  { %v5151_v26 = vld [vmem:[#allocation5 + $0x460] sm:$0xf]  ;;  %v5552_v29 = vor.u32 %v6879_v22, %v5551_v21  ;;  %v6811_v30 = vld [vmem:[#allocation5 + $0x56c] sm:$0xf0]  ;;  %1794 = vmatpush.bf16.msrb.mxu0 %v5168_v23  ;;  %1807 = vmatpush.bf16.msrb.mxu1 %v5296_v24  ;;  %v4833_v17 = vld [vmem:[#allocation5 + $0x1f0] sm:$0xf0] }
  0x5a   :  { %v5279_v28 = vld [vmem:[#allocation5 + $0x560] sm:$0xf]  ;;  %v6843_v32 = vld [vmem:[#allocation5 + $0x66c] sm:$0xf0]  ;;  %v5152_v35 = vor.u32 %v6779_v27, %v5151_v26  ;;  %1820 = vmatpush.bf16.msrb.mxu2 %v5424_v25  ;;  %v6729_v18 = vld [vmem:[#allocation5 + $0x2e4] sm:$0xf]  ;;  %v442_v26 = vunpack.c.h.b16 %v174_v5 }
  0x5b   :  { %v5407_v31 = vld [vmem:[#allocation5 + $0x660] sm:$0xf]  ;;  %v6875_v34 = vld [vmem:[#allocation5 + $0x76c] sm:$0xf0]  ;;  %v5280_v36 = vor.u32 %v6811_v30, %v5279_v28  ;;  %1833 = vmatpush.bf16.msrb.mxu3 %v5552_v29  ;;  %v4961_v19 = vld [vmem:[#allocation5 + $0x2f0] sm:$0xf0]  ;;  %v4708_v28 = vor.u32 %v6665_v11, %v4705_v12  ;;  %v4836_v30 = vor.u32 %v6697_v13, %v4833_v17 }
  0x5c   :  { %v5535_v33 = vld [vmem:[#allocation5 + $0x760] sm:$0xf]  ;;  %v5408_v37 = vor.u32 %v6843_v32, %v5407_v31  ;;  %v6775_v39 = vld [vmem:[#allocation5 + $0x44c] sm:$0xf0]  ;;  %v6761_v23 = vld [vmem:[#allocation5 + $0x3e4] sm:$0xf]  ;;  %v4964_v31 = vor.u32 %v6729_v18, %v4961_v19 }
  0x5d   :  { %v5135_v38 = vld [vmem:[#allocation5 + $0x440] sm:$0xf]  ;;  %v5536_v41 = vor.u32 %v6875_v34, %v5535_v33  ;;  %v6807_v42 = vld [vmem:[#allocation5 + $0x54c] sm:$0xf0]  ;;  %1795 = vmatpush.bf16.msrb.mxu0 %v5152_v35  ;;  %1808 = vmatpush.bf16.msrb.mxu1 %v5280_v36  ;;  %v5089_v24 = vld [vmem:[#allocation5 + $0x3f0] sm:$0xf0]  ;;  %v7544_v36 = vpack.c.b16 %v441_v20, %v441_v20 }
  0x5e   :  { %v5263_v40 = vld [vmem:[#allocation5 + $0x540] sm:$0xf]  ;;  %v6839_v44 = vld [vmem:[#allocation5 + $0x64c] sm:$0xf0]  ;;  %v5136_v47 = vor.u32 %v6775_v39, %v5135_v38  ;;  %1821 = vmatpush.bf16.msrb.mxu2 %v5408_v37  ;;  %v6661_v32 = vld [vmem:[#allocation5 + $0xc4] sm:$0xf]  ;;  %v5092_v35 = vor.u32 %v6761_v23, %v5089_v24 }
  0x5f   :  { %v5391_v43 = vld [vmem:[#allocation5 + $0x640] sm:$0xf]  ;;  %v6871_v46 = vld [vmem:[#allocation5 + $0x74c] sm:$0xf0]  ;;  %v5264_v48 = vor.u32 %v6807_v42, %v5263_v40  ;;  %1834 = vmatpush.bf16.msrb.mxu3 %v5536_v41  ;;  %v4689_v33 = vld [vmem:[#allocation5 + $0xd0] sm:$0xf0]  ;;  %v7548_v41 = vpack.c.b16 %v442_v26, %v442_v26 }
  0x60   :  { %v5519_v45 = vld [vmem:[#allocation5 + $0x740] sm:$0xf]  ;;  %v5392_v49 = vor.u32 %v6839_v44, %v5391_v43  ;;  %v6771_v51 = vld [vmem:[#allocation5 + $0x42c] sm:$0xf0]  ;;  %v6693_v34 = vld [vmem:[#allocation5 + $0x1c4] sm:$0xf]  ;;  %v4692_v44 = vor.u32 %v6661_v32, %v4689_v33 }
  0x61   :  { %v5119_v50 = vld [vmem:[#allocation5 + $0x420] sm:$0xf]  ;;  %v5520_v53 = vor.u32 %v6871_v46, %v5519_v45  ;;  %v6803_v54 = vld [vmem:[#allocation5 + $0x52c] sm:$0xf0]  ;;  %1796 = vmatpush.bf16.msrb.mxu0 %v5136_v47  ;;  %1809 = vmatpush.bf16.msrb.mxu1 %v5264_v48  ;;  %v4817_v37 = vld [vmem:[#allocation5 + $0x1d0] sm:$0xf0] }
  0x62   :  { %v5247_v52 = vld [vmem:[#allocation5 + $0x520] sm:$0xf]  ;;  %v6835_v56 = vld [vmem:[#allocation5 + $0x62c] sm:$0xf0]  ;;  %v5120_v60 = vor.u32 %v6771_v51, %v5119_v50  ;;  %1822 = vmatpush.bf16.msrb.mxu2 %v5392_v49  ;;  %v6725_v38 = vld [vmem:[#allocation5 + $0x2c4] sm:$0xf]  ;;  %v4820_v46 = vor.u32 %v6693_v34, %v4817_v37 }
  0x63   :  { %v5375_v55 = vld [vmem:[#allocation5 + $0x620] sm:$0xf]  ;;  %v6867_v58 = vld [vmem:[#allocation5 + $0x72c] sm:$0xf0]  ;;  %v5248_v0 = vor.u32 %v6803_v54, %v5247_v52  ;;  %1835 = vmatpush.bf16.msrb.mxu3 %v5520_v53  ;;  %v4945_v39 = vld [vmem:[#allocation5 + $0x2d0] sm:$0xf0] }
  0x64   :  { %v5503_v57 = vld [vmem:[#allocation5 + $0x720] sm:$0xf]  ;;  %v6767_v61 = vld [vmem:[#allocation5 + $0x40c] sm:$0xf0]  ;;  %v5376_v1 = vor.u32 %v6835_v56, %v5375_v55  ;;  %v6757_v42 = vld [vmem:[#allocation5 + $0x3c4] sm:$0xf]  ;;  %v4948_v47 = vor.u32 %v6725_v38, %v4945_v39 }
  0x65   :  { %v5103_v59 = vld [vmem:[#allocation5 + $0x400] sm:$0xf]  ;;  %v6799_v63 = vld [vmem:[#allocation5 + $0x50c] sm:$0xf0]  ;;  %v5504_v6 = vor.u32 %v6867_v58, %v5503_v57  ;;  %1797 = vmatpush.bf16.msrb.mxu0 %v5120_v60  ;;  %1810 = vmatpush.bf16.msrb.mxu1 %v5248_v0  ;;  %v5073_v43 = vld [vmem:[#allocation5 + $0x3d0] sm:$0xf0] }
  0x66   :  { %v5231_v62 = vld [vmem:[#allocation5 + $0x500] sm:$0xf]  ;;  %v6831_v4 = vld [vmem:[#allocation5 + $0x60c] sm:$0xf0]  ;;  %v5104_v14 = vor.u32 %v6767_v61, %v5103_v59  ;;  %1823 = vmatpush.bf16.msrb.mxu2 %v5376_v1  ;;  %v6657_v48 = vld [vmem:[#allocation5 + $0xa4] sm:$0xf]  ;;  %v5076_v51 = vor.u32 %v6757_v42, %v5073_v43 }
  0x67   :  { %v5359_v3 = vld [vmem:[#allocation5 + $0x600] sm:$0xf]  ;;  %v6863_v9 = vld [vmem:[#allocation5 + $0x70c] sm:$0xf0]  ;;  %v5232_v21 = vor.u32 %v6799_v63, %v5231_v62  ;;  %1836 = vmatpush.bf16.msrb.mxu3 %v5504_v6  ;;  %v4673_v49 = vld [vmem:[#allocation5 + $0xb0] sm:$0xf0] }
  0x68   :  { %v5487_v8 = vld [vmem:[#allocation5 + $0x700] sm:$0xf]  ;;  %v173_v10 = vld [vmem:[#allocation3 + $0x10] sm:$0xff]  ;;  %v5360_v22 = vor.u32 %v6831_v4, %v5359_v3  ;;  %v6689_v50 = vld [vmem:[#allocation5 + $0x1a4] sm:$0xf]  ;;  %v4676_v57 = vor.u32 %v6657_v48, %v4673_v49 }
  0x69   :  { %v439_v25 = vunpack.c.l.b16 %v173_v10  ;;  %v5488_v27 = vor.u32 %v6863_v9, %v5487_v8  ;;  %v440_v29 = vunpack.c.h.b16 %v173_v10  ;;  %1798 = vmatpush.bf16.msrb.mxu0 %v5104_v14  ;;  %1811 = vmatpush.bf16.msrb.mxu1 %v5232_v21  ;;  %v4801_v52 = vld [vmem:[#allocation5 + $0x1b0] sm:$0xf0]  ;;  %v6721_v53 = vld [vmem:[#allocation5 + $0x2a4] sm:$0xf] }
  0x6a   :  { %1824 = vmatpush.bf16.msrb.mxu2 %v5360_v22  ;;  %v4929_v54 = vld [vmem:[#allocation5 + $0x2b0] sm:$0xf0]  ;;  %v6753_v55 = vld [vmem:[#allocation5 + $0x3a4] sm:$0xf]  ;;  %v4804_v58 = vor.u32 %v6689_v50, %v4801_v52 }
  0x6b   :  { %v7546_v40 = vpack.c.b16 %v439_v25, %v439_v25  ;;  %1837 = vmatpush.bf16.msrb.mxu3 %v5488_v27  ;;  %v7550_v45 = vpack.c.b16 %v440_v29, %v440_v29  ;;  %v5057_v56 = vld [vmem:[#allocation5 + $0x3b0] sm:$0xf0]  ;;  %v4932_v59 = vor.u32 %v6721_v53, %v4929_v54  ;;  %v6653_v60 = vld [vmem:[#allocation5 + $0x84] sm:$0xf] }
  0x6c   :  { %v4657_v61 = vld [vmem:[#allocation5 + $0x90] sm:$0xf0]  ;;  %v6685_v62 = vld [vmem:[#allocation5 + $0x184] sm:$0xf]  ;;  %v5060_v63 = vor.u32 %v6753_v55, %v5057_v56 }
  0x6d   :  { %1843 = vmatpush.bf16.msra.mxu0 %v4708_v28  ;;  %1856 = vmatpush.bf16.msra.mxu1 %v4836_v30  ;;  %v4785_v0 = vld [vmem:[#allocation5 + $0x190] sm:$0xf0]  ;;  %v6717_v1 = vld [vmem:[#allocation5 + $0x284] sm:$0xf]  ;;  %v4660_v6 = vor.u32 %v6653_v60, %v4657_v61 }
  0x6e   :  { %1869 = vmatpush.bf16.msra.mxu2 %v4964_v31  ;;  %1799 = vmatmul.bf16.vlgmr.msrb.gmra.mxu0 %v7546_v40  ;;  %v4913_v3 = vld [vmem:[#allocation5 + $0x290] sm:$0xf0]  ;;  %v6749_v4 = vld [vmem:[#allocation5 + $0x384] sm:$0xf]  ;;  %v4788_v8 = vor.u32 %v6685_v62, %v4785_v0 }
  0x6f   :  { %1882 = vmatpush.bf16.msra.mxu3 %v5092_v35  ;;  %1825 = vmatmul.bf16.vlgmr.msrb.gmra.mxu2 %v7544_v36  ;;  %v5041_v5 = vld [vmem:[#allocation5 + $0x390] sm:$0xf0]  ;;  %v4916_v9 = vor.u32 %v6717_v1, %v4913_v3  ;;  %v6649_v10 = vld [vmem:[#allocation5 + $0x64] sm:$0xf] }
  0x70   :  { %1838 = vmatmul.bf16.vlgmr.msrb.gmra.mxu3 %v7548_v41  ;;  %1812 = vmatmul.bf16.vlgmr.msrb.gmra.mxu1 %v7550_v45  ;;  %v4641_v11 = vld [vmem:[#allocation5 + $0x70] sm:$0xf0]  ;;  %v6681_v12 = vld [vmem:[#allocation5 + $0x164] sm:$0xf]  ;;  %v5044_v13 = vor.u32 %v6749_v4, %v5041_v5 }
  0x71   :  { %1844 = vmatpush.bf16.msra.mxu0 %v4692_v44  ;;  %1857 = vmatpush.bf16.msra.mxu1 %v4820_v46  ;;  %v4769_v14 = vld [vmem:[#allocation5 + $0x170] sm:$0xf0]  ;;  %v6713_v17 = vld [vmem:[#allocation5 + $0x264] sm:$0xf]  ;;  %v4644_v21 = vor.u32 %v6649_v10, %v4641_v11 }
  0x72   :  { %1870 = vmatpush.bf16.msra.mxu2 %v4948_v47  ;;  %v4897_v18 = vld [vmem:[#allocation5 + $0x270] sm:$0xf0]  ;;  %v6745_v19 = vld [vmem:[#allocation5 + $0x364] sm:$0xf]  ;;  %v4772_v22 = vor.u32 %v6681_v12, %v4769_v14 }
  0x73   :  { %1883 = vmatpush.bf16.msra.mxu3 %v5076_v51  ;;  %v5025_v20 = vld [vmem:[#allocation5 + $0x370] sm:$0xf0]  ;;  %v4900_v23 = vor.u32 %v6713_v17, %v4897_v18  ;;  %v6645_v24 = vld [vmem:[#allocation5 + $0x44] sm:$0xf] }
  0x74   :  { %v4625_v25 = vld [vmem:[#allocation5 + $0x50] sm:$0xf0]  ;;  %v6677_v26 = vld [vmem:[#allocation5 + $0x144] sm:$0xf]  ;;  %v5028_v27 = vor.u32 %v6745_v19, %v5025_v20 }
  0x75   :  { %1845 = vmatpush.bf16.msra.mxu0 %v4676_v57  ;;  %1858 = vmatpush.bf16.msra.mxu1 %v4804_v58  ;;  %v4753_v28 = vld [vmem:[#allocation5 + $0x150] sm:$0xf0]  ;;  %v6709_v29 = vld [vmem:[#allocation5 + $0x244] sm:$0xf]  ;;  %v4628_v33 = vor.u32 %v6645_v24, %v4625_v25 }
  0x76   :  { %1871 = vmatpush.bf16.msra.mxu2 %v4932_v59  ;;  %v4881_v30 = vld [vmem:[#allocation5 + $0x250] sm:$0xf0]  ;;  %v6741_v31 = vld [vmem:[#allocation5 + $0x344] sm:$0xf]  ;;  %v4756_v34 = vor.u32 %v6677_v26, %v4753_v28 }
  0x77   :  { %1884 = vmatpush.bf16.msra.mxu3 %v5060_v63  ;;  %v5009_v32 = vld [vmem:[#allocation5 + $0x350] sm:$0xf0]  ;;  %v4884_v35 = vor.u32 %v6709_v29, %v4881_v30  ;;  %v6641_v37 = vld [vmem:[#allocation5 + $0x24] sm:$0xf] }
  0x78   :  { %v4609_v38 = vld [vmem:[#allocation5 + $0x30] sm:$0xf0]  ;;  %v6673_v39 = vld [vmem:[#allocation5 + $0x124] sm:$0xf]  ;;  %v5012_v42 = vor.u32 %v6741_v31, %v5009_v32 }
  0x79   :  { %1846 = vmatpush.bf16.msra.mxu0 %v4660_v6  ;;  %1859 = vmatpush.bf16.msra.mxu1 %v4788_v8  ;;  %v4737_v43 = vld [vmem:[#allocation5 + $0x130] sm:$0xf0]  ;;  %v6705_v44 = vld [vmem:[#allocation5 + $0x224] sm:$0xf]  ;;  %v4612_v49 = vor.u32 %v6641_v37, %v4609_v38 }
  0x7a   :  { %1872 = vmatpush.bf16.msra.mxu2 %v4916_v9  ;;  %v4865_v46 = vld [vmem:[#allocation5 + $0x230] sm:$0xf0]  ;;  %v6737_v47 = vld [vmem:[#allocation5 + $0x324] sm:$0xf]  ;;  %v4740_v52 = vor.u32 %v6673_v39, %v4737_v43 }
  0x7b   :  { %1885 = vmatpush.bf16.msra.mxu3 %v5044_v13  ;;  %v4993_v48 = vld [vmem:[#allocation5 + $0x330] sm:$0xf0]  ;;  %v6637_v50 = vld [vmem:[#allocation5 + $0x4] sm:$0xf]  ;;  %v4868_v53 = vor.u32 %v6705_v44, %v4865_v46 }
  0x7c   :  { %v4593_v51 = vld [vmem:[#allocation5 + $0x10] sm:$0xf0]  ;;  %v6669_v54 = vld [vmem:[#allocation5 + $0x104] sm:$0xf]  ;;  %v4996_v57 = vor.u32 %v6737_v47, %v4993_v48 }
  0x7d   :  { %1847 = vmatpush.bf16.msra.mxu0 %v4644_v21  ;;  %1860 = vmatpush.bf16.msra.mxu1 %v4772_v22  ;;  %v4721_v55 = vld [vmem:[#allocation5 + $0x110] sm:$0xf0]  ;;  %v6701_v56 = vld [vmem:[#allocation5 + $0x204] sm:$0xf]  ;;  %v4596_v0 = vor.u32 %v6637_v50, %v4593_v51 }
  0x7e   :  { %1873 = vmatpush.bf16.msra.mxu2 %v4900_v23  ;;  %v4849_v58 = vld [vmem:[#allocation5 + $0x210] sm:$0xf0]  ;;  %v6733_v59 = vld [vmem:[#allocation5 + $0x304] sm:$0xf]  ;;  %v4724_v5 = vor.u32 %v6669_v54, %v4721_v55 }
  0x7f   :  { %1886 = vmatpush.bf16.msra.mxu3 %v5028_v27  ;;  %v4977_v60 = vld [vmem:[#allocation5 + $0x310] sm:$0xf0]  ;;  %v6793_v61 = vld [vmem:[#allocation5 + $0x4e4] sm:$0xf]  ;;  %v4852_v6 = vor.u32 %v6701_v56, %v4849_v58 }
  0x80   :  { %v5217_v62 = vld [vmem:[#allocation5 + $0x4f0] sm:$0xf0]  ;;  %v6825_v63 = vld [vmem:[#allocation5 + $0x5e4] sm:$0xf]  ;;  %v4980_v10 = vor.u32 %v6733_v59, %v4977_v60 }
  0x81   :  { %1848 = vmatpush.bf16.msra.mxu0 %v4628_v33  ;;  %1861 = vmatpush.bf16.msra.mxu1 %v4756_v34  ;;  %v5345_v1 = vld [vmem:[#allocation5 + $0x5f0] sm:$0xf0]  ;;  %v6857_v3 = vld [vmem:[#allocation5 + $0x6e4] sm:$0xf]  ;;  %v5220_v11 = vor.u32 %v6793_v61, %v5217_v62 }
  0x82   :  { %1874 = vmatpush.bf16.msra.mxu2 %v4884_v35  ;;  %v5473_v4 = vld [vmem:[#allocation5 + $0x6f0] sm:$0xf0]  ;;  %v6889_v8 = vld [vmem:[#allocation5 + $0x7e4] sm:$0xf]  ;;  %v5348_v12 = vor.u32 %v6825_v63, %v5345_v1 }
  0x83   :  { %1887 = vmatpush.bf16.msra.mxu3 %v5012_v42  ;;  %v5601_v9 = vld [vmem:[#allocation5 + $0x7f0] sm:$0xf0]  ;;  %v5476_v13 = vor.u32 %v6857_v3, %v5473_v4  ;;  %v6789_v14 = vld [vmem:[#allocation5 + $0x4c4] sm:$0xf] }
  0x84   :  { %v5201_v17 = vld [vmem:[#allocation5 + $0x4d0] sm:$0xf0]  ;;  %v6821_v18 = vld [vmem:[#allocation5 + $0x5c4] sm:$0xf]  ;;  %v5604_v19 = vor.u32 %v6889_v8, %v5601_v9 }
  0x85   :  { %1849 = vmatpush.bf16.msra.mxu0 %v4612_v49  ;;  %1862 = vmatpush.bf16.msra.mxu1 %v4740_v52  ;;  %v5329_v20 = vld [vmem:[#allocation5 + $0x5d0] sm:$0xf0]  ;;  %v6853_v21 = vld [vmem:[#allocation5 + $0x6c4] sm:$0xf]  ;;  %v5204_v25 = vor.u32 %v6789_v14, %v5201_v17 }
  0x86   :  { %1875 = vmatpush.bf16.msra.mxu2 %v4868_v53  ;;  %v5457_v22 = vld [vmem:[#allocation5 + $0x6d0] sm:$0xf0]  ;;  %v6885_v23 = vld [vmem:[#allocation5 + $0x7c4] sm:$0xf]  ;;  %v5332_v26 = vor.u32 %v6821_v18, %v5329_v20 }
  0x87   :  { %1888 = vmatpush.bf16.msra.mxu3 %v4996_v57  ;;  %v5585_v24 = vld [vmem:[#allocation5 + $0x7d0] sm:$0xf0]  ;;  %v5460_v27 = vor.u32 %v6853_v21, %v5457_v22  ;;  %v6785_v28 = vld [vmem:[#allocation5 + $0x4a4] sm:$0xf] }
  0x88   :  { %v5185_v29 = vld [vmem:[#allocation5 + $0x4b0] sm:$0xf0]  ;;  %v6817_v30 = vld [vmem:[#allocation5 + $0x5a4] sm:$0xf]  ;;  %v5588_v31 = vor.u32 %v6885_v23, %v5585_v24 }
  0x89   :  { %1850 = vmatpush.bf16.msra.mxu0 %v4596_v0  ;;  %1863 = vmatpush.bf16.msra.mxu1 %v4724_v5  ;;  %v5313_v32 = vld [vmem:[#allocation5 + $0x5b0] sm:$0xf0]  ;;  %v6849_v33 = vld [vmem:[#allocation5 + $0x6a4] sm:$0xf]  ;;  %v5188_v38 = vor.u32 %v6785_v28, %v5185_v29 }
  0x8a   :  { %1876 = vmatpush.bf16.msra.mxu2 %v4852_v6  ;;  %v5441_v34 = vld [vmem:[#allocation5 + $0x6b0] sm:$0xf0]  ;;  %v6881_v35 = vld [vmem:[#allocation5 + $0x7a4] sm:$0xf]  ;;  %v5316_v39 = vor.u32 %v6817_v30, %v5313_v32 }
  0x8b   :  { %1889 = vmatpush.bf16.msra.mxu3 %v4980_v10  ;;  %v5569_v37 = vld [vmem:[#allocation5 + $0x7b0] sm:$0xf0]  ;;  %v5444_v42 = vor.u32 %v6849_v33, %v5441_v34  ;;  %v6781_v43 = vld [vmem:[#allocation5 + $0x484] sm:$0xf] }
  0x8c   :  { %1851 = vmatmul.bf16.vlgmr.msra.gmra.mxu0 %v7537_v15  ;;  %1864 = vmatmul.bf16.vlgmr.msra.gmra.mxu1 %v7539_v16  ;;  %v5169_v44 = vld [vmem:[#allocation5 + $0x490] sm:$0xf0]  ;;  %v6813_v46 = vld [vmem:[#allocation5 + $0x584] sm:$0xf]  ;;  %v5572_v47 = vor.u32 %v6881_v35, %v5569_v37 }
  0x8d   :  { %1895 = vmatpush.bf16.msrb.mxu0 %v5220_v11  ;;  %1908 = vmatpush.bf16.msrb.mxu1 %v5348_v12  ;;  %v5297_v48 = vld [vmem:[#allocation5 + $0x590] sm:$0xf0]  ;;  %v6845_v49 = vld [vmem:[#allocation5 + $0x684] sm:$0xf]  ;;  %v5172_v53 = vor.u32 %v6781_v43, %v5169_v44  ;;  %v4711_v44 = vld [vmem:[#allocation5 + $0xe8] sm:$0xf] }
  0x8e   :  { %1921 = vmatpush.bf16.msrb.mxu2 %v5476_v13  ;;  %1890 = vmatmul.bf16.vlgmr.msra.gmra.mxu3 %v7534_v7  ;;  %v5425_v50 = vld [vmem:[#allocation5 + $0x690] sm:$0xf0]  ;;  %v6877_v51 = vld [vmem:[#allocation5 + $0x784] sm:$0xf]  ;;  %v5300_v54 = vor.u32 %v6813_v46, %v5297_v48  ;;  %v6668_v46 = vld [vmem:[#allocation5 + $0xf4] sm:$0xf0] }
  0x8f   :  { %1934 = vmatpush.bf16.msrb.mxu3 %v5604_v19  ;;  %1877 = vmatmul.bf16.vlgmr.msra.gmra.mxu2 %v7532_v2  ;;  %v5553_v52 = vld [vmem:[#allocation5 + $0x790] sm:$0xf0]  ;;  %v5428_v55 = vor.u32 %v6845_v49, %v5425_v50  ;;  %v6777_v56 = vld [vmem:[#allocation5 + $0x464] sm:$0xf]  ;;  %v6700_v49 = vld [vmem:[#allocation5 + $0x1f4] sm:$0xf0] }
  0x90   :  { %v5153_v57 = vld [vmem:[#allocation5 + $0x470] sm:$0xf0]  ;;  %v6809_v58 = vld [vmem:[#allocation5 + $0x564] sm:$0xf]  ;;  %v5556_v59 = vor.u32 %v6877_v51, %v5553_v52  ;;  %v4967_v50 = vld [vmem:[#allocation5 + $0x2e8] sm:$0xf] }
  0x91   :  { %1896 = vmatpush.bf16.msrb.mxu0 %v5204_v25  ;;  %1909 = vmatpush.bf16.msrb.mxu1 %v5332_v26  ;;  %v5281_v60 = vld [vmem:[#allocation5 + $0x570] sm:$0xf0]  ;;  %v6841_v61 = vld [vmem:[#allocation5 + $0x664] sm:$0xf]  ;;  %v5156_v1 = vor.u32 %v6777_v56, %v5153_v57  ;;  %v6732_v51 = vld [vmem:[#allocation5 + $0x2f4] sm:$0xf0]  ;;  %v4712_v57 = vor.u32 %v6668_v46, %v4711_v44 }
  0x92   :  { %1922 = vmatpush.bf16.msrb.mxu2 %v5460_v27  ;;  %v5409_v62 = vld [vmem:[#allocation5 + $0x670] sm:$0xf0]  ;;  %v6873_v63 = vld [vmem:[#allocation5 + $0x764] sm:$0xf]  ;;  %v5284_v3 = vor.u32 %v6809_v58, %v5281_v60  ;;  %v4695_v60 = vld [vmem:[#allocation5 + $0xc8] sm:$0xf] }
  0x93   :  { %1935 = vmatpush.bf16.msrb.mxu3 %v5588_v31  ;;  %v5537_v0 = vld [vmem:[#allocation5 + $0x770] sm:$0xf0]  ;;  %v5412_v4 = vor.u32 %v6841_v61, %v5409_v62  ;;  %v6773_v5 = vld [vmem:[#allocation5 + $0x444] sm:$0xf]  ;;  %v6664_v61 = vld [vmem:[#allocation5 + $0xd4] sm:$0xf0] }
  0x94   :  { %v5137_v6 = vld [vmem:[#allocation5 + $0x450] sm:$0xf0]  ;;  %v6805_v8 = vld [vmem:[#allocation5 + $0x544] sm:$0xf]  ;;  %v5540_v9 = vor.u32 %v6873_v63, %v5537_v0  ;;  %v4823_v62 = vld [vmem:[#allocation5 + $0x1c8] sm:$0xf] }
  0x95   :  { %1897 = vmatpush.bf16.msrb.mxu0 %v5188_v38  ;;  %1910 = vmatpush.bf16.msrb.mxu1 %v5316_v39  ;;  %v5265_v10 = vld [vmem:[#allocation5 + $0x550] sm:$0xf0]  ;;  %v6837_v11 = vld [vmem:[#allocation5 + $0x644] sm:$0xf]  ;;  %v5140_v17 = vor.u32 %v6773_v5, %v5137_v6  ;;  %v6696_v0 = vld [vmem:[#allocation5 + $0x1d4] sm:$0xf0]  ;;  %v4696_v6 = vor.u32 %v6664_v61, %v4695_v60 }
  0x96   :  { %1923 = vmatpush.bf16.msrb.mxu2 %v5444_v42  ;;  %v5393_v12 = vld [vmem:[#allocation5 + $0x650] sm:$0xf0]  ;;  %v6869_v13 = vld [vmem:[#allocation5 + $0x744] sm:$0xf]  ;;  %v5268_v18 = vor.u32 %v6805_v8, %v5265_v10  ;;  %v6760_v5 = vld [vmem:[#allocation5 + $0x3d4] sm:$0xf0]  ;;  %v4824_v8 = vor.u32 %v6696_v0, %v4823_v62 }
  0x97   :  { %1936 = vmatpush.bf16.msrb.mxu3 %v5572_v47  ;;  %v5521_v14 = vld [vmem:[#allocation5 + $0x750] sm:$0xf0]  ;;  %v5396_v19 = vor.u32 %v6837_v11, %v5393_v12  ;;  %v6769_v20 = vld [vmem:[#allocation5 + $0x424] sm:$0xf]  ;;  %v4839_v47 = vld [vmem:[#allocation5 + $0x1e8] sm:$0xf] }
  0x98   :  { %v5121_v21 = vld [vmem:[#allocation5 + $0x430] sm:$0xf0]  ;;  %v6801_v22 = vld [vmem:[#allocation5 + $0x524] sm:$0xf]  ;;  %v5524_v23 = vor.u32 %v6869_v13, %v5521_v14  ;;  %v4840_v58 = vor.u32 %v6700_v49, %v4839_v47  ;;  %v4679_v10 = vld [vmem:[#allocation5 + $0xa8] sm:$0xf] }
  0x99   :  { %1898 = vmatpush.bf16.msrb.mxu0 %v5172_v53  ;;  %1911 = vmatpush.bf16.msrb.mxu1 %v5300_v54  ;;  %v5249_v24 = vld [vmem:[#allocation5 + $0x530] sm:$0xf0]  ;;  %v6833_v25 = vld [vmem:[#allocation5 + $0x624] sm:$0xf]  ;;  %v5124_v29 = vor.u32 %v6769_v20, %v5121_v21  ;;  %v5095_v54 = vld [vmem:[#allocation5 + $0x3e8] sm:$0xf] }
  0x9a   :  { %1924 = vmatpush.bf16.msrb.mxu2 %v5428_v55  ;;  %v5377_v26 = vld [vmem:[#allocation5 + $0x630] sm:$0xf0]  ;;  %v6865_v27 = vld [vmem:[#allocation5 + $0x724] sm:$0xf]  ;;  %v5252_v32 = vor.u32 %v6801_v22, %v5249_v24  ;;  %v6764_v55 = vld [vmem:[#allocation5 + $0x3f4] sm:$0xf0] }
  0x9b   :  { %1937 = vmatpush.bf16.msrb.mxu3 %v5556_v59  ;;  %v5505_v28 = vld [vmem:[#allocation5 + $0x730] sm:$0xf0]  ;;  %v6765_v30 = vld [vmem:[#allocation5 + $0x404] sm:$0xf]  ;;  %v5380_v33 = vor.u32 %v6833_v25, %v5377_v26  ;;  %v4968_v59 = vor.u32 %v6732_v51, %v4967_v50  ;;  %v5096_v63 = vor.u32 %v6764_v55, %v5095_v54  ;;  %v6660_v11 = vld [vmem:[#allocation5 + $0xb4] sm:$0xf0] }
  0x9c   :  { %v5105_v31 = vld [vmem:[#allocation5 + $0x410] sm:$0xf0]  ;;  %v6797_v34 = vld [vmem:[#allocation5 + $0x504] sm:$0xf]  ;;  %v5508_v38 = vor.u32 %v6865_v27, %v5505_v28  ;;  %v4807_v12 = vld [vmem:[#allocation5 + $0x1a8] sm:$0xf]  ;;  %v4680_v21 = vor.u32 %v6660_v11, %v4679_v10 }
  0x9d   :  { %1899 = vmatpush.bf16.msrb.mxu0 %v5156_v1  ;;  %1912 = vmatpush.bf16.msrb.mxu1 %v5284_v3  ;;  %v5233_v35 = vld [vmem:[#allocation5 + $0x510] sm:$0xf0]  ;;  %v6829_v37 = vld [vmem:[#allocation5 + $0x604] sm:$0xf]  ;;  %v5108_v48 = vor.u32 %v6765_v30, %v5105_v31  ;;  %v4951_v1 = vld [vmem:[#allocation5 + $0x2c8] sm:$0xf] }
  0x9e   :  { %1925 = vmatpush.bf16.msrb.mxu2 %v5412_v4  ;;  %v5361_v39 = vld [vmem:[#allocation5 + $0x610] sm:$0xf0]  ;;  %v6861_v42 = vld [vmem:[#allocation5 + $0x704] sm:$0xf]  ;;  %v5236_v52 = vor.u32 %v6797_v34, %v5233_v35  ;;  %v6728_v3 = vld [vmem:[#allocation5 + $0x2d4] sm:$0xf0] }
  0x9f   :  { %1938 = vmatpush.bf16.msrb.mxu3 %v5540_v9  ;;  %v5489_v43 = vld [vmem:[#allocation5 + $0x710] sm:$0xf0]  ;;  %v5364_v53 = vor.u32 %v6829_v37, %v5361_v39  ;;  %v5079_v4 = vld [vmem:[#allocation5 + $0x3c8] sm:$0xf]  ;;  %v4952_v9 = vor.u32 %v6728_v3, %v4951_v1  ;;  %v6692_v14 = vld [vmem:[#allocation5 + $0x1b4] sm:$0xf0] }
  0xa0   :  { %v5492_v56 = vor.u32 %v6861_v42, %v5489_v43  ;;  %v5080_v13 = vor.u32 %v6760_v5, %v5079_v4  ;;  %v6756_v20 = vld [vmem:[#allocation5 + $0x3b4] sm:$0xf0]  ;;  %v4808_v22 = vor.u32 %v6692_v14, %v4807_v12  ;;  %v4663_v24 = vld [vmem:[#allocation5 + $0x88] sm:$0xf] }
  0xa1   :  { %1900 = vmatpush.bf16.msrb.mxu0 %v5140_v17  ;;  %1913 = vmatpush.bf16.msrb.mxu1 %v5268_v18  ;;  %v4935_v17 = vld [vmem:[#allocation5 + $0x2a8] sm:$0xf]  ;;  %v6724_v18 = vld [vmem:[#allocation5 + $0x2b4] sm:$0xf0] }
  0xa2   :  { %1926 = vmatpush.bf16.msrb.mxu2 %v5396_v19  ;;  %v5063_v19 = vld [vmem:[#allocation5 + $0x3a8] sm:$0xf]  ;;  %v6656_v25 = vld [vmem:[#allocation5 + $0x94] sm:$0xf0] }
  0xa3   :  { %1939 = vmatpush.bf16.msrb.mxu3 %v5524_v23  ;;  %v4936_v23 = vor.u32 %v6724_v18, %v4935_v17  ;;  %v4791_v26 = vld [vmem:[#allocation5 + $0x188] sm:$0xf]  ;;  %v5064_v27 = vor.u32 %v6756_v20, %v5063_v19  ;;  %v6688_v28 = vld [vmem:[#allocation5 + $0x194] sm:$0xf0] }
  0xa4   :  { %v6720_v30 = vld [vmem:[#allocation5 + $0x294] sm:$0xf0]  ;;  %v5047_v31 = vld [vmem:[#allocation5 + $0x388] sm:$0xf]  ;;  %v4792_v34 = vor.u32 %v6688_v28, %v4791_v26 }
  0xa5   :  { %1901 = vmatpush.bf16.msrb.mxu0 %v5124_v29  ;;  %1914 = vmatpush.bf16.msrb.mxu1 %v5252_v32  ;;  %v4919_v29 = vld [vmem:[#allocation5 + $0x288] sm:$0xf]  ;;  %v6752_v32 = vld [vmem:[#allocation5 + $0x394] sm:$0xf0] }
  0xa6   :  { %1927 = vmatpush.bf16.msrb.mxu2 %v5380_v33  ;;  %v4664_v33 = vor.u32 %v6656_v25, %v4663_v24  ;;  %v4920_v35 = vor.u32 %v6720_v30, %v4919_v29  ;;  %v4647_v37 = vld [vmem:[#allocation5 + $0x68] sm:$0xf]  ;;  %v5048_v42 = vor.u32 %v6752_v32, %v5047_v31  ;;  %v6684_v43 = vld [vmem:[#allocation5 + $0x174] sm:$0xf0] }
  0xa7   :  { %1940 = vmatpush.bf16.msrb.mxu3 %v5508_v38  ;;  %v6652_v38 = vld [vmem:[#allocation5 + $0x74] sm:$0xf0]  ;;  %v4775_v39 = vld [vmem:[#allocation5 + $0x168] sm:$0xf] }
  0xa8   :  { %v4903_v44 = vld [vmem:[#allocation5 + $0x268] sm:$0xf]  ;;  %v6716_v46 = vld [vmem:[#allocation5 + $0x274] sm:$0xf0]  ;;  %v4648_v49 = vor.u32 %v6652_v38, %v4647_v37  ;;  %v4776_v50 = vor.u32 %v6684_v43, %v4775_v39 }
  0xa9   :  { %1902 = vmatpush.bf16.msrb.mxu0 %v5108_v48  ;;  %1915 = vmatpush.bf16.msrb.mxu1 %v5236_v52  ;;  %v5031_v47 = vld [vmem:[#allocation5 + $0x368] sm:$0xf]  ;;  %v6748_v48 = vld [vmem:[#allocation5 + $0x374] sm:$0xf0]  ;;  %v4904_v51 = vor.u32 %v6716_v46, %v4903_v44 }
  0xaa   :  { %1928 = vmatpush.bf16.msrb.mxu2 %v5364_v53  ;;  %v4631_v52 = vld [vmem:[#allocation5 + $0x48] sm:$0xf]  ;;  %v6648_v53 = vld [vmem:[#allocation5 + $0x54] sm:$0xf0]  ;;  %v5032_v55 = vor.u32 %v6748_v48, %v5031_v47 }
  0xab   :  { %1941 = vmatpush.bf16.msrb.mxu3 %v5492_v56  ;;  %v4759_v54 = vld [vmem:[#allocation5 + $0x148] sm:$0xf]  ;;  %v6680_v56 = vld [vmem:[#allocation5 + $0x154] sm:$0xf0]  ;;  %v4632_v61 = vor.u32 %v6648_v53, %v4631_v52 }
  0xac   :  { %1903 = vmatmul.bf16.vlgmr.msrb.gmra.mxu0 %v7546_v40  ;;  %1916 = vmatmul.bf16.vlgmr.msrb.gmra.mxu1 %v7550_v45  ;;  %v6744_v60 = vld [vmem:[#allocation5 + $0x354] sm:$0xf0]  ;;  %v4760_v62 = vor.u32 %v6680_v56, %v4759_v54  ;;  %v4615_v0 = vld [vmem:[#allocation5 + $0x28] sm:$0xf] }
  0xad   :  { %1947 = vmatpush.bf16.msra.mxu0 %v4712_v57  ;;  %1960 = vmatpush.bf16.msra.mxu1 %v4840_v58  ;;  %v4887_v57 = vld [vmem:[#allocation5 + $0x248] sm:$0xf]  ;;  %v6712_v58 = vld [vmem:[#allocation5 + $0x254] sm:$0xf0] }
  0xae   :  { %1973 = vmatpush.bf16.msra.mxu2 %v4968_v59  ;;  %1942 = vmatmul.bf16.vlgmr.msrb.gmra.mxu3 %v7548_v41  ;;  %v5015_v59 = vld [vmem:[#allocation5 + $0x348] sm:$0xf]  ;;  %v6644_v1 = vld [vmem:[#allocation5 + $0x34] sm:$0xf0] }
  0xaf   :  { %1986 = vmatpush.bf16.msra.mxu3 %v5096_v63  ;;  %1929 = vmatmul.bf16.vlgmr.msrb.gmra.mxu2 %v7544_v36  ;;  %v4888_v63 = vor.u32 %v6712_v58, %v4887_v57  ;;  %v4743_v3 = vld [vmem:[#allocation5 + $0x128] sm:$0xf]  ;;  %v5016_v4 = vor.u32 %v6744_v60, %v5015_v59  ;;  %v6676_v5 = vld [vmem:[#allocation5 + $0x134] sm:$0xf0]  ;;  %v4616_v11 = vor.u32 %v6644_v1, %v4615_v0 }
  0xb0   :  { %v6740_v10 = vld [vmem:[#allocation5 + $0x334] sm:$0xf0]  ;;  %v4599_v12 = vld [vmem:[#allocation5 + $0x8] sm:$0xf]  ;;  %v4744_v14 = vor.u32 %v6676_v5, %v4743_v3 }
  0xb1   :  { %1948 = vmatpush.bf16.msra.mxu0 %v4696_v6  ;;  %1961 = vmatpush.bf16.msra.mxu1 %v4824_v8  ;;  %v4871_v6 = vld [vmem:[#allocation5 + $0x228] sm:$0xf]  ;;  %v6708_v8 = vld [vmem:[#allocation5 + $0x234] sm:$0xf0] }
  0xb2   :  { %1974 = vmatpush.bf16.msra.mxu2 %v4952_v9  ;;  %v4999_v9 = vld [vmem:[#allocation5 + $0x328] sm:$0xf]  ;;  %v4872_v17 = vor.u32 %v6708_v8, %v4871_v6  ;;  %v6672_v19 = vld [vmem:[#allocation5 + $0x114] sm:$0xf0] }
  0xb3   :  { %1987 = vmatpush.bf16.msra.mxu3 %v5080_v13  ;;  %v6640_v13 = vld [vmem:[#allocation5 + $0x14] sm:$0xf0]  ;;  %v4727_v18 = vld [vmem:[#allocation5 + $0x108] sm:$0xf] }
  0xb4   :  { %v4855_v20 = vld [vmem:[#allocation5 + $0x208] sm:$0xf]  ;;  %v6736_v24 = vld [vmem:[#allocation5 + $0x314] sm:$0xf0]  ;;  %v4600_v28 = vor.u32 %v6640_v13, %v4599_v12  ;;  %v4728_v32 = vor.u32 %v6672_v19, %v4727_v18 }
  0xb5   :  { %1949 = vmatpush.bf16.msra.mxu0 %v4680_v21  ;;  %1962 = vmatpush.bf16.msra.mxu1 %v4808_v22  ;;  %v5000_v21 = vor.u32 %v6740_v10, %v4999_v9  ;;  %v6704_v22 = vld [vmem:[#allocation5 + $0x214] sm:$0xf0]  ;;  %v5223_v25 = vld [vmem:[#allocation5 + $0x4e8] sm:$0xf] }
  0xb6   :  { %1975 = vmatpush.bf16.msra.mxu2 %v4936_v23  ;;  %v4983_v23 = vld [vmem:[#allocation5 + $0x308] sm:$0xf]  ;;  %v6796_v26 = vld [vmem:[#allocation5 + $0x4f4] sm:$0xf0] }
  0xb7   :  { %1988 = vmatpush.bf16.msra.mxu3 %v5064_v27  ;;  %v5351_v27 = vld [vmem:[#allocation5 + $0x5e8] sm:$0xf]  ;;  %v6828_v29 = vld [vmem:[#allocation5 + $0x5f4] sm:$0xf0]  ;;  %v4984_v37 = vor.u32 %v6736_v24, %v4983_v23  ;;  %v5224_v38 = vor.u32 %v6796_v26, %v5223_v25 }
  0xb8   :  { %v5479_v30 = vld [vmem:[#allocation5 + $0x6e8] sm:$0xf]  ;;  %v6860_v31 = vld [vmem:[#allocation5 + $0x6f4] sm:$0xf0]  ;;  %v5352_v39 = vor.u32 %v6828_v29, %v5351_v27 }
  0xb9   :  { %1950 = vmatpush.bf16.msra.mxu0 %v4664_v33  ;;  %1963 = vmatpush.bf16.msra.mxu1 %v4792_v34  ;;  %v4856_v33 = vor.u32 %v6704_v22, %v4855_v20  ;;  %v5607_v34 = vld [vmem:[#allocation5 + $0x7e8] sm:$0xf]  ;;  %v6792_v44 = vld [vmem:[#allocation5 + $0x4d4] sm:$0xf0] }
  0xba   :  { %1976 = vmatpush.bf16.msra.mxu2 %v4920_v35  ;;  %v6892_v35 = vld [vmem:[#allocation5 + $0x7f4] sm:$0xf0]  ;;  %v5207_v43 = vld [vmem:[#allocation5 + $0x4c8] sm:$0xf] }
  0xbb   :  { %1989 = vmatpush.bf16.msra.mxu3 %v5048_v42  ;;  %v5480_v42 = vor.u32 %v6860_v31, %v5479_v30  ;;  %v5335_v46 = vld [vmem:[#allocation5 + $0x5c8] sm:$0xf]  ;;  %v5608_v47 = vor.u32 %v6892_v35, %v5607_v34  ;;  %v6824_v48 = vld [vmem:[#allocation5 + $0x5d4] sm:$0xf0]  ;;  %v5208_v53 = vor.u32 %v6792_v44, %v5207_v43 }
  0xbc   :  { %v6888_v52 = vld [vmem:[#allocation5 + $0x7d4] sm:$0xf0]  ;;  %v5336_v54 = vor.u32 %v6824_v48, %v5335_v46  ;;  %v5191_v56 = vld [vmem:[#allocation5 + $0x4a8] sm:$0xf] }
  0xbd   :  { %1951 = vmatpush.bf16.msra.mxu0 %v4648_v49  ;;  %1964 = vmatpush.bf16.msra.mxu1 %v4776_v50  ;;  %v5463_v49 = vld [vmem:[#allocation5 + $0x6c8] sm:$0xf]  ;;  %v6856_v50 = vld [vmem:[#allocation5 + $0x6d4] sm:$0xf0] }
  0xbe   :  { %1977 = vmatpush.bf16.msra.mxu2 %v4904_v51  ;;  %v5591_v51 = vld [vmem:[#allocation5 + $0x7c8] sm:$0xf]  ;;  %v6788_v57 = vld [vmem:[#allocation5 + $0x4b4] sm:$0xf0] }
  0xbf   :  { %1990 = vmatpush.bf16.msra.mxu3 %v5032_v55  ;;  %v5464_v55 = vor.u32 %v6856_v50, %v5463_v49  ;;  %v5319_v58 = vld [vmem:[#allocation5 + $0x5a8] sm:$0xf]  ;;  %v5592_v59 = vor.u32 %v6888_v52, %v5591_v51  ;;  %v6820_v60 = vld [vmem:[#allocation5 + $0x5b4] sm:$0xf0]  ;;  %v5192_v1 = vor.u32 %v6788_v57, %v5191_v56 }
  0xc0   :  { %v6884_v0 = vld [vmem:[#allocation5 + $0x7b4] sm:$0xf0]  ;;  %v5320_v3 = vor.u32 %v6820_v60, %v5319_v58  ;;  %v5175_v5 = vld [vmem:[#allocation5 + $0x488] sm:$0xf] }
  0xc1   :  { %1952 = vmatpush.bf16.msra.mxu0 %v4632_v61  ;;  %1965 = vmatpush.bf16.msra.mxu1 %v4760_v62  ;;  %v5447_v61 = vld [vmem:[#allocation5 + $0x6a8] sm:$0xf]  ;;  %v6852_v62 = vld [vmem:[#allocation5 + $0x6b4] sm:$0xf0] }
  0xc2   :  { %1978 = vmatpush.bf16.msra.mxu2 %v4888_v63  ;;  %v5575_v63 = vld [vmem:[#allocation5 + $0x7a8] sm:$0xf]  ;;  %v6784_v6 = vld [vmem:[#allocation5 + $0x494] sm:$0xf0] }
  0xc3   :  { %1991 = vmatpush.bf16.msra.mxu3 %v5016_v4  ;;  %v5448_v4 = vor.u32 %v6852_v62, %v5447_v61  ;;  %v5303_v8 = vld [vmem:[#allocation5 + $0x588] sm:$0xf]  ;;  %v5576_v9 = vor.u32 %v6884_v0, %v5575_v63  ;;  %v6816_v10 = vld [vmem:[#allocation5 + $0x594] sm:$0xf0] }
  0xc4   :  { %v6848_v12 = vld [vmem:[#allocation5 + $0x694] sm:$0xf0]  ;;  %v5559_v13 = vld [vmem:[#allocation5 + $0x788] sm:$0xf]  ;;  %v5304_v18 = vor.u32 %v6816_v10, %v5303_v8 }
  0xc5   :  { %1953 = vmatpush.bf16.msra.mxu0 %v4616_v11  ;;  %1966 = vmatpush.bf16.msra.mxu1 %v4744_v14  ;;  %v5431_v11 = vld [vmem:[#allocation5 + $0x688] sm:$0xf]  ;;  %v6880_v14 = vld [vmem:[#allocation5 + $0x794] sm:$0xf0] }
  0xc6   :  { %1979 = vmatpush.bf16.msra.mxu2 %v4872_v17  ;;  %v5176_v17 = vor.u32 %v6784_v6, %v5175_v5  ;;  %v5432_v19 = vor.u32 %v6848_v12, %v5431_v11  ;;  %v5159_v20 = vld [vmem:[#allocation5 + $0x468] sm:$0xf]  ;;  %v5560_v23 = vor.u32 %v6880_v14, %v5559_v13  ;;  %v6812_v24 = vld [vmem:[#allocation5 + $0x574] sm:$0xf0]  ;;  %v6666_v13 = vld [vmem:[#allocation5 + $0xec] sm:$0xf] }
  0xc7   :  { %1992 = vmatpush.bf16.msra.mxu3 %v5000_v21  ;;  %v6780_v21 = vld [vmem:[#allocation5 + $0x474] sm:$0xf0]  ;;  %v5287_v22 = vld [vmem:[#allocation5 + $0x568] sm:$0xf]  ;;  %v4713_v14 = vld [vmem:[#allocation5 + $0xf8] sm:$0xf0] }
  0xc8   :  { %v5415_v25 = vld [vmem:[#allocation5 + $0x668] sm:$0xf]  ;;  %v6844_v26 = vld [vmem:[#allocation5 + $0x674] sm:$0xf0]  ;;  %v5160_v29 = vor.u32 %v6780_v21, %v5159_v20  ;;  %v5288_v31 = vor.u32 %v6812_v24, %v5287_v22  ;;  %v4841_v20 = vld [vmem:[#allocation5 + $0x1f8] sm:$0xf0] }
  0xc9   :  { %1954 = vmatpush.bf16.msra.mxu0 %v4600_v28  ;;  %1967 = vmatpush.bf16.msra.mxu1 %v4728_v32  ;;  %v5543_v27 = vld [vmem:[#allocation5 + $0x768] sm:$0xf]  ;;  %v6876_v28 = vld [vmem:[#allocation5 + $0x774] sm:$0xf0]  ;;  %v5416_v32 = vor.u32 %v6844_v26, %v5415_v25  ;;  %v6730_v21 = vld [vmem:[#allocation5 + $0x2ec] sm:$0xf] }
  0xca   :  { %1980 = vmatpush.bf16.msra.mxu2 %v4856_v33  ;;  %v5143_v33 = vld [vmem:[#allocation5 + $0x448] sm:$0xf]  ;;  %v6776_v34 = vld [vmem:[#allocation5 + $0x454] sm:$0xf0]  ;;  %v4969_v22 = vld [vmem:[#allocation5 + $0x2f8] sm:$0xf0] }
  0xcb   :  { %1993 = vmatpush.bf16.msra.mxu3 %v4984_v37  ;;  %v5271_v35 = vld [vmem:[#allocation5 + $0x548] sm:$0xf]  ;;  %v6840_v43 = vld [vmem:[#allocation5 + $0x654] sm:$0xf0]  ;;  %v5144_v48 = vor.u32 %v6776_v34, %v5143_v33  ;;  %v6762_v25 = vld [vmem:[#allocation5 + $0x3ec] sm:$0xf]  ;;  %v4972_v33 = vor.u32 %v6730_v21, %v4969_v22 }
  0xcc   :  { %1955 = vmatmul.bf16.vlgmr.msra.gmra.mxu0 %v7537_v15  ;;  %1968 = vmatmul.bf16.vlgmr.msra.gmra.mxu1 %v7539_v16  ;;  %v5527_v44 = vld [vmem:[#allocation5 + $0x748] sm:$0xf]  ;;  %v6872_v46 = vld [vmem:[#allocation5 + $0x754] sm:$0xf0]  ;;  %v5097_v26 = vld [vmem:[#allocation5 + $0x3f8] sm:$0xf0] }
  0xcd   :  { %1999 = vmatpush.bf16.msrb.mxu0 %v5224_v38  ;;  %2012 = vmatpush.bf16.msrb.mxu1 %v5352_v39  ;;  %v5544_v38 = vor.u32 %v6876_v28, %v5543_v27  ;;  %v6808_v39 = vld [vmem:[#allocation5 + $0x554] sm:$0xf0]  ;;  %v5127_v51 = vld [vmem:[#allocation5 + $0x428] sm:$0xf]  ;;  %v4716_v28 = vor.u32 %v6666_v13, %v4713_v14  ;;  %v6662_v34 = vld [vmem:[#allocation5 + $0xcc] sm:$0xf] }
  0xce   :  { %2025 = vmatpush.bf16.msrb.mxu2 %v5480_v42  ;;  %1994 = vmatmul.bf16.vlgmr.msra.gmra.mxu3 %v7534_v7  ;;  %v5399_v42 = vld [vmem:[#allocation5 + $0x648] sm:$0xf]  ;;  %v5272_v49 = vor.u32 %v6808_v39, %v5271_v35  ;;  %v6772_v52 = vld [vmem:[#allocation5 + $0x434] sm:$0xf0]  ;;  %v4697_v35 = vld [vmem:[#allocation5 + $0xd8] sm:$0xf0]  ;;  %v5100_v39 = vor.u32 %v6762_v25, %v5097_v26 }
  0xcf   :  { %2038 = vmatpush.bf16.msrb.mxu3 %v5608_v47  ;;  %1981 = vmatmul.bf16.vlgmr.msra.gmra.mxu2 %v7532_v2  ;;  %v7572_v47 = vpop.f32.mrf.mxu2  ;;  %v5400_v50 = vor.u32 %v6840_v43, %v5399_v42  ;;  %v5383_v56 = vld [vmem:[#allocation5 + $0x628] sm:$0xf]  ;;  %v6836_v57 = vld [vmem:[#allocation5 + $0x634] sm:$0xf0]  ;;  %v5128_v61 = vor.u32 %v6772_v52, %v5127_v51  ;;  %v4825_v42 = vld [vmem:[#allocation5 + $0x1d8] sm:$0xf0] }
  0xd0   :  { %v7574_v58 = vpop.f32.mrf.mxu3  ;;  %v6868_v60 = vld [vmem:[#allocation5 + $0x734] sm:$0xf0]  ;;  %v5111_v62 = vld [vmem:[#allocation5 + $0x408] sm:$0xf]  ;;  %v6726_v43 = vld [vmem:[#allocation5 + $0x2cc] sm:$0xf] }
  0xd1   :  { %2000 = vmatpush.bf16.msrb.mxu0 %v5208_v53  ;;  %2013 = vmatpush.bf16.msrb.mxu1 %v5336_v54  ;;  %v5255_v53 = vld [vmem:[#allocation5 + $0x528] sm:$0xf]  ;;  %v5528_v54 = vor.u32 %v6872_v46, %v5527_v44  ;;  %v6768_v63 = vld [vmem:[#allocation5 + $0x414] sm:$0xf0]  ;;  %v4953_v44 = vld [vmem:[#allocation5 + $0x2d8] sm:$0xf0] }
  0xd2   :  { %2026 = vmatpush.bf16.msrb.mxu2 %v5464_v55  ;;  %v6804_v55 = vld [vmem:[#allocation5 + $0x534] sm:$0xf0]  ;;  %v5367_v6 = vld [vmem:[#allocation5 + $0x608] sm:$0xf]  ;;  %v6758_v46 = vld [vmem:[#allocation5 + $0x3cc] sm:$0xf] }
  0xd3   :  { %2039 = vmatpush.bf16.msrb.mxu3 %v5592_v59  ;;  %v5511_v59 = vld [vmem:[#allocation5 + $0x728] sm:$0xf]  ;;  %v6800_v5 = vld [vmem:[#allocation5 + $0x514] sm:$0xf0]  ;;  %v6658_v51 = vld [vmem:[#allocation5 + $0xac] sm:$0xf] }
  0xd4   :  { %v6832_v10 = vld [vmem:[#allocation5 + $0x614] sm:$0xf0]  ;;  %v5495_v11 = vld [vmem:[#allocation5 + $0x708] sm:$0xf]  ;;  %v4681_v52 = vld [vmem:[#allocation5 + $0xb8] sm:$0xf0] }
  0xd5   :  { %2001 = vmatpush.bf16.msrb.mxu0 %v5192_v1  ;;  %2014 = vmatpush.bf16.msrb.mxu1 %v5320_v3  ;;  %v7568_v30 = vpop.f32.mrf.mxu0  ;;  %v7570_v37 = vpop.f32.mrf.mxu1  ;;  %v5256_v1 = vor.u32 %v6804_v55, %v5255_v53  ;;  %v5384_v3 = vor.u32 %v6836_v57, %v5383_v56  ;;  %v6864_v12 = vld [vmem:[#allocation5 + $0x714] sm:$0xf0]  ;;  %v5368_v24 = vor.u32 %v6832_v10, %v5367_v6  ;;  %v6690_v53 = vld [vmem:[#allocation5 + $0x1ac] sm:$0xf]  ;;  %v4809_v55 = vld [vmem:[#allocation5 + $0x1b8] sm:$0xf0] }
  0xd6   :  { %2027 = vmatpush.bf16.msrb.mxu2 %v5448_v4  ;;  %v5239_v4 = vld [vmem:[#allocation5 + $0x508] sm:$0xf]  ;;  %v5496_v27 = vor.u32 %v6864_v12, %v5495_v11  ;;  %v6722_v56 = vld [vmem:[#allocation5 + $0x2ac] sm:$0xf]  ;;  %v4937_v57 = vld [vmem:[#allocation5 + $0x2b8] sm:$0xf0] }
  0xd7   :  { %2040 = vmatpush.bf16.msrb.mxu3 %v5576_v9  ;;  %v5512_v9 = vor.u32 %v6868_v60, %v5511_v59  ;;  %v7427_v59 = vmov 8.0   ;;  %v6754_v60 = vld [vmem:[#allocation5 + $0x3ac] sm:$0xf]  ;;  %v4793_v6 = vld [vmem:[#allocation5 + $0x198] sm:$0xf0] }
  0xd8   :  { %7162 = vrcp.f32 %v7427_v59  ;;  %v6750_v10 = vld [vmem:[#allocation5 + $0x38c] sm:$0xf]  ;;  %v5049_v11 = vld [vmem:[#allocation5 + $0x398] sm:$0xf0] }
  0xd9   :  { %2002 = vmatpush.bf16.msrb.mxu0 %v5176_v17  ;;  %2015 = vmatpush.bf16.msrb.mxu1 %v5304_v18  ;;  %v6698_v17 = vld [vmem:[#allocation5 + $0x1ec] sm:$0xf]  ;;  %v1776_v18 = vpop.f32.mrf.mxu2  ;;  %v4649_v21 = vld [vmem:[#allocation5 + $0x78] sm:$0xf0] }
  0xda   :  { %2028 = vmatpush.bf16.msrb.mxu2 %v5432_v19  ;;  %v5112_v19 = vor.u32 %v6768_v63, %v5111_v62  ;;  %v4812_v63 = vor.u32 %v6690_v53, %v4809_v55  ;;  %v6682_v22 = vld [vmem:[#allocation5 + $0x16c] sm:$0xf]  ;;  %v4905_v26 = vld [vmem:[#allocation5 + $0x278] sm:$0xf0] }
  0xdb   :  { %2041 = vmatpush.bf16.msrb.mxu3 %v5560_v23  ;;  %v5240_v23 = vor.u32 %v6800_v5, %v5239_v4  ;;  %v6686_v4 = vld [vmem:[#allocation5 + $0x18c] sm:$0xf]  ;;  %v4617_v59 = vld [vmem:[#allocation5 + $0x38] sm:$0xf0] }
  0xdc   :  { %v6714_v25 = vld [vmem:[#allocation5 + $0x26c] sm:$0xf] }
  0xdd   :  { %2003 = vmatpush.bf16.msrb.mxu0 %v5160_v29  ;;  %2016 = vmatpush.bf16.msrb.mxu1 %v5288_v31  ;;  %v1750_v0 = vpop.f32.mrf.mxu0  ;;  %v1763_v8 = vpop.f32.mrf.mxu1  ;;  %v1762_v31 = vadd.f32 %v7570_v37, %v7568_v30 }
  0xde   :  { %2029 = vmatpush.bf16.msrb.mxu2 %v5416_v32  ;;  %v1789_v29 = vpop.f32.mrf.mxu3  ;;  %v4844_v32 = vor.u32 %v6698_v17, %v4841_v20  ;;  %v4940_v0 = vor.u32 %v6722_v56, %v4937_v57  ;;  %v6718_v8 = vld [vmem:[#allocation5 + $0x28c] sm:$0xf]  ;;  %v7584_v12 = vpop.eup %7162 }
  0xdf   :  { %2042 = vmatpush.bf16.msrb.mxu3 %v5544_v38  ;;  %v6694_v38 = vld [vmem:[#allocation5 + $0x1cc] sm:$0xf]  ;;  %v1775_v30 = vadd.f32 %v7572_v47, %v1762_v31  ;;  %v5065_v47 = vld [vmem:[#allocation5 + $0x3b8] sm:$0xf0]  ;;  %v2182_v31 = vmul.f32 8.0, %v7584_v12  ;;  %vm2186_vm0 = vweird.f32 %v7584_v12 }
  0xe0   :  { %v4828_v37 = vor.u32 %v6694_v38, %v4825_v42  ;;  %v5068_v5 = vor.u32 %v6754_v60, %v5065_v47  ;;  %v6650_v20 = vld [vmem:[#allocation5 + $0x6c] sm:$0xf]  ;;  %v5033_v29 = vld [vmem:[#allocation5 + $0x378] sm:$0xf0] }
  0xe1   :  { %2004 = vmatpush.bf16.msrb.mxu0 %v5144_v48  ;;  %2017 = vmatpush.bf16.msrb.mxu1 %v5272_v49  ;;  %v5081_v48 = vld [vmem:[#allocation5 + $0x3d8] sm:$0xf0]  ;;  %v4700_v49 = vor.u32 %v6662_v34, %v4697_v35  ;;  %v1788_v62 = vadd.f32 %v7574_v58, %v1775_v30  ;;  %v4796_v58 = vor.u32 %v6686_v4, %v4793_v6  ;;  %v6646_v38 = vld [vmem:[#allocation5 + $0x4c] sm:$0xf] }
  0xe2   :  { %2030 = vmatpush.bf16.msrb.mxu2 %v5400_v50  ;;  %v4956_v50 = vor.u32 %v6726_v43, %v4953_v44  ;;  %v4908_v34 = vor.u32 %v6714_v25, %v4905_v26  ;;  %v6678_v42 = vld [vmem:[#allocation5 + $0x14c] sm:$0xf]  ;;  %v4889_v30 = vld [vmem:[#allocation5 + $0x258] sm:$0xf0] }
  0xe3   :  { %2043 = vmatpush.bf16.msrb.mxu3 %v5528_v54  ;;  %v5084_v54 = vor.u32 %v6758_v46, %v5081_v48  ;;  %v4761_v48 = vld [vmem:[#allocation5 + $0x158] sm:$0xf0]  ;;  %v6674_v60 = vld [vmem:[#allocation5 + $0x12c] sm:$0xf] }
  0xe4   :  { %v4764_v56 = vor.u32 %v6678_v42, %v4761_v48  ;;  %v4745_v47 = vld [vmem:[#allocation5 + $0x138] sm:$0xf0]  ;;  %v6738_v4 = vld [vmem:[#allocation5 + $0x32c] sm:$0xf] }
  0xe5   :  { %2005 = vmatpush.bf16.msrb.mxu0 %v5128_v61  ;;  %2018 = vmatpush.bf16.msrb.mxu1 %v5256_v1  ;;  %v4684_v61 = vor.u32 %v6658_v51, %v4681_v52  ;;  %v6654_v1 = vld [vmem:[#allocation5 + $0x8c] sm:$0xf]  ;;  %v5017_v51 = vld [vmem:[#allocation5 + $0x358] sm:$0xf0] }
  0xe6   :  { %2031 = vmatpush.bf16.msrb.mxu2 %v5384_v3  ;;  %v4665_v3 = vld [vmem:[#allocation5 + $0x98] sm:$0xf0]  ;;  %v6794_v26 = vld [vmem:[#allocation5 + $0x4ec] sm:$0xf] }
  0xe7   :  { %2044 = vmatpush.bf16.msrb.mxu3 %v5512_v9  ;;  %v4921_v9 = vld [vmem:[#allocation5 + $0x298] sm:$0xf0]  ;;  %v4668_v13 = vor.u32 %v6654_v1, %v4665_v3 }
  0xe8   :  { %v4924_v17 = vor.u32 %v6718_v8, %v4921_v9  ;;  %v4873_v1 = vld [vmem:[#allocation5 + $0x238] sm:$0xf0]  ;;  %v6638_v9 = vld [vmem:[#allocation5 + $0xc] sm:$0xf] }
  0xe9   :  { %2006 = vmatpush.bf16.msrb.mxu0 %v5112_v19  ;;  %2019 = vmatpush.bf16.msrb.mxu1 %v5240_v23  ;;  %v5052_v23 = vor.u32 %v6750_v10, %v5049_v11  ;;  %v4601_v10 = vld [vmem:[#allocation5 + $0x18] sm:$0xf0]  ;;  %v6670_v11 = vld [vmem:[#allocation5 + $0x10c] sm:$0xf] }
  0xea   :  { %2032 = vmatpush.bf16.msrb.mxu2 %v5368_v24  ;;  %v4777_v24 = vld [vmem:[#allocation5 + $0x178] sm:$0xf0] }
  0xeb   :  { %2045 = vmatpush.bf16.msrb.mxu3 %v5496_v27  ;;  %v1800_v14 = vpop.f32.mrf.mxu0  ;;  %v5609_v42 = vld [vmem:[#allocation5 + $0x7f8] sm:$0xf0] }
  0xec   :  { %2007 = vmatmul.bf16.vlgmr.msrb.gmra.mxu0 %v7546_v40  ;;  %2020 = vmatmul.bf16.vlgmr.msrb.gmra.mxu1 %v7550_v45  ;;  %v1801_v18 = vadd.f32 %v1800_v14, %v1788_v62 }
  0xed   :  { %2051 = vmatpush.bf16.msra.mxu0 %v4716_v28  ;;  %2064 = vmatpush.bf16.msra.mxu1 %v4844_v32  ;;  %v1813_v19 = vpop.f32.mrf.mxu1  ;;  %v6746_v28 = vld [vmem:[#allocation5 + $0x36c] sm:$0xf]  ;;  %v4652_v32 = vor.u32 %v6650_v20, %v4649_v21 }
  0xee   :  { %2077 = vmatpush.bf16.msra.mxu2 %v4972_v33  ;;  %2046 = vmatmul.bf16.vlgmr.msrb.gmra.mxu3 %v7548_v41  ;;  %v1814_v27 = vadd.f32 %v1813_v19, %v1801_v18  ;;  %v4780_v33 = vor.u32 %v6682_v22, %v4777_v24  ;;  %v5036_v43 = vor.u32 %v6746_v28, %v5033_v29  ;;  %v4857_v18 = vld [vmem:[#allocation5 + $0x218] sm:$0xf0]  ;;  %v6734_v22 = vld [vmem:[#allocation5 + $0x30c] sm:$0xf] }
  0xef   :  { %2090 = vmatpush.bf16.msra.mxu3 %v5100_v39  ;;  %2033 = vmatmul.bf16.vlgmr.msrb.gmra.mxu2 %v7544_v36  ;;  %v4633_v39 = vld [vmem:[#allocation5 + $0x58] sm:$0xf0]  ;;  %v6826_v28 = vld [vmem:[#allocation5 + $0x5ec] sm:$0xf] }
  0xf0   :  { %v4636_v53 = vor.u32 %v6646_v38, %v4633_v39  ;;  %v6890_v39 = vld [vmem:[#allocation5 + $0x7ec] sm:$0xf] }
  0xf1   :  { %2052 = vmatpush.bf16.msra.mxu0 %v4700_v49  ;;  %2065 = vmatpush.bf16.msra.mxu1 %v4828_v37  ;;  %v6710_v49 = vld [vmem:[#allocation5 + $0x24c] sm:$0xf]  ;;  %v2183_v37 = vsub.f32 1.0, %v2182_v31  ;;  %v4604_v31 = vor.u32 %v6638_v9, %v4601_v10  ;;  %v5577_v10 = vld [vmem:[#allocation5 + $0x7b8] sm:$0xf0] }
  0xf2   :  { %2078 = vmatpush.bf16.msra.mxu2 %v4956_v50  ;;  %v1826_v35 = vpop.f32.mrf.mxu2  ;;  %v6742_v50 = vld [vmem:[#allocation5 + $0x34c] sm:$0xf]  ;;  %v4892_v57 = vor.u32 %v6710_v49, %v4889_v30 }
  0xf3   :  { %2091 = vmatpush.bf16.msra.mxu3 %v5084_v54  ;;  %v1827_v44 = vadd.f32 %v1826_v35, %v1814_v27  ;;  %v1839_v46 = vpop.f32.mrf.mxu3  ;;  %v6642_v54 = vld [vmem:[#allocation5 + $0x2c] sm:$0xf]  ;;  %v1802_v55 = vpop.f32.mrf.mxu0  ;;  %v2184_v3 = vmul.f32 %v7584_v12, %v2183_v37  ;;  %v5225_v27 = vld [vmem:[#allocation5 + $0x4f8] sm:$0xf0] }
  0xf4   :  { %v4620_v8 = vor.u32 %v6642_v54, %v4617_v59  ;;  %v6790_v37 = vld [vmem:[#allocation5 + $0x4cc] sm:$0xf]  ;;  %v5612_v54 = vor.u32 %v6890_v39, %v5609_v42  ;;  %v5337_v55 = vld [vmem:[#allocation5 + $0x5d8] sm:$0xf0] }
  0xf5   :  { %2053 = vmatpush.bf16.msra.mxu0 %v4684_v61  ;;  %2066 = vmatpush.bf16.msra.mxu1 %v4812_v63  ;;  %v7587_v52 = vadd.f32 %v1839_v46, %v1827_v44  ;;  %v1815_v61 = vpop.f32.mrf.mxu1  ;;  %v5020_v63 = vor.u32 %v6742_v50, %v5017_v51  ;;  %v2185_v25 = vadd.f32 %v7584_v12, %v2184_v3  ;;  %v5209_v50 = vld [vmem:[#allocation5 + $0x4d8] sm:$0xf0]  ;;  %v6822_v51 = vld [vmem:[#allocation5 + $0x5cc] sm:$0xf] }
  0xf6   :  { %2079 = vmatpush.bf16.msra.mxu2 %v4940_v0  ;;  %v6706_v0 = vld [vmem:[#allocation5 + $0x22c] sm:$0xf]  ;;  %v5228_v46 = vor.u32 %v6794_v26, %v5225_v27  ;;  %v5340_v61 = vor.u32 %v6822_v51, %v5337_v55  ;;  %v5545_v42 = vld [vmem:[#allocation5 + $0x778] sm:$0xf0] }
  0xf7   :  { %2092 = vmatpush.bf16.msra.mxu3 %v5068_v5  ;;  %v2157_v62 = vrot.slane %v7587_v52, 4  ;;  %v5001_v5 = vld [vmem:[#allocation5 + $0x338] sm:$0xf0]  ;;  %v4876_v14 = vor.u32 %v6706_v0, %v4873_v1  ;;  %v7597_v48 = vsel %vm2186_vm0, %v7584_v12, %v2185_v25  ;;  %v6886_v59 = vld [vmem:[#allocation5 + $0x7cc] sm:$0xf]  ;;  %v5212_v12 = vor.u32 %v6790_v37, %v5209_v50 }
  0xf8   :  { %v5004_v21 = vor.u32 %v6738_v4, %v5001_v5  ;;  %v5193_v0 = vld [vmem:[#allocation5 + $0x4b8] sm:$0xf0]  ;;  %v6818_v1 = vld [vmem:[#allocation5 + $0x5ac] sm:$0xf] }
  0xf9   :  { %2054 = vmatpush.bf16.msra.mxu0 %v4668_v13  ;;  %2067 = vmatpush.bf16.msra.mxu1 %v4796_v58  ;;  %v2158_v6 = vadd.f32 %v2157_v62, %v7587_v52  ;;  %v4748_v13 = vor.u32 %v6674_v60, %v4745_v47  ;;  %v4729_v58 = vld [vmem:[#allocation5 + $0x118] sm:$0xf0]  ;;  %v6882_v9 = vld [vmem:[#allocation5 + $0x7ac] sm:$0xf] }
  0xfa   :  { %2080 = vmatpush.bf16.msra.mxu2 %v4924_v17  ;;  %v6702_v17 = vld [vmem:[#allocation5 + $0x20c] sm:$0xf]  ;;  %v1828_v19 = vpop.f32.mrf.mxu2  ;;  %v4732_v35 = vor.u32 %v6670_v11, %v4729_v58  ;;  %v5593_v60 = vld [vmem:[#allocation5 + $0x7d8] sm:$0xf0] }
  0xfb   :  { %2093 = vmatpush.bf16.msra.mxu3 %v5052_v23  ;;  %v2159_v20 = vrot.slane %v2158_v6, 2  ;;  %v4985_v23 = vld [vmem:[#allocation5 + $0x318] sm:$0xf0]  ;;  %v1841_v24 = vpop.f32.mrf.mxu3  ;;  %v4860_v38 = vor.u32 %v6702_v17, %v4857_v18  ;;  %v5596_v4 = vor.u32 %v6886_v59, %v5593_v60  ;;  %v6814_v17 = vld [vmem:[#allocation5 + $0x58c] sm:$0xf] }
  0xfc   :  { %v4988_v44 = vor.u32 %v6734_v22, %v4985_v23  ;;  %v5321_v5 = vld [vmem:[#allocation5 + $0x5b8] sm:$0xf0]  ;;  %v6778_v25 = vld [vmem:[#allocation5 + $0x46c] sm:$0xf] }
  0xfd   :  { %2055 = vmatpush.bf16.msra.mxu0 %v4652_v32  ;;  %2068 = vmatpush.bf16.msra.mxu1 %v4780_v33  ;;  %v2160_v29 = vadd.f32 %v2159_v20, %v2158_v6  ;;  %v5353_v32 = vld [vmem:[#allocation5 + $0x5f8] sm:$0xf0]  ;;  %v6858_v33 = vld [vmem:[#allocation5 + $0x6ec] sm:$0xf] }
  0xfe   :  { %2081 = vmatpush.bf16.msra.mxu2 %v4908_v34  ;;  %v5481_v34 = vld [vmem:[#allocation5 + $0x6f8] sm:$0xf0]  ;;  %v5356_v49 = vor.u32 %v6826_v28, %v5353_v32  ;;  %v6850_v6 = vld [vmem:[#allocation5 + $0x6ac] sm:$0xf] }
  0xff   :  { %2094 = vmatpush.bf16.msra.mxu3 %v5036_v43  ;;  %v2161_v43 = vrot.slane %v2160_v29, 1  ;;  %v5484_v30 = vor.u32 %v6858_v33, %v5481_v34  ;;  %v5177_v58 = vld [vmem:[#allocation5 + $0x498] sm:$0xf0]  ;;  %v6846_v20 = vld [vmem:[#allocation5 + $0x68c] sm:$0xf] }
 0x100   :  { %v5305_v18 = vld [vmem:[#allocation5 + $0x598] sm:$0xf0]  ;;  %v6874_v39 = vld [vmem:[#allocation5 + $0x76c] sm:$0xf] }
 0x101   :  { %2056 = vmatpush.bf16.msra.mxu0 %v4636_v53  ;;  %2069 = vmatpush.bf16.msra.mxu1 %v4764_v56  ;;  %v2162_v53 = vadd.f32 %v2161_v43, %v2160_v29  ;;  %v6854_v56 = vld [vmem:[#allocation5 + $0x6cc] sm:$0xf]  ;;  %v5561_v22 = vld [vmem:[#allocation5 + $0x798] sm:$0xf0]  ;;  %v5308_v26 = vor.u32 %v6814_v17, %v5305_v18  ;;  %v5548_v55 = vor.u32 %v6874_v39, %v5545_v42 }
 0x102   :  { %2082 = vmatpush.bf16.msra.mxu2 %v4892_v57  ;;  %v5465_v57 = vld [vmem:[#allocation5 + $0x6d8] sm:$0xf0]  ;;  %v6810_v29 = vld [vmem:[#allocation5 + $0x56c] sm:$0xf] }
 0x103   :  { %2095 = vmatpush.bf16.msra.mxu3 %v5020_v63  ;;  %v2188_v47 = vmul.f32 %v7597_v48, %v2162_v53  ;;  %v5468_v62 = vor.u32 %v6854_v56, %v5465_v57  ;;  %v6786_v63 = vld [vmem:[#allocation5 + $0x4ac] sm:$0xf]  ;;  %v5161_v28 = vld [vmem:[#allocation5 + $0x478] sm:$0xf0] }
 0x104   :  { %v5145_v37 = vld [vmem:[#allocation5 + $0x458] sm:$0xf0]  ;;  %v6806_v50 = vld [vmem:[#allocation5 + $0x54c] sm:$0xf] }
 0x105   :  { %2057 = vmatpush.bf16.msra.mxu0 %v4620_v8  ;;  %2070 = vmatpush.bf16.msra.mxu1 %v4748_v13  ;;  %v7601_v3 = vsub.f32 %v7587_v52, %v2188_v47  ;;  %v5449_v8 = vld [vmem:[#allocation5 + $0x6b8] sm:$0xf0]  ;;  %v5196_v13 = vor.u32 %v6786_v63, %v5193_v0  ;;  %v6782_v52 = vld [vmem:[#allocation5 + $0x48c] sm:$0xf] }
 0x106   :  { %2083 = vmatpush.bf16.msra.mxu2 %v4876_v14  ;;  %v5452_v14 = vor.u32 %v6850_v6, %v5449_v8  ;;  %v5180_v24 = vor.u32 %v6782_v52, %v5177_v58  ;;  %v5273_v51 = vld [vmem:[#allocation5 + $0x558] sm:$0xf0]  ;;  %v6838_v56 = vld [vmem:[#allocation5 + $0x64c] sm:$0xf] }
 0x107   :  { %2096 = vmatpush.bf16.msra.mxu3 %v5004_v21  ;;  %v2196_v11 = vmul.f32 %v7601_v3, %v7601_v3  ;;  %v6878_v21 = vld [vmem:[#allocation5 + $0x78c] sm:$0xf]  ;;  %v5401_v57 = vld [vmem:[#allocation5 + $0x658] sm:$0xf0]  ;;  %v5276_v63 = vor.u32 %v6806_v50, %v5273_v51  ;;  %v6951_v50 = vld [vmem:[#allocation8 + $0x1cc] sm:$0xf0] }
 0x108   :  { %v5564_v34 = vor.u32 %v6878_v21, %v5561_v22  ;;  %v6870_v60 = vld [vmem:[#allocation5 + $0x74c] sm:$0xf]  ;;  %v5529_v47 = vld [vmem:[#allocation5 + $0x758] sm:$0xf0]  ;;  %v5404_v0 = vor.u32 %v6838_v56, %v5401_v57 }
 0x109   :  { %2058 = vmatpush.bf16.msra.mxu0 %v4604_v31  ;;  %2071 = vmatpush.bf16.msra.mxu1 %v4732_v35  ;;  %v2200_v19 = vrot.slane %v2196_v11, 4  ;;  %v5289_v31 = vld [vmem:[#allocation5 + $0x578] sm:$0xf0]  ;;  %v7611_v32 = vpop.f32.mrf.mxu1  ;;  %v6842_v35 = vld [vmem:[#allocation5 + $0x66c] sm:$0xf] }
 0x10a   :  { %2084 = vmatpush.bf16.msra.mxu2 %v4860_v38  ;;  %v5417_v38 = vld [vmem:[#allocation5 + $0x678] sm:$0xf0]  ;;  %v6866_v52 = vld [vmem:[#allocation5 + $0x72c] sm:$0xf] }
 0x10b   :  { %2097 = vmatpush.bf16.msra.mxu3 %v4988_v44  ;;  %v2201_v23 = vadd.f32 %v2200_v19, %v2196_v11  ;;  %v5164_v44 = vor.u32 %v6778_v25, %v5161_v28  ;;  %v6834_v11 = vld [vmem:[#allocation5 + $0x62c] sm:$0xf]  ;;  %v5727_v28 = vld [vmem:[#allocation8 + $0xe0] sm:$0xf] }
 0x10c   :  { %2059 = vmatmul.bf16.vlgmr.msra.gmra.mxu0 %v7537_v15  ;;  %2072 = vmatmul.bf16.vlgmr.msra.gmra.mxu1 %v7539_v16  ;;  %v5580_v15 = vor.u32 %v6882_v9, %v5577_v10  ;;  %v7609_v16 = vpop.f32.mrf.mxu0  ;;  %v5532_v9 = vor.u32 %v6870_v60, %v5529_v47  ;;  %v5257_v10 = vld [vmem:[#allocation5 + $0x538] sm:$0xf0]  ;;  %v6766_v17 = vld [vmem:[#allocation5 + $0x40c] sm:$0xf]  ;;  %v5823_v60 = vld [vmem:[#allocation8 + $0x1a0] sm:$0xf] }
 0x10d   :  { %2103 = vmatpush.bf16.msrb.mxu0 %v5228_v46  ;;  %2116 = vmatpush.bf16.msrb.mxu1 %v5356_v49  ;;  %v2202_v33 = vrot.slane %v2201_v23, 2  ;;  %v6774_v46 = vld [vmem:[#allocation5 + $0x44c] sm:$0xf]  ;;  %v5292_v49 = vor.u32 %v6810_v29, %v5289_v31  ;;  %v6923_v29 = vld [vmem:[#allocation8 + $0xec] sm:$0xf0] }
 0x10e   :  { %2129 = vmatpush.bf16.msrb.mxu2 %v5484_v30  ;;  %2098 = vmatmul.bf16.vlgmr.msra.gmra.mxu3 %v7534_v7  ;;  %v5433_v7 = vld [vmem:[#allocation5 + $0x698] sm:$0xf0]  ;;  %v5420_v30 = vor.u32 %v6842_v35, %v5417_v38  ;;  %v6862_v25 = vld [vmem:[#allocation5 + $0x70c] sm:$0xf]  ;;  %v5728_v42 = vor.u32 %v6923_v29, %v5727_v28  ;;  %v6947_v47 = vld [vmem:[#allocation8 + $0x1ac] sm:$0xf0] }
 0x10f   :  { %2142 = vmatpush.bf16.msrb.mxu3 %v5612_v54  ;;  %2085 = vmatmul.bf16.vlgmr.msra.gmra.mxu2 %v7532_v2  ;;  %v5324_v2 = vor.u32 %v6818_v1, %v5321_v5  ;;  %v5436_v27 = vor.u32 %v6846_v20, %v5433_v7  ;;  %v2203_v43 = vadd.f32 %v2202_v33, %v2201_v23  ;;  %v6770_v1 = vld [vmem:[#allocation5 + $0x42c] sm:$0xf]  ;;  %v5241_v7 = vld [vmem:[#allocation5 + $0x518] sm:$0xf0]  ;;  %v5855_v33 = vld [vmem:[#allocation8 + $0x1e0] sm:$0xf] }
 0x110   :  { %v6802_v5 = vld [vmem:[#allocation5 + $0x52c] sm:$0xf]  ;;  %v5631_v28 = vld [vmem:[#allocation8 + $0x20] sm:$0xf]  ;;  %v6899_v29 = vld [vmem:[#allocation8 + $0x2c] sm:$0xf0] }
 0x111   :  { %2104 = vmatpush.bf16.msrb.mxu0 %v5212_v12  ;;  %2117 = vmatpush.bf16.msrb.mxu1 %v5340_v61  ;;  %v2204_v54 = vrot.slane %v2203_v43, 1  ;;  %v7615_v59 = vpop.f32.mrf.mxu3  ;;  %v5148_v61 = vor.u32 %v6774_v46, %v5145_v37  ;;  %v1867_v6 = vpop.f32.mrf.mxu1  ;;  %v5260_v18 = vor.u32 %v6802_v5, %v5257_v10  ;;  %v6798_v20 = vld [vmem:[#allocation5 + $0x50c] sm:$0xf]  ;;  %v6919_v46 = vld [vmem:[#allocation8 + $0xcc] sm:$0xf0] }
 0x112   :  { %2130 = vmatpush.bf16.msrb.mxu2 %v5468_v62  ;;  %v7613_v53 = vpop.f32.mrf.mxu2  ;;  %v6830_v23 = vld [vmem:[#allocation5 + $0x60c] sm:$0xf]  ;;  %v5244_v35 = vor.u32 %v6798_v20, %v5241_v7  ;;  %v5839_v37 = vld [vmem:[#allocation8 + $0x1c0] sm:$0xf]  ;;  %v7631_v10 = vld [vmem:[#allocation7] sm:$0xf] }
 0x113   :  { %2143 = vmatpush.bf16.msrb.mxu3 %v5596_v4  ;;  %v2205_v12 = vadd.f32 %v2204_v54, %v2203_v43  ;;  %v5129_v4 = vld [vmem:[#allocation5 + $0x438] sm:$0xf0]  ;;  %v1866_v43 = vadd.f32 %v7611_v32, %v7609_v16  ;;  %v5695_v16 = vld [vmem:[#allocation8 + $0xa0] sm:$0xf]  ;;  %v6915_v32 = vld [vmem:[#allocation8 + $0xac] sm:$0xf0]  ;;  %v5840_v57 = vor.u32 %v6951_v50, %v5839_v37 }
 0x114   :  { %v1854_v62 = vpop.f32.mrf.mxu0  ;;  %v5132_v58 = vor.u32 %v6770_v1, %v5129_v4  ;;  %v5807_v1 = vld [vmem:[#allocation8 + $0x180] sm:$0xf]  ;;  %v6943_v4 = vld [vmem:[#allocation8 + $0x18c] sm:$0xf0] }
 0x115   :  { %2105 = vmatpush.bf16.msrb.mxu0 %v5196_v13  ;;  %2118 = vmatpush.bf16.msrb.mxu1 %v5324_v2  ;;  %v2224_v8 = vmul.f32 %v2205_v12, %v7597_v48  ;;  %v5385_v13 = vld [vmem:[#allocation5 + $0x638] sm:$0xf0]  ;;  %v1879_v56 = vadd.f32 %v7613_v53, %v1866_v43  ;;  %v5632_v43 = vor.u32 %v6899_v29, %v5631_v28 }
 0x116   :  { %2131 = vmatpush.bf16.msrb.mxu2 %v5452_v14  ;;  %v5513_v2 = vld [vmem:[#allocation5 + $0x738] sm:$0xf0]  ;;  %v5388_v19 = vor.u32 %v6834_v11, %v5385_v13  ;;  %v5791_v13 = vld [vmem:[#allocation8 + $0x160] sm:$0xf] }
 0x117   :  { %2144 = vmatpush.bf16.msrb.mxu3 %v5580_v15  ;;  %v7618_v14 = vadd.f32 1e-05, %v2224_v8  ;;  %v5113_v15 = vld [vmem:[#allocation5 + $0x418] sm:$0xf0]  ;;  %v5516_v22 = vor.u32 %v6866_v52, %v5513_v2  ;;  %v1892_v53 = vadd.f32 %v7615_v59, %v1879_v56  ;;  %v5663_v8 = vld [vmem:[#allocation8 + $0x60] sm:$0xf]  ;;  %v5808_v59 = vor.u32 %v6943_v4, %v5807_v1 }
 0x118   :  { %v5116_v31 = vor.u32 %v6766_v17, %v5113_v15  ;;  %v6939_v52 = vld [vmem:[#allocation8 + $0x16c] sm:$0xf0]  ;;  %v2277_v17 = vperm.slane %v7631_v10, 0  ;;  %v5743_v56 = vld [vmem:[#allocation8 + $0x100] sm:$0xf] }
 0x119   :  { %2106 = vmatpush.bf16.msrb.mxu0 %v5180_v24  ;;  %2119 = vmatpush.bf16.msrb.mxu1 %v5308_v26  ;;  %7164 = vrsqrt.f32 %v7618_v14  ;;  %v5369_v24 = vld [vmem:[#allocation5 + $0x618] sm:$0xf0]  ;;  %v1893_v26 = vpop.f32.mrf.mxu3  ;;  %vm2238_vm2 = vweird.f32 %v7618_v14  ;;  %v6903_v15 = vld [vmem:[#allocation8 + $0x4c] sm:$0xf0]  ;;  %v5792_v20 = vor.u32 %v6939_v52, %v5791_v13  ;;  %v6949_v1 = vld [vmem:[#allocation8 + $0x1c4] sm:$0xf] }
 0x11a   :  { %2132 = vmatpush.bf16.msrb.mxu2 %v5436_v27  ;;  %v1880_v21 = vpop.f32.mrf.mxu2  ;;  %v5497_v27 = vld [vmem:[#allocation5 + $0x718] sm:$0xf0]  ;;  %v5372_v38 = vor.u32 %v6830_v23, %v5369_v24  ;;  %v5775_v23 = vld [vmem:[#allocation8 + $0x140] sm:$0xf]  ;;  %v6935_v24 = vld [vmem:[#allocation8 + $0x14c] sm:$0xf0] }
 0x11b   :  { %2145 = vmatpush.bf16.msrb.mxu3 %v5564_v34  ;;  %v6955_v34 = vld [vmem:[#allocation8 + $0x1ec] sm:$0xf0]  ;;  %v5500_v39 = vor.u32 %v6862_v25, %v5497_v27  ;;  %v5841_v4 = vld [vmem:[#allocation8 + $0x1d0] sm:$0xf0] }
 0x11d   :  { %2107 = vmatpush.bf16.msrb.mxu0 %v5164_v44  ;;  %2120 = vmatpush.bf16.msrb.mxu1 %v5292_v49  ;;  %v5711_v44 = vld [vmem:[#allocation8 + $0xc0] sm:$0xf]  ;;  %v5856_v49 = vor.u32 %v6955_v34, %v5855_v33  ;;  %v5776_v34 = vor.u32 %v6935_v24, %v5775_v23  ;;  %v5665_v23 = vld [vmem:[#allocation8 + $0x70] sm:$0xf0] }
 0x11e   :  { %2133 = vmatpush.bf16.msrb.mxu2 %v5420_v30  ;;  %v5712_v54 = vor.u32 %v6919_v46, %v5711_v44  ;;  %v5615_v44 = vld [vmem:[#allocation8] sm:$0xf]  ;;  %v6895_v46 = vld [vmem:[#allocation8 + $0xc] sm:$0xf0] }
 0x11f   :  { %2146 = vmatpush.bf16.msrb.mxu3 %v5548_v55  ;;  %v7165_v30 = vpop.eup %7164 }
 0x120   :  { %v2233_v51 = vmul.f32 %v7165_v30, %v7618_v14  ;;  %vm2239_vm1 = vweird.f32 %v7165_v30 }
 0x121   :  { %2108 = vmatpush.bf16.msrb.mxu0 %v5148_v61  ;;  %2121 = vmatpush.bf16.msrb.mxu1 %v5276_v63  ;;  %v5696_v61 = vor.u32 %v6915_v32, %v5695_v16  ;;  %v5679_v63 = vld [vmem:[#allocation8 + $0x80] sm:$0xf]  ;;  %vm2240_vm3 = vmor %vm2238_vm2, %vm2239_vm1  ;;  %v6927_v16 = vld [vmem:[#allocation8 + $0x10c] sm:$0xf0] }
 0x122   :  { %2134 = vmatpush.bf16.msrb.mxu2 %v5404_v0  ;;  %v2234_v55 = vmul.f32 %v7165_v30, %v2233_v51  ;;  %v5824_v0 = vor.u32 %v6947_v47, %v5823_v60  ;;  %v6953_v32 = vld [vmem:[#allocation8 + $0x1e4] sm:$0xf]  ;;  %v5616_v47 = vor.u32 %v6895_v46, %v5615_v44 }
 0x123   :  { %2147 = vmatpush.bf16.msrb.mxu3 %v5532_v9  ;;  %v6907_v9 = vld [vmem:[#allocation8 + $0x6c] sm:$0xf0] }
 0x124   :  { %v2235_v12 = vmul.f32 0.5, %v2234_v55 }
 0x125   :  { %2109 = vmatpush.bf16.msrb.mxu0 %v5132_v58  ;;  %2122 = vmatpush.bf16.msrb.mxu1 %v5260_v18  ;;  %v5664_v58 = vor.u32 %v6907_v9, %v5663_v8  ;;  %v5697_v8 = vld [vmem:[#allocation8 + $0xb0] sm:$0xf0]  ;;  %v5844_v9 = vor.u32 %v6949_v1, %v5841_v4 }
 0x126   :  { %2135 = vmatpush.bf16.msrb.mxu2 %v5388_v19  ;;  %v2236_v62 = vsub.f32 1.5, %v2235_v12  ;;  %v5647_v19 = vld [vmem:[#allocation8 + $0x40] sm:$0xf]  ;;  %v5745_v1 = vld [vmem:[#allocation8 + $0x110] sm:$0xf0] }
 0x127   :  { %2148 = vmatpush.bf16.msrb.mxu3 %v5516_v22  ;;  %v7638_v22 = vld [vmem:[%s7897_s3] sm:$0xf]  ;;  %v5648_v26 = vor.u32 %v6903_v15, %v5647_v19  ;;  %v5809_v19 = vld [vmem:[#allocation8 + $0x190] sm:$0xf0] }
 0x129   :  { %2110 = vmatpush.bf16.msrb.mxu0 %v5116_v31  ;;  %2123 = vmatpush.bf16.msrb.mxu1 %v5244_v35  ;;  %v1904_v5 = vpop.f32.mrf.mxu0  ;;  %v1917_v6 = vpop.f32.mrf.mxu1  ;;  %v2290_v31 = vperm.slane %v7638_v22, 0 }
 0x12a   :  { %2136 = vmatpush.bf16.msrb.mxu2 %v5372_v38  ;;  %v5759_v38 = vld [vmem:[#allocation8 + $0x120] sm:$0xf] }
 0x12b   :  { %2149 = vmatpush.bf16.msrb.mxu3 %v5500_v39  ;;  %v6931_v39 = vld [vmem:[#allocation8 + $0x12c] sm:$0xf0] }
 0x12c   :  { %2111 = vmatmul.bf16.vlgmr.msrb.gmra.mxu0 %v7546_v40  ;;  %2124 = vmatmul.bf16.vlgmr.msrb.gmra.mxu1 %v7550_v45  ;;  %v6911_v40 = vld [vmem:[#allocation8 + $0x8c] sm:$0xf0]  ;;  %v2237_v45 = vmul.f32 %v7165_v30, %v2236_v62  ;;  %v5760_v51 = vor.u32 %v6931_v39, %v5759_v38  ;;  %v5744_v62 = vor.u32 %v6927_v16, %v5743_v56  ;;  %v6933_v39 = vld [vmem:[#allocation8 + $0x144] sm:$0xf]  ;;  %v5761_v56 = vld [vmem:[#allocation8 + $0x130] sm:$0xf0] }
 0x12d   :  { %3078 = vmatpush.bf16.msra.mxu0 %v5728_v42  ;;  %3091 = vmatpush.bf16.msra.mxu1 %v5856_v49  ;;  %v6921_v49 = vld [vmem:[#allocation8 + $0xe4] sm:$0xf] }
 0x12e   :  { %2137 = vmatmul.bf16.vlgmr.msrb.gmra.mxu2 %v7544_v36  ;;  %2150 = vmatmul.bf16.vlgmr.msrb.gmra.mxu3 %v7548_v41  ;;  %v5680_v36 = vor.u32 %v6911_v40, %v5679_v63  ;;  %v1905_v41 = vadd.f32 %v1904_v5, %v1892_v53  ;;  %v2241_v11 = vsel %vm2240_vm3, %v7165_v30, %v2237_v45  ;;  %v5729_v30 = vld [vmem:[#allocation8 + $0xf0] sm:$0xf0]  ;;  %v6917_v63 = vld [vmem:[#allocation8 + $0xc4] sm:$0xf] }
 0x12f   :  { %v2272_v14 = vmul.f32 %v2241_v11, %v7601_v3  ;;  %v5732_v12 = vor.u32 %v6921_v49, %v5729_v30  ;;  %v5713_v40 = vld [vmem:[#allocation8 + $0xd0] sm:$0xf0]  ;;  %v6897_v30 = vld [vmem:[#allocation8 + $0x24] sm:$0xf] }
 0x130   :  { %v1918_v2 = vadd.f32 %v1917_v6, %v1905_v41  ;;  %v5716_v5 = vor.u32 %v6917_v63, %v5713_v40  ;;  %v6913_v6 = vld [vmem:[#allocation8 + $0xa4] sm:$0xf]  ;;  %v5825_v11 = vld [vmem:[#allocation8 + $0x1b0] sm:$0xf0]  ;;  %v6924_v63 = vld [vmem:[#allocation8 + $0xf4] sm:$0xf0] }
 0x131   :  { %3079 = vmatpush.bf16.msra.mxu0 %v5712_v54  ;;  %3092 = vmatpush.bf16.msra.mxu1 %v5840_v57  ;;  %v1943_v21 = vpop.f32.mrf.mxu3  ;;  %v1906_v3 = vpop.f32.mrf.mxu0  ;;  %v2285_v27 = vmul.f32 %v2277_v17, %v2272_v14  ;;  %v5857_v57 = vld [vmem:[#allocation8 + $0x1f0] sm:$0xf0]  ;;  %v5700_v52 = vor.u32 %v6913_v6, %v5697_v8  ;;  %v5967_v8 = vld [vmem:[#allocation8 + $0x2c0] sm:$0xf] }
 0x132   :  { %v1930_v18 = vpop.f32.mrf.mxu2  ;;  %v1919_v33 = vpop.f32.mrf.mxu1  ;;  %v5681_v14 = vld [vmem:[#allocation8 + $0x90] sm:$0xf0]  ;;  %v6937_v3 = vld [vmem:[#allocation8 + $0x164] sm:$0xf] }
 0x133   :  { %v1931_v7 = vadd.f32 %v1930_v18, %v1918_v2  ;;  %v2298_v37 = vadd.f32 %v2290_v31, %v2285_v27  ;;  %v6941_v18 = vld [vmem:[#allocation8 + $0x184] sm:$0xf]  ;;  %v5793_v27 = vld [vmem:[#allocation8 + $0x170] sm:$0xf0] }
 0x134   :  { %v6901_v33 = vld [vmem:[#allocation8 + $0x44] sm:$0xf] }
 0x135   :  { %3080 = vmatpush.bf16.msra.mxu0 %v5696_v61  ;;  %3093 = vmatpush.bf16.msra.mxu1 %v5824_v0  ;;  %v1944_v25 = vadd.f32 %v1943_v21, %v1931_v7  ;;  %v2302_v61 = vmax.f32 %v2298_v37, 0.0  ;;  %v5860_v0 = vor.u32 %v6953_v32, %v5857_v57  ;;  %v6905_v21 = vld [vmem:[#allocation8 + $0x64] sm:$0xf]  ;;  %v5633_v37 = vld [vmem:[#allocation8 + $0x30] sm:$0xf0] }
 0x136   :  { %v5668_v29 = vor.u32 %v6905_v21, %v5665_v23  ;;  %v5636_v32 = vor.u32 %v6897_v30, %v5633_v37  ;;  %v6893_v57 = vld [vmem:[#allocation8 + $0x4] sm:$0xf] }
 0x137   :  { %v2163_v35 = vrot.slane %v1944_v25, 4 }
 0x139   :  { %3081 = vmatpush.bf16.msra.mxu0 %v5680_v36  ;;  %3094 = vmatpush.bf16.msra.mxu1 %v5808_v59  ;;  %v2164_v42 = vadd.f32 %v2163_v35, %v1944_v25  ;;  %v1945_v55 = vpop.f32.mrf.mxu3  ;;  %v7641_v36 = vpack.c.bf16 %v2302_v61, %v2302_v61  ;;  %v6945_v59 = vld [vmem:[#allocation8 + $0x1a4] sm:$0xf]  ;;  %v5796_v35 = vor.u32 %v6937_v3, %v5793_v27  ;;  %v5687_v27 = vld [vmem:[#allocation8 + $0x88] sm:$0xf] }
 0x13a   :  { %v1932_v50 = vpop.f32.mrf.mxu2  ;;  %v5828_v17 = vor.u32 %v6945_v59, %v5825_v11  ;;  %v6929_v55 = vld [vmem:[#allocation8 + $0x124] sm:$0xf]  ;;  %v5719_v59 = vld [vmem:[#allocation8 + $0xc8] sm:$0xf]  ;;  %v6920_v11 = vld [vmem:[#allocation8 + $0xd4] sm:$0xf0] }
 0x13b   :  { %v2165_v54 = vrot.slane %v2164_v42, 2  ;;  %v5764_v61 = vor.u32 %v6929_v55, %v5761_v56  ;;  %v2291_v55 = vperm.slane %v7638_v22, 1  ;;  %v5903_v56 = vld [vmem:[#allocation8 + $0x240] sm:$0xf] }
 0x13d   :  { %3082 = vmatpush.bf16.msra.mxu0 %v5664_v58  ;;  %3095 = vmatpush.bf16.msra.mxu1 %v5792_v20  ;;  %v2166_v60 = vadd.f32 %v2165_v54, %v2164_v42  ;;  %v6909_v58 = vld [vmem:[#allocation8 + $0x84] sm:$0xf]  ;;  %v5777_v42 = vld [vmem:[#allocation8 + $0x150] sm:$0xf0] }
 0x13e   :  { %v5684_v20 = vor.u32 %v6909_v58, %v5681_v14  ;;  %v5720_v14 = vor.u32 %v6920_v11, %v5719_v59  ;;  %v5847_v11 = vld [vmem:[#allocation8 + $0x1c8] sm:$0xf] }
 0x13f   :  { %v2167_v53 = vrot.slane %v2166_v60, 1 }
 0x141   :  { %3083 = vmatpush.bf16.msra.mxu0 %v5648_v26  ;;  %3096 = vmatpush.bf16.msra.mxu1 %v5776_v34  ;;  %v2168_v45 = vadd.f32 %v2167_v53, %v2166_v60  ;;  %v5649_v34 = vld [vmem:[#allocation8 + $0x50] sm:$0xf0]  ;;  %v6987_v53 = vld [vmem:[#allocation8 + $0x2ec] sm:$0xf0] }
 0x142   :  { %v5652_v46 = vor.u32 %v6901_v33, %v5649_v34  ;;  %v5617_v60 = vld [vmem:[#allocation8 + $0x10] sm:$0xf0] }
 0x143   :  { %v2189_v41 = vmul.f32 %v7597_v48, %v2168_v45 }
 0x145   :  { %3084 = vmatpush.bf16.msra.mxu0 %v5632_v43  ;;  %3097 = vmatpush.bf16.msra.mxu1 %v5760_v51  ;;  %v7645_v13 = vsub.f32 %v1944_v25, %v2189_v41  ;;  %v5812_v25 = vor.u32 %v6941_v18, %v5809_v19  ;;  %v5780_v51 = vor.u32 %v6933_v39, %v5777_v42  ;;  %v6979_v18 = vld [vmem:[#allocation8 + $0x2ac] sm:$0xf0] }
 0x146   :  { %v6971_v39 = vld [vmem:[#allocation8 + $0x26c] sm:$0xf0] }
 0x147   :  { %v2197_v2 = vmul.f32 %v7645_v13, %v7645_v13 }
 0x149   :  { %3085 = vmatpush.bf16.msra.mxu0 %v5616_v47  ;;  %3098 = vmatpush.bf16.msra.mxu1 %v5744_v62  ;;  %v2206_v15 = vrot.slane %v2197_v2, 4  ;;  %v1956_v24 = vpop.f32.mrf.mxu0  ;;  %v1969_v26 = vpop.f32.mrf.mxu1  ;;  %v5735_v47 = vld [vmem:[#allocation8 + $0xe8] sm:$0xf]  ;;  %v5983_v62 = vld [vmem:[#allocation8 + $0x2e0] sm:$0xf] }
 0x14a   :  { %v5984_v4 = vor.u32 %v6987_v53, %v5983_v62  ;;  %v5736_v41 = vor.u32 %v6924_v63, %v5735_v47  ;;  %v5863_v62 = vld [vmem:[#allocation8 + $0x1e8] sm:$0xf] }
 0x14b   :  { %v2207_v7 = vadd.f32 %v2206_v15, %v2197_v2  ;;  %v1970_v2 = vadd.f32 %v1969_v26, %v1956_v24  ;;  %v5703_v15 = vld [vmem:[#allocation8 + $0xa8] sm:$0xf]  ;;  %v5935_v24 = vld [vmem:[#allocation8 + $0x280] sm:$0xf]  ;;  %v6975_v26 = vld [vmem:[#allocation8 + $0x28c] sm:$0xf0] }
 0x14c   :  { %3086 = vmatmul.bf16.vlgmr.msra.gmra.mxu0 %v7641_v36  ;;  %3104 = vmatpush.bf16.msra.mxu2 %v5984_v4  ;;  %v6963_v4 = vld [vmem:[#allocation8 + $0x22c] sm:$0xf0] }
 0x14d   :  { %3130 = vmatpush.bf16.msrb.mxu0 %v5732_v12  ;;  %3143 = vmatpush.bf16.msrb.mxu1 %v5860_v0  ;;  %v2208_v28 = vrot.slane %v2207_v7, 2  ;;  %v6925_v0 = vld [vmem:[#allocation8 + $0x104] sm:$0xf] }
 0x14e   :  { %v5748_v6 = vor.u32 %v6925_v0, %v5745_v1  ;;  %v5887_v1 = vld [vmem:[#allocation8 + $0x220] sm:$0xf] }
 0x14f   :  { %v2209_v31 = vadd.f32 %v2208_v28, %v2207_v7  ;;  %v6912_v28 = vld [vmem:[#allocation8 + $0x94] sm:$0xf0] }
 0x150   :  { %v5688_v34 = vor.u32 %v6912_v28, %v5687_v27 }
 0x151   :  { %3131 = vmatpush.bf16.msrb.mxu0 %v5716_v5  ;;  %3144 = vmatpush.bf16.msrb.mxu1 %v5844_v9  ;;  %v2210_v43 = vrot.slane %v2209_v31, 1  ;;  %v7649_v44 = vpop.f32.mrf.mxu3  ;;  %v1958_v50 = vpop.f32.mrf.mxu0  ;;  %v5620_v5 = vor.u32 %v6893_v57, %v5617_v60  ;;  %v6983_v9 = vld [vmem:[#allocation8 + $0x2cc] sm:$0xf0]  ;;  %v5655_v57 = vld [vmem:[#allocation8 + $0x48] sm:$0xf] }
 0x152   :  { %v1982_v38 = vpop.f32.mrf.mxu2  ;;  %v1971_v54 = vpop.f32.mrf.mxu1  ;;  %v6904_v60 = vld [vmem:[#allocation8 + $0x54] sm:$0xf0] }
 0x153   :  { %v2211_v49 = vadd.f32 %v2210_v43, %v2209_v31  ;;  %v1983_v23 = vadd.f32 %v1982_v38, %v1970_v2  ;;  %v5671_v38 = vld [vmem:[#allocation8 + $0x68] sm:$0xf]  ;;  %v6908_v43 = vld [vmem:[#allocation8 + $0x74] sm:$0xf0] }
 0x154   :  { %v5672_v54 = vor.u32 %v6908_v43, %v5671_v38  ;;  %v5969_v38 = vld [vmem:[#allocation8 + $0x2d0] sm:$0xf0] }
 0x155   :  { %3132 = vmatpush.bf16.msrb.mxu0 %v5700_v52  ;;  %3145 = vmatpush.bf16.msrb.mxu1 %v5828_v17  ;;  %v2225_v16 = vmul.f32 %v2211_v49, %v7597_v48  ;;  %v5968_v52 = vor.u32 %v6983_v9, %v5967_v8  ;;  %v5951_v17 = vld [vmem:[#allocation8 + $0x2a0] sm:$0xf]  ;;  %v1996_v33 = vadd.f32 %v7649_v44, %v1983_v23  ;;  %v2278_v49 = vperm.slane %v7631_v10, 1 }
 0x156   :  { %v5952_v7 = vor.u32 %v6979_v18, %v5951_v17  ;;  %v5871_v18 = vld [vmem:[#allocation8 + $0x200] sm:$0xf] }
 0x157   :  { %v2229_v12 = vadd.f32 1e-05, %v2225_v16  ;;  %3105 = vmatpush.bf16.msra.mxu2 %v5968_v52  ;;  %v6967_v16 = vld [vmem:[#allocation8 + $0x24c] sm:$0xf0]  ;;  %v6952_v52 = vld [vmem:[#allocation8 + $0x1d4] sm:$0xf0] }
 0x158   :  { %v5904_v47 = vor.u32 %v6967_v16, %v5903_v56  ;;  %v5953_v56 = vld [vmem:[#allocation8 + $0x2b0] sm:$0xf0] }
 0x159   :  { %3133 = vmatpush.bf16.msrb.mxu0 %v5684_v20  ;;  %3146 = vmatpush.bf16.msrb.mxu1 %v5812_v25  ;;  %7166 = vrsqrt.f32 %v2229_v12  ;;  %v1997_v45 = vpop.f32.mrf.mxu3  ;;  %v6916_v20 = vld [vmem:[#allocation8 + $0xb4] sm:$0xf0]  ;;  %vm2248_vm5 = vweird.f32 %v2229_v12 }
 0x15a   :  { %v1984_v40 = vpop.f32.mrf.mxu2  ;;  %v5704_v25 = vor.u32 %v6916_v20, %v5703_v15  ;;  %v5639_v45 = vld [vmem:[#allocation8 + $0x28] sm:$0xf]  ;;  %v6896_v20 = vld [vmem:[#allocation8 + $0x14] sm:$0xf0] }
 0x15b   :  { %3106 = vmatpush.bf16.msra.mxu2 %v5952_v7  ;;  %v5656_v40 = vor.u32 %v6904_v60, %v5655_v57  ;;  %v5623_v15 = vld [vmem:[#allocation8 + $0x8] sm:$0xf]  ;;  %v5705_v57 = vld [vmem:[#allocation8 + $0xb8] sm:$0xf0] }
 0x15d   :  { %3134 = vmatpush.bf16.msrb.mxu0 %v5668_v29  ;;  %3147 = vmatpush.bf16.msrb.mxu1 %v5796_v35  ;;  %v5936_v29 = vor.u32 %v6975_v26, %v5935_v24  ;;  %v5919_v35 = vld [vmem:[#allocation8 + $0x260] sm:$0xf]  ;;  %v5737_v24 = vld [vmem:[#allocation8 + $0xf8] sm:$0xf0]  ;;  %v5985_v26 = vld [vmem:[#allocation8 + $0x2f0] sm:$0xf0] }
 0x15f   :  { %v7167_v58 = vpop.eup %7166  ;;  %3107 = vmatpush.bf16.msra.mxu2 %v5936_v29 }
 0x160   :  { %v2243_v19 = vmul.f32 %v7167_v58, %v2229_v12  ;;  %vm2249_vm4 = vweird.f32 %v7167_v58 }
 0x161   :  { %3135 = vmatpush.bf16.msrb.mxu0 %v5652_v46  ;;  %3148 = vmatpush.bf16.msrb.mxu1 %v5780_v51  ;;  %v5920_v46 = vor.u32 %v6971_v39, %v5919_v35  ;;  %vm2250_vm6 = vmor %vm2248_vm5, %vm2249_vm4 }
 0x162   :  { %v2244_v21 = vmul.f32 %v7167_v58, %v2243_v19  ;;  %v6959_v19 = vld [vmem:[#allocation8 + $0x20c] sm:$0xf0] }
 0x163   :  { %3108 = vmatpush.bf16.msra.mxu2 %v5920_v46  ;;  %v5872_v7 = vor.u32 %v6959_v19, %v5871_v18  ;;  %v6918_v46 = vld [vmem:[#allocation8 + $0xcc] sm:$0xf] }
 0x164   :  { %v2245_v3 = vmul.f32 0.5, %v2244_v21  ;;  %v6985_v21 = vld [vmem:[#allocation8 + $0x2e4] sm:$0xf] }
 0x165   :  { %3136 = vmatpush.bf16.msrb.mxu0 %v5636_v32  ;;  %3149 = vmatpush.bf16.msrb.mxu1 %v5764_v61  ;;  %v5988_v28 = vor.u32 %v6985_v21, %v5985_v26  ;;  %v6902_v26 = vld [vmem:[#allocation8 + $0x4c] sm:$0xf] }
 0x166   :  { %v2246_v31 = vsub.f32 1.5, %v2245_v3  ;;  %v5848_v3 = vor.u32 %v6952_v52, %v5847_v11  ;;  %v5921_v11 = vld [vmem:[#allocation8 + $0x270] sm:$0xf0] }
 0x167   :  { %3109 = vmatpush.bf16.msra.mxu2 %v5904_v47 }
 0x168   :  { %v2247_v42 = vmul.f32 %v7167_v58, %v2246_v31  ;;  %v5624_v31 = vor.u32 %v6896_v20, %v5623_v15  ;;  %v5767_v15 = vld [vmem:[#allocation8 + $0x128] sm:$0xf]  ;;  %v6932_v20 = vld [vmem:[#allocation8 + $0x134] sm:$0xf0] }
 0x169   :  { %3137 = vmatpush.bf16.msrb.mxu0 %v5620_v5  ;;  %3150 = vmatpush.bf16.msrb.mxu1 %v5748_v6  ;;  %v2008_v30 = vpop.f32.mrf.mxu0  ;;  %v2021_v51 = vpop.f32.mrf.mxu1  ;;  %v6900_v5 = vld [vmem:[#allocation8 + $0x34] sm:$0xf0] }
 0x16a   :  { %v2251_v37 = vsel %vm2250_vm6, %v7167_v58, %v2247_v42  ;;  %v2009_v50 = vadd.f32 %v2008_v30, %v1996_v33  ;;  %v5831_v33 = vld [vmem:[#allocation8 + $0x1a8] sm:$0xf]  ;;  %v6981_v42 = vld [vmem:[#allocation8 + $0x2c4] sm:$0xf] }
 0x16b   :  { %v2273_v44 = vmul.f32 %v2251_v37, %v7645_v13  ;;  %v6956_v13 = vld [vmem:[#allocation8 + $0x1f4] sm:$0xf0]  ;;  %v5972_v30 = vor.u32 %v6981_v42, %v5969_v38  ;;  %v5865_v42 = vld [vmem:[#allocation8 + $0x1f8] sm:$0xf0]  ;;  %v6961_v38 = vld [vmem:[#allocation8 + $0x224] sm:$0xf] }
 0x16c   :  { %3138 = vmatmul.bf16.vlgmr.msrb.gmra.mxu0 %v7641_v36  ;;  %v2022_v32 = vadd.f32 %v2021_v51, %v2009_v50  ;;  %v5864_v59 = vor.u32 %v6956_v13, %v5863_v62  ;;  %v5815_v51 = vld [vmem:[#allocation8 + $0x188] sm:$0xf]  ;;  %v6940_v62 = vld [vmem:[#allocation8 + $0x174] sm:$0xf0]  ;;  %v6910_v13 = vld [vmem:[#allocation8 + $0x8c] sm:$0xf] }
 0x16d   :  { %3182 = vmatpush.bf16.msra.mxu0 %v5736_v41  ;;  %v2286_v12 = vmul.f32 %v2278_v49, %v2273_v44  ;;  %v5888_v41 = vor.u32 %v6963_v4, %v5887_v1  ;;  %v5721_v49 = vld [vmem:[#allocation8 + $0xd8] sm:$0xf0]  ;;  %v6944_v44 = vld [vmem:[#allocation8 + $0x194] sm:$0xf0] }
 0x16e   :  { %v5816_v47 = vor.u32 %v6944_v44, %v5815_v51  ;;  %v5689_v1 = vld [vmem:[#allocation8 + $0x98] sm:$0xf0] }
 0x16f   :  { %v2299_v0 = vadd.f32 %v2291_v55, %v2286_v12  ;;  %3110 = vmatpush.bf16.msra.mxu2 %v5888_v41  ;;  %v6977_v55 = vld [vmem:[#allocation8 + $0x2a4] sm:$0xf]  ;;  %v5783_v41 = vld [vmem:[#allocation8 + $0x148] sm:$0xf] }
 0x170   :  { %v5956_v60 = vor.u32 %v6977_v55, %v5953_v56  ;;  %v6894_v56 = vld [vmem:[#allocation8 + $0xc] sm:$0xf] }
 0x171   :  { %3183 = vmatpush.bf16.msra.mxu0 %v5720_v14  ;;  %v2047_v63 = vpop.f32.mrf.mxu3  ;;  %v2303_v8 = vmax.f32 %v2299_v0, 0.0  ;;  %v2010_v9 = vpop.f32.mrf.mxu0  ;;  %v5640_v14 = vor.u32 %v6900_v5, %v5639_v45 }
 0x172   :  { %v2034_v61 = vpop.f32.mrf.mxu2  ;;  %v2023_v2 = vpop.f32.mrf.mxu1  ;;  %v5692_v9 = vor.u32 %v6910_v13, %v5689_v1 }
 0x173   :  { %v2035_v53 = vadd.f32 %v2034_v61, %v2022_v32  ;;  %v7660_v17 = vpack.c.bf16 %v2303_v8, %v2303_v8  ;;  %3111 = vmatpush.bf16.msra.mxu2 %v5872_v7  ;;  %v6914_v32 = vld [vmem:[#allocation8 + $0xac] sm:$0xf]  ;;  %v5799_v61 = vld [vmem:[#allocation8 + $0x168] sm:$0xf]  ;;  %v6936_v8 = vld [vmem:[#allocation8 + $0x154] sm:$0xf0] }
 0x174   :  { %v5800_v45 = vor.u32 %v6940_v62, %v5799_v61  ;;  %v5673_v2 = vld [vmem:[#allocation8 + $0x78] sm:$0xf0] }
 0x175   :  { %3184 = vmatpush.bf16.msra.mxu0 %v5704_v25  ;;  %v7657_v6 = vadd.f32 %v2047_v63, %v2035_v53  ;;  %3099 = vmatmul.bf16.vlgmr.msra.gmra.mxu1 %v7660_v17  ;;  %v6922_v25 = vld [vmem:[#allocation8 + $0xec] sm:$0xf]  ;;  %v5708_v53 = vor.u32 %v6914_v32, %v5705_v57  ;;  %v6973_v63 = vld [vmem:[#allocation8 + $0x284] sm:$0xf]  ;;  %v5625_v62 = vld [vmem:[#allocation8 + $0x18] sm:$0xf0] }
 0x176   :  { %3195 = vmatpush.bf16.msra.mxu1 %v5864_v59  ;;  %v5740_v39 = vor.u32 %v6922_v25, %v5737_v24  ;;  %v6969_v59 = vld [vmem:[#allocation8 + $0x264] sm:$0xf]  ;;  %v5905_v25 = vld [vmem:[#allocation8 + $0x250] sm:$0xf0] }
 0x177   :  { %v2169_v58 = vrot.slane %v7657_v6, 4  ;;  %3156 = vmatpush.bf16.msrb.mxu2 %v5988_v28  ;;  %v5768_v28 = vor.u32 %v6932_v20, %v5767_v15 }
 0x179   :  { %3185 = vmatpush.bf16.msra.mxu0 %v5688_v34  ;;  %v2170_v23 = vadd.f32 %v2169_v58, %v7657_v6  ;;  %v6948_v34 = vld [vmem:[#allocation8 + $0x1b4] sm:$0xf0]  ;;  %v2049_v35 = vpop.f32.mrf.mxu3  ;;  %v5924_v58 = vor.u32 %v6969_v59, %v5921_v11  ;;  %v6095_v59 = vld [vmem:[#allocation8 + $0x3c0] sm:$0xf]  ;;  %v7015_v11 = vld [vmem:[#allocation8 + $0x3cc] sm:$0xf0] }
 0x17a   :  { %v2036_v27 = vpop.f32.mrf.mxu2  ;;  %3196 = vmatpush.bf16.msra.mxu1 %v5848_v3  ;;  %v5832_v37 = vor.u32 %v6948_v34, %v5831_v33  ;;  %v5657_v3 = vld [vmem:[#allocation8 + $0x58] sm:$0xf0]  ;;  %v6928_v33 = vld [vmem:[#allocation8 + $0x114] sm:$0xf0]  ;;  %v6954_v34 = vld [vmem:[#allocation8 + $0x1ec] sm:$0xf] }
 0x17b   :  { %v2171_v29 = vrot.slane %v2170_v23, 2  ;;  %3157 = vmatpush.bf16.msrb.mxu2 %v5972_v30  ;;  %v5660_v35 = vor.u32 %v6902_v26, %v5657_v3  ;;  %v6898_v30 = vld [vmem:[#allocation8 + $0x2c] sm:$0xf]  ;;  %v5868_v55 = vor.u32 %v6954_v34, %v5865_v42  ;;  %v5801_v26 = vld [vmem:[#allocation8 + $0x178] sm:$0xf0] }
 0x17c   :  { %v6063_v3 = vld [vmem:[#allocation8 + $0x380] sm:$0xf]  ;;  %v5785_v42 = vld [vmem:[#allocation8 + $0x158] sm:$0xf0] }
 0x17d   :  { %3186 = vmatpush.bf16.msra.mxu0 %v5672_v54  ;;  %v2172_v43 = vadd.f32 %v2171_v29, %v2170_v23  ;;  %v5724_v54 = vor.u32 %v6918_v46, %v5721_v49  ;;  %v6965_v23 = vld [vmem:[#allocation8 + $0x244] sm:$0xf] }
 0x17e   :  { %3197 = vmatpush.bf16.msra.mxu1 %v5832_v37  ;;  %v5908_v27 = vor.u32 %v6965_v23, %v5905_v25  ;;  %v5641_v37 = vld [vmem:[#allocation8 + $0x38] sm:$0xf0] }
 0x17f   :  { %v2173_v50 = vrot.slane %v2172_v43, 1  ;;  %3158 = vmatpush.bf16.msrb.mxu2 %v5956_v60  ;;  %v5644_v32 = vor.u32 %v6898_v30, %v5641_v37  ;;  %v5849_v60 = vld [vmem:[#allocation8 + $0x1d8] sm:$0xf0] }
 0x181   :  { %3187 = vmatpush.bf16.msra.mxu0 %v5656_v40  ;;  %v2174_v16 = vadd.f32 %v2173_v50, %v2172_v43  ;;  %v5937_v40 = vld [vmem:[#allocation8 + $0x290] sm:$0xf0] }
 0x182   :  { %v5940_v4 = vor.u32 %v6973_v63, %v5937_v40  ;;  %3198 = vmatpush.bf16.msra.mxu1 %v5816_v47  ;;  %v5889_v43 = vld [vmem:[#allocation8 + $0x230] sm:$0xf0]  ;;  %v6957_v47 = vld [vmem:[#allocation8 + $0x204] sm:$0xf]  ;;  %v6111_v63 = vld [vmem:[#allocation8 + $0x3e0] sm:$0xf] }
 0x183   :  { %v2190_v12 = vmul.f32 %v7597_v48, %v2174_v16  ;;  %v5892_v50 = vor.u32 %v6961_v38, %v5889_v43  ;;  %v6950_v16 = vld [vmem:[#allocation8 + $0x1cc] sm:$0xf]  ;;  %v7019_v40 = vld [vmem:[#allocation8 + $0x3ec] sm:$0xf0] }
 0x184   :  { %3159 = vmatpush.bf16.msrb.mxu2 %v5940_v4  ;;  %v6112_v13 = vor.u32 %v7019_v40, %v6111_v63  ;;  %v5852_v4 = vor.u32 %v6950_v16, %v5849_v60  ;;  %v2292_v60 = vperm.slane %v7638_v22, 2  ;;  %v6995_v63 = vld [vmem:[#allocation8 + $0x32c] sm:$0xf0] }
 0x185   :  { %3188 = vmatpush.bf16.msra.mxu0 %v5640_v14  ;;  %v7667_v0 = vsub.f32 %v7657_v6, %v2190_v12  ;;  %3151 = vmatmul.bf16.vlgmr.msrb.gmra.mxu1 %v7660_v17  ;;  %v6906_v6 = vld [vmem:[#allocation8 + $0x6c] sm:$0xf]  ;;  %v5784_v14 = vor.u32 %v6936_v8, %v5783_v41  ;;  %v5873_v12 = vld [vmem:[#allocation8 + $0x210] sm:$0xf0]  ;;  %v5833_v8 = vld [vmem:[#allocation8 + $0x1b8] sm:$0xf0] }
 0x186   :  { %3199 = vmatpush.bf16.msra.mxu1 %v5800_v45  ;;  %v5676_v7 = vor.u32 %v6906_v6, %v5673_v2  ;;  %v5628_v45 = vor.u32 %v6894_v56, %v5625_v62  ;;  %v6946_v41 = vld [vmem:[#allocation8 + $0x1ac] sm:$0xf]  ;;  %3117 = vmatpush.bf16.msra.mxu3 %v6112_v13  ;;  %v6999_v56 = vld [vmem:[#allocation8 + $0x34c] sm:$0xf0] }
 0x187   :  { %v2198_v5 = vmul.f32 %v7667_v0, %v7667_v0  ;;  %v5836_v6 = vor.u32 %v6946_v41, %v5833_v8  ;;  %v6942_v2 = vld [vmem:[#allocation8 + $0x18c] sm:$0xf]  ;;  %v6988_v41 = vld [vmem:[#allocation8 + $0x2f4] sm:$0xf0] }
 0x188   :  { %3160 = vmatpush.bf16.msrb.mxu2 %v5924_v58  ;;  %v5817_v58 = vld [vmem:[#allocation8 + $0x198] sm:$0xf0] }
 0x189   :  { %3189 = vmatpush.bf16.msra.mxu0 %v5624_v31  ;;  %v2212_v52 = vrot.slane %v2198_v5, 4  ;;  %v7672_v19 = vpop.f32.mrf.mxu0  ;;  %v7674_v21 = vpop.f32.mrf.mxu1  ;;  %v5751_v31 = vld [vmem:[#allocation8 + $0x108] sm:$0xf]  ;;  %v5820_v23 = vor.u32 %v6942_v2, %v5817_v58  ;;  %v7017_v58 = vld [vmem:[#allocation8 + $0x3e4] sm:$0xf] }
 0x18a   :  { %3200 = vmatpush.bf16.msra.mxu1 %v5784_v14  ;;  %v5752_v51 = vor.u32 %v6928_v33, %v5751_v31  ;;  %v6079_v14 = vld [vmem:[#allocation8 + $0x3a0] sm:$0xf] }
 0x18b   :  { %v2213_v18 = vadd.f32 %v2212_v52, %v2198_v5  ;;  %v6096_v52 = vor.u32 %v7015_v11, %v6095_v59  ;;  %v5999_v59 = vld [vmem:[#allocation8 + $0x300] sm:$0xf]  ;;  %v6991_v11 = vld [vmem:[#allocation8 + $0x30c] sm:$0xf0] }
 0x18c   :  { %3190 = vmatmul.bf16.vlgmr.msra.gmra.mxu0 %v7641_v36  ;;  %3161 = vmatpush.bf16.msrb.mxu2 %v5908_v27  ;;  %v7007_v27 = vld [vmem:[#allocation8 + $0x38c] sm:$0xf0]  ;;  %v6000_v2 = vor.u32 %v6991_v11, %v5999_v59  ;;  %v5993_v59 = vld [vmem:[#allocation8 + $0x2f8] sm:$0xf0]  ;;  %v6989_v11 = vld [vmem:[#allocation8 + $0x304] sm:$0xf] }
 0x18d   :  { %3234 = vmatpush.bf16.msrb.mxu0 %v5740_v39  ;;  %v2214_v24 = vrot.slane %v2213_v18, 2  ;;  %3118 = vmatpush.bf16.msra.mxu3 %v6096_v52 }
 0x18e   :  { %3201 = vmatpush.bf16.msra.mxu1 %v5768_v28 }
 0x18f   :  { %v2215_v29 = vadd.f32 %v2214_v24, %v2213_v18  ;;  %v7011_v18 = vld [vmem:[#allocation8 + $0x3ac] sm:$0xf0]  ;;  %v6938_v24 = vld [vmem:[#allocation8 + $0x16c] sm:$0xf] }
 0x190   :  { %3162 = vmatpush.bf16.msrb.mxu2 %v5892_v50  ;;  %v6080_v15 = vor.u32 %v7011_v18, %v6079_v14  ;;  %v5804_v33 = vor.u32 %v6938_v24, %v5801_v26  ;;  %v7013_v26 = vld [vmem:[#allocation8 + $0x3c4] sm:$0xf] }
 0x191   :  { %3235 = vmatpush.bf16.msrb.mxu0 %v5724_v54  ;;  %v2216_v46 = vrot.slane %v2215_v29, 1  ;;  %v7678_v49 = vpop.f32.mrf.mxu3  ;;  %v2062_v54 = vpop.f32.mrf.mxu0 }
 0x192   :  { %v7676_v39 = vpop.f32.mrf.mxu2  ;;  %v2075_v57 = vpop.f32.mrf.mxu1  ;;  %3202 = vmatpush.bf16.msra.mxu1 %v5752_v51  ;;  %3119 = vmatpush.bf16.msra.mxu3 %v6080_v15  ;;  %v5769_v51 = vld [vmem:[#allocation8 + $0x138] sm:$0xf0]  ;;  %v6984_v15 = vld [vmem:[#allocation8 + $0x2d4] sm:$0xf0] }
 0x193   :  { %v2217_v44 = vadd.f32 %v2216_v46, %v2215_v29  ;;  %v6064_v29 = vor.u32 %v7007_v27, %v6063_v3  ;;  %v6097_v3 = vld [vmem:[#allocation8 + $0x3d0] sm:$0xf0] }
 0x195   :  { %3236 = vmatpush.bf16.msrb.mxu0 %v5708_v53  ;;  %v2226_v61 = vmul.f32 %v2217_v44, %v7597_v48  ;;  %v5876_v53 = vor.u32 %v6957_v47, %v5873_v12  ;;  %3203 = vmatmul.bf16.vlgmr.msra.gmra.mxu1 %v7660_v17  ;;  %v2279_v44 = vperm.slane %v7631_v10, 2  ;;  %v6926_v47 = vld [vmem:[#allocation8 + $0x10c] sm:$0xf]  ;;  %v5753_v12 = vld [vmem:[#allocation8 + $0x118] sm:$0xf0] }
 0x196   :  { %3247 = vmatpush.bf16.msrb.mxu1 %v5868_v55  ;;  %3120 = vmatpush.bf16.msra.mxu3 %v6064_v29  ;;  %v6031_v55 = vld [vmem:[#allocation8 + $0x340] sm:$0xf]  ;;  %v5959_v29 = vld [vmem:[#allocation8 + $0x2a8] sm:$0xf] }
 0x197   :  { %v2230_v1 = vadd.f32 1e-05, %v2226_v61  ;;  %3163 = vmatpush.bf16.msrb.mxu2 %v5876_v53  ;;  %v6015_v53 = vld [vmem:[#allocation8 + $0x320] sm:$0xf] }
 0x198   :  { %v6016_v40 = vor.u32 %v6995_v63, %v6015_v53  ;;  %v6033_v53 = vld [vmem:[#allocation8 + $0x350] sm:$0xf0] }
 0x199   :  { %3237 = vmatpush.bf16.msrb.mxu0 %v5692_v9  ;;  %7168 = vrsqrt.f32 %v2230_v1  ;;  %v2101_v9 = vpop.f32.mrf.mxu3  ;;  %vm2258_vm8 = vweird.f32 %v2230_v1 }
 0x19a   :  { %v2088_v5 = vpop.f32.mrf.mxu2  ;;  %3248 = vmatpush.bf16.msrb.mxu1 %v5852_v4 }
 0x19d   :  { %3238 = vmatpush.bf16.msrb.mxu0 %v5676_v7  ;;  %v2074_v7 = vadd.f32 %v7674_v21, %v7672_v19  ;;  %v6047_v19 = vld [vmem:[#allocation8 + $0x360] sm:$0xf] }
 0x19e   :  { %3249 = vmatpush.bf16.msrb.mxu1 %v5836_v6  ;;  %v5975_v6 = vld [vmem:[#allocation8 + $0x2c8] sm:$0xf] }
 0x19f   :  { %v7169_v20 = vpop.eup %7168  ;;  %v2087_v31 = vadd.f32 %v7676_v39, %v2074_v7  ;;  %v6930_v39 = vld [vmem:[#allocation8 + $0x12c] sm:$0xf]  ;;  %v5976_v24 = vor.u32 %v6984_v15, %v5975_v6 }
 0x1a0   :  { %v2253_v25 = vmul.f32 %v7169_v20, %v2230_v1  ;;  %vm2259_vm7 = vweird.f32 %v7169_v20 }
 0x1a1   :  { %3239 = vmatpush.bf16.msrb.mxu0 %v5660_v35  ;;  %v6934_v35 = vld [vmem:[#allocation8 + $0x14c] sm:$0xf]  ;;  %v2100_v43 = vadd.f32 %v7678_v49, %v2087_v31  ;;  %vm2260_vm9 = vmor %vm2258_vm8, %vm2259_vm7  ;;  %v5772_v49 = vor.u32 %v6930_v39, %v5769_v51  ;;  %v6980_v31 = vld [vmem:[#allocation8 + $0x2b4] sm:$0xf0] }
 0x1a2   :  { %v2254_v28 = vmul.f32 %v7169_v20, %v2253_v25  ;;  %3250 = vmatpush.bf16.msrb.mxu1 %v5820_v23  ;;  %v5788_v30 = vor.u32 %v6934_v35, %v5785_v42  ;;  %v5960_v35 = vor.u32 %v6980_v31, %v5959_v29  ;;  %v7009_v42 = vld [vmem:[#allocation8 + $0x3a4] sm:$0xf]  ;;  %v5927_v39 = vld [vmem:[#allocation8 + $0x268] sm:$0xf]  ;;  %v6972_v51 = vld [vmem:[#allocation8 + $0x274] sm:$0xf0] }
 0x1a3   :  { %v6974_v29 = vld [vmem:[#allocation8 + $0x28c] sm:$0xf]  ;;  %v5945_v31 = vld [vmem:[#allocation8 + $0x298] sm:$0xf0] }
 0x1a4   :  { %v2255_v34 = vmul.f32 0.5, %v2254_v28 }
 0x1a5   :  { %3240 = vmatpush.bf16.msrb.mxu0 %v5644_v32  ;;  %v6032_v32 = vor.u32 %v6999_v56, %v6031_v55  ;;  %v5928_v55 = vor.u32 %v6972_v51, %v5927_v39  ;;  %v7001_v56 = vld [vmem:[#allocation8 + $0x364] sm:$0xf]  ;;  %v6962_v39 = vld [vmem:[#allocation8 + $0x22c] sm:$0xf]  ;;  %v5897_v51 = vld [vmem:[#allocation8 + $0x238] sm:$0xf0] }
 0x1a6   :  { %v2256_v21 = vsub.f32 1.5, %v2255_v34  ;;  %3251 = vmatpush.bf16.msrb.mxu1 %v5804_v33  ;;  %v6100_v33 = vor.u32 %v7013_v26, %v6097_v3  ;;  %v6978_v3 = vld [vmem:[#allocation8 + $0x2ac] sm:$0xf] }
 0x1a8   :  { %v2257_v37 = vmul.f32 %v7169_v20, %v2256_v21  ;;  %v5943_v21 = vld [vmem:[#allocation8 + $0x288] sm:$0xf] }
 0x1a9   :  { %3241 = vmatpush.bf16.msrb.mxu0 %v5628_v45  ;;  %v2112_v46 = vpop.f32.mrf.mxu0  ;;  %v2125_v50 = vpop.f32.mrf.mxu1  ;;  %v5756_v45 = vor.u32 %v6926_v47, %v5753_v12 }
 0x1aa   :  { %v2113_v54 = vadd.f32 %v2112_v46, %v2100_v43  ;;  %v2261_v16 = vsel %vm2260_vm9, %v7169_v20, %v2257_v37  ;;  %3252 = vmatpush.bf16.msrb.mxu1 %v5788_v30  ;;  %v6113_v20 = vld [vmem:[#allocation8 + $0x3f0] sm:$0xf0]  ;;  %v7005_v30 = vld [vmem:[#allocation8 + $0x384] sm:$0xf] }
 0x1ab   :  { %v2274_v57 = vmul.f32 %v2261_v16, %v7667_v0  ;;  %v5991_v0 = vld [vmem:[#allocation8 + $0x2e8] sm:$0xf]  ;;  %v6116_v7 = vor.u32 %v7017_v58, %v6113_v20  ;;  %v6065_v37 = vld [vmem:[#allocation8 + $0x390] sm:$0xf0] }
 0x1ac   :  { %3242 = vmatmul.bf16.vlgmr.msrb.gmra.mxu0 %v7641_v36  ;;  %v7003_v36 = vld [vmem:[#allocation8 + $0x36c] sm:$0xf0]  ;;  %v2126_v62 = vadd.f32 %v2125_v50, %v2113_v54  ;;  %v5992_v52 = vor.u32 %v6988_v41, %v5991_v0  ;;  %v6049_v16 = vld [vmem:[#allocation8 + $0x370] sm:$0xf0]  ;;  %v5879_v41 = vld [vmem:[#allocation8 + $0x208] sm:$0xf] }
 0x1ad   :  { %v6048_v38 = vor.u32 %v7003_v36, %v6047_v19  ;;  %v2287_v61 = vmul.f32 %v2279_v44, %v2274_v57  ;;  %v6081_v19 = vld [vmem:[#allocation8 + $0x3b0] sm:$0xf0]  ;;  %v6068_v44 = vor.u32 %v7005_v30, %v6065_v37  ;;  %v5911_v57 = vld [vmem:[#allocation8 + $0x248] sm:$0xf] }
 0x1ae   :  { %3253 = vmatpush.bf16.msrb.mxu1 %v5772_v49  ;;  %v6084_v43 = vor.u32 %v7009_v42, %v6081_v19  ;;  %v6968_v49 = vld [vmem:[#allocation8 + $0x254] sm:$0xf0]  ;;  %v6970_v42 = vld [vmem:[#allocation8 + $0x26c] sm:$0xf]  ;;  %v5929_v19 = vld [vmem:[#allocation8 + $0x278] sm:$0xf0] }
 0x1af   :  { %3121 = vmatpush.bf16.msra.mxu3 %v6048_v38  ;;  %v2300_v5 = vadd.f32 %v2292_v60, %v2287_v61  ;;  %v6976_v38 = vld [vmem:[#allocation8 + $0x294] sm:$0xf0]  ;;  %v6052_v60 = vor.u32 %v7001_v56, %v6049_v16  ;;  %v5912_v61 = vor.u32 %v6968_v49, %v5911_v57 }
 0x1b0   :  { %v5944_v46 = vor.u32 %v6976_v38, %v5943_v21  ;;  %v5932_v21 = vor.u32 %v6970_v42, %v5929_v19  ;;  %v7189_v57 = vld [vmem:[%s7897_s3] sm:$0xf] }
 0x1b1   :  { %v2138_v10 = vpop.f32.mrf.mxu2  ;;  %v2151_v1 = vpop.f32.mrf.mxu3  ;;  %v2304_v22 = vmax.f32 %v2300_v5, 0.0  ;;  %v6017_v5 = vld [vmem:[#allocation8 + $0x330] sm:$0xf0]  ;;  %v2293_v49 = vperm.slane %v7189_v57, 3  ;;  %v6105_v42 = vld [vmem:[#allocation8 + $0x3d8] sm:$0xf0] }
 0x1b2   :  { %v2139_v13 = vadd.f32 %v2138_v10, %v2126_v62  ;;  %v2114_v4 = vpop.f32.mrf.mxu0  ;;  %v2127_v8 = vpop.f32.mrf.mxu1  ;;  %3254 = vmatpush.bf16.msrb.mxu1 %v5756_v45  ;;  %v6997_v62 = vld [vmem:[#allocation8 + $0x344] sm:$0xf]  ;;  %v5895_v10 = vld [vmem:[#allocation8 + $0x228] sm:$0xf] }
 0x1b3   :  { %3122 = vmatpush.bf16.msra.mxu3 %v6032_v32  ;;  %v7690_v18 = vpack.c.bf16 %v2304_v22, %v2304_v22  ;;  %v6993_v45 = vld [vmem:[#allocation8 + $0x324] sm:$0xf]  ;;  %v6960_v8 = vld [vmem:[#allocation8 + $0x214] sm:$0xf0] }
 0x1b4   :  { %v2152_v9 = vadd.f32 %v2151_v1, %v2139_v13  ;;  %v6036_v13 = vor.u32 %v6997_v62, %v6033_v53  ;;  %v6020_v22 = vor.u32 %v6993_v45, %v6017_v5  ;;  %v5880_v58 = vor.u32 %v6960_v8, %v5879_v41  ;;  %v7016_v45 = vld [vmem:[#allocation8 + $0x3d4] sm:$0xf0] }
 0x1b5   :  { %3112 = vmatmul.bf16.vlgmr.msra.gmra.mxu2 %v7690_v18  ;;  %3255 = vmatmul.bf16.vlgmr.msrb.gmra.mxu1 %v7660_v17  ;;  %v7012_v41 = vld [vmem:[#allocation8 + $0x3b4] sm:$0xf0] }
 0x1b6   :  { %v2175_v14 = vrot.slane %v2152_v9, 4  ;;  %3208 = vmatpush.bf16.msra.mxu2 %v5992_v52  ;;  %v6001_v52 = vld [vmem:[#allocation8 + $0x310] sm:$0xf0] }
 0x1b7   :  { %3123 = vmatpush.bf16.msra.mxu3 %v6016_v40  ;;  %v6964_v40 = vld [vmem:[#allocation8 + $0x234] sm:$0xf0]  ;;  %v6004_v20 = vor.u32 %v6989_v11, %v6001_v52 }
 0x1b8   :  { %v2176_v23 = vadd.f32 %v2175_v14, %v2152_v9  ;;  %v5896_v4 = vor.u32 %v6964_v40, %v5895_v10  ;;  %v6119_v10 = vld [vmem:[#allocation8 + $0x3e8] sm:$0xf]  ;;  %v7020_v40 = vld [vmem:[#allocation8 + $0x3f4] sm:$0xf0] }
 0x1b9   :  { %v2140_v25 = vpop.f32.mrf.mxu2  ;;  %v2153_v28 = vpop.f32.mrf.mxu3  ;;  %v7008_v11 = vld [vmem:[#allocation8 + $0x394] sm:$0xf0] }
 0x1ba   :  { %v2177_v27 = vrot.slane %v2176_v23, 2  ;;  %3209 = vmatpush.bf16.msra.mxu2 %v5976_v24 }
 0x1bb   :  { %3124 = vmatpush.bf16.msra.mxu3 %v6000_v2 }
 0x1bc   :  { %v2178_v34 = vadd.f32 %v2177_v27, %v2176_v23  ;;  %v5977_v23 = vld [vmem:[#allocation8 + $0x2d8] sm:$0xf0] }
 0x1bd   :  { %v5961_v27 = vld [vmem:[#allocation8 + $0x2b8] sm:$0xf0] }
 0x1be   :  { %v2179_v36 = vrot.slane %v2178_v34, 1  ;;  %3210 = vmatpush.bf16.msra.mxu2 %v5960_v35  ;;  %v5964_v28 = vor.u32 %v6978_v3, %v5961_v27  ;;  %v6007_v27 = vld [vmem:[#allocation8 + $0x308] sm:$0xf] }
 0x1bf   :  { %3169 = vmatpush.bf16.msrb.mxu3 %v6116_v7  ;;  %v6982_v7 = vld [vmem:[#allocation8 + $0x2cc] sm:$0xf] }
 0x1c0   :  { %v2180_v17 = vadd.f32 %v2179_v36, %v2178_v34  ;;  %v5980_v26 = vor.u32 %v6982_v7, %v5977_v23  ;;  %v5948_v34 = vor.u32 %v6974_v29, %v5945_v31  ;;  %v6023_v23 = vld [vmem:[#allocation8 + $0x328] sm:$0xf]  ;;  %v7018_v29 = vld [vmem:[#allocation8 + $0x3ec] sm:$0xf]  ;;  %v6121_v31 = vld [vmem:[#allocation8 + $0x3f8] sm:$0xf0] }
 0x1c2   :  { %v2191_v50 = vmul.f32 %v7597_v48, %v2180_v17  ;;  %3211 = vmatpush.bf16.msra.mxu2 %v5944_v46  ;;  %v5913_v17 = vld [vmem:[#allocation8 + $0x258] sm:$0xf0] }
 0x1c3   :  { %3170 = vmatpush.bf16.msrb.mxu3 %v6100_v33 }
 0x1c4   :  { %v7695_v54 = vsub.f32 %v2152_v9, %v2191_v50  ;;  %v6986_v9 = vld [vmem:[#allocation8 + $0x2ec] sm:$0xf] }
 0x1c5   :  { %3164 = vmatmul.bf16.vlgmr.msrb.gmra.mxu2 %v7690_v18  ;;  %v5996_v15 = vor.u32 %v6986_v9, %v5993_v59  ;;  %v6071_v59 = vld [vmem:[#allocation8 + $0x388] sm:$0xf] }
 0x1c6   :  { %v2199_v32 = vmul.f32 %v7695_v54, %v7695_v54  ;;  %3212 = vmatpush.bf16.msra.mxu2 %v5928_v55  ;;  %v6072_v52 = vor.u32 %v7008_v11, %v6071_v59  ;;  %v6223_v59 = vld [vmem:[#allocation13 + $0xc0] sm:$0xf]  ;;  %v7047_v11 = vld [vmem:[#allocation13 + $0xcc] sm:$0xf0] }
 0x1c7   :  { %3171 = vmatpush.bf16.msrb.mxu3 %v6084_v43  ;;  %v6966_v43 = vld [vmem:[#allocation8 + $0x24c] sm:$0xf] }
 0x1c8   :  { %v2218_v47 = vrot.slane %v2199_v32, 4  ;;  %v5916_v37 = vor.u32 %v6966_v43, %v5913_v17  ;;  %v7006_v17 = vld [vmem:[#allocation8 + $0x38c] sm:$0xf] }
 0x1c9   :  { %v7699_v12 = vpop.f32.mrf.mxu0 }
 0x1ca   :  { %v2219_v63 = vadd.f32 %v2218_v47, %v2199_v32  ;;  %3213 = vmatpush.bf16.msra.mxu2 %v5912_v61  ;;  %v5900_v32 = vor.u32 %v6962_v39, %v5897_v51  ;;  %v5881_v47 = vld [vmem:[#allocation8 + $0x218] sm:$0xf0]  ;;  %v7002_v39 = vld [vmem:[#allocation8 + $0x36c] sm:$0xf] }
 0x1cb   :  { %3172 = vmatpush.bf16.msrb.mxu3 %v6068_v44  ;;  %v7188_v44 = vld [vmem:[#allocation7] sm:$0xf] }
 0x1cc   :  { %v2220_v1 = vrot.slane %v2219_v63, 2  ;;  %v2280_v55 = vperm.slane %v7188_v44, 3  ;;  %v6057_v51 = vld [vmem:[#allocation8 + $0x378] sm:$0xf0] }
 0x1cd   :  { %v6060_v44 = vor.u32 %v7002_v39, %v6057_v51  ;;  %v6319_v39 = vld [vmem:[#allocation13 + $0x180] sm:$0xf] }
 0x1ce   :  { %v2221_v0 = vadd.f32 %v2220_v1, %v2219_v63  ;;  %3214 = vmatpush.bf16.msra.mxu2 %v5896_v4  ;;  %v6120_v1 = vor.u32 %v7020_v40, %v6119_v10  ;;  %v6103_v4 = vld [vmem:[#allocation8 + $0x3c8] sm:$0xf] }
 0x1cf   :  { %3173 = vmatpush.bf16.msrb.mxu3 %v6052_v60  ;;  %v6958_v60 = vld [vmem:[#allocation8 + $0x20c] sm:$0xf]  ;;  %v6104_v5 = vor.u32 %v7016_v45, %v6103_v4 }
 0x1d0   :  { %v2222_v6 = vrot.slane %v2221_v0, 1  ;;  %v5884_v53 = vor.u32 %v6958_v60, %v5881_v47  ;;  %v6025_v60 = vld [vmem:[#allocation8 + $0x338] sm:$0xf0] }
 0x1d1   :  { %v3089_v2 = vpop.f32.mrf.mxu0 }
 0x1d2   :  { %v2223_v14 = vadd.f32 %v2222_v6, %v2221_v0  ;;  %3215 = vmatpush.bf16.msra.mxu2 %v5880_v58  ;;  %v6087_v0 = vld [vmem:[#allocation8 + $0x3a8] sm:$0xf]  ;;  %v7004_v2 = vld [vmem:[#allocation8 + $0x374] sm:$0xf0] }
 0x1d3   :  { %3174 = vmatpush.bf16.msrb.mxu3 %v6036_v13  ;;  %v6088_v8 = vor.u32 %v7012_v41, %v6087_v0  ;;  %v6055_v6 = vld [vmem:[#allocation8 + $0x368] sm:$0xf] }
 0x1d4   :  { %v2227_v25 = vmul.f32 %v2223_v14, %v7597_v48  ;;  %v6056_v58 = vor.u32 %v7004_v2, %v6055_v6  ;;  %v6239_v41 = vld [vmem:[#allocation13 + $0xe0] sm:$0xf]  ;;  %v7043_v2 = vld [vmem:[#allocation13 + $0xac] sm:$0xf0] }
 0x1d5   :  { %3216 = vmatmul.bf16.vlgmr.msra.gmra.mxu2 %v7690_v18 }
 0x1d6   :  { %v2231_v24 = vadd.f32 1e-05, %v2227_v25  ;;  %3260 = vmatpush.bf16.msrb.mxu2 %v5996_v15  ;;  %v6996_v25 = vld [vmem:[#allocation8 + $0x334] sm:$0xf0] }
 0x1d7   :  { %3175 = vmatpush.bf16.msrb.mxu3 %v6020_v22 }
 0x1d8   :  { %7170 = vrsqrt.f32 %v2231_v24  ;;  %vm2268_vm11 = vweird.f32 %v2231_v24 }
 0x1da   :  { %3261 = vmatpush.bf16.msrb.mxu2 %v5980_v26 }
 0x1db   :  { %3176 = vmatpush.bf16.msrb.mxu3 %v6004_v20  ;;  %v7000_v20 = vld [vmem:[#allocation8 + $0x354] sm:$0xf0] }
 0x1de   :  { %v7171_v33 = vpop.eup %7170  ;;  %3262 = vmatpush.bf16.msrb.mxu2 %v5964_v28  ;;  %v6992_v28 = vld [vmem:[#allocation8 + $0x314] sm:$0xf0] }
 0x1df   :  { %v2263_v35 = vmul.f32 %v7171_v33, %v2231_v24  ;;  %vm2269_vm10 = vweird.f32 %v7171_v33 }
 0x1e0   :  { %vm2270_vm12 = vmor %vm2268_vm11, %vm2269_vm10 }
 0x1e1   :  { %v2264_v36 = vmul.f32 %v7171_v33, %v2263_v35  ;;  %v7014_v35 = vld [vmem:[#allocation8 + $0x3cc] sm:$0xf] }
 0x1e2   :  { %3263 = vmatpush.bf16.msrb.mxu2 %v5948_v34  ;;  %v6124_v34 = vor.u32 %v7018_v29, %v6121_v31  ;;  %v7079_v31 = vld [vmem:[#allocation13 + $0x1cc] sm:$0xf0] }
 0x1e3   :  { %v2265_v38 = vmul.f32 0.5, %v2264_v36  ;;  %v6108_v36 = vor.u32 %v7014_v35, %v6105_v42  ;;  %v7027_v35 = vld [vmem:[#allocation13 + $0x2c] sm:$0xf0]  ;;  %v6335_v42 = vld [vmem:[#allocation13 + $0x1a0] sm:$0xf] }
 0x1e5   :  { %v2266_v46 = vsub.f32 1.5, %v2265_v38  ;;  %v6089_v38 = vld [vmem:[#allocation8 + $0x3b8] sm:$0xf0] }
 0x1e6   :  { %3264 = vmatpush.bf16.msrb.mxu2 %v5932_v21  ;;  %v7010_v21 = vld [vmem:[#allocation8 + $0x3ac] sm:$0xf] }
 0x1e7   :  { %v2267_v50 = vmul.f32 %v7171_v33, %v2266_v46  ;;  %v6092_v43 = vor.u32 %v7010_v21, %v6089_v38  ;;  %v6073_v46 = vld [vmem:[#allocation8 + $0x398] sm:$0xf0] }
 0x1e9   :  { %v3139_v30 = vpop.f32.mrf.mxu0  ;;  %v2271_v56 = vsel %vm2270_vm12, %v7171_v33, %v2267_v50  ;;  %v6008_v33 = vor.u32 %v6992_v28, %v6007_v27  ;;  %v6076_v50 = vor.u32 %v7006_v17, %v6073_v46  ;;  %v7031_v27 = vld [vmem:[#allocation13 + $0x4c] sm:$0xf0]  ;;  %v6351_v28 = vld [vmem:[#allocation13 + $0x1c0] sm:$0xf] }
 0x1ea   :  { %v2275_v16 = vmul.f32 %v2271_v56, %v7695_v54  ;;  %3265 = vmatpush.bf16.msrb.mxu2 %v5916_v37  ;;  %v6998_v56 = vld [vmem:[#allocation8 + $0x34c] sm:$0xf] }
 0x1ec   :  { %v2288_v61 = vmul.f32 %v2280_v55, %v2275_v16  ;;  %v6041_v16 = vld [vmem:[#allocation8 + $0x358] sm:$0xf0] }
 0x1ed   :  { %v6044_v57 = vor.u32 %v6998_v56, %v6041_v16  ;;  %v6241_v56 = vld [vmem:[#allocation13 + $0xf0] sm:$0xf0] }
 0x1ee   :  { %3266 = vmatpush.bf16.msrb.mxu2 %v5900_v32  ;;  %v2301_v63 = vadd.f32 %v2293_v49, %v2288_v61  ;;  %v6994_v49 = vld [vmem:[#allocation8 + $0x32c] sm:$0xf] }
 0x1ef   :  { %v6028_v47 = vor.u32 %v6994_v49, %v6025_v60  ;;  %v7067_v60 = vld [vmem:[#allocation13 + $0x16c] sm:$0xf0] }
 0x1f0   :  { %v2305_v13 = vmax.f32 %v2301_v63, 0.0 }
 0x1f1   :  { %v3141_v62 = vpop.f32.mrf.mxu0 }
 0x1f2   :  { %3267 = vmatpush.bf16.msrb.mxu2 %v5884_v53  ;;  %v7708_v54 = vpack.c.bf16 %v2305_v13, %v2305_v13  ;;  %v3100_v9 = vpop.f32.mrf.mxu1  ;;  %v6990_v62 = vld [vmem:[#allocation8 + $0x30c] sm:$0xf]  ;;  %v6009_v53 = vld [vmem:[#allocation8 + $0x318] sm:$0xf0] }
 0x1f3   :  { %v7713_v22 = vadd.f32 %v3100_v9, %v7699_v12  ;;  %v6024_v12 = vor.u32 %v6996_v25, %v6023_v23  ;;  %v6012_v63 = vor.u32 %v6990_v62, %v6009_v53  ;;  %v6367_v23 = vld [vmem:[#allocation13 + $0x1e0] sm:$0xf]  ;;  %v7115_v62 = vld [vmem:[#allocation13 + $0x2ec] sm:$0xf0]  ;;  %v7045_v53 = vld [vmem:[#allocation13 + $0xc4] sm:$0xf] }
 0x1f4   :  { %3125 = vmatmul.bf16.vlgmr.msra.gmra.mxu3 %v7708_v54 }
 0x1f5   :  { %3221 = vmatpush.bf16.msra.mxu3 %v6120_v1  ;;  %3268 = vmatmul.bf16.vlgmr.msrb.gmra.mxu2 %v7690_v18  ;;  %v6039_v18 = vld [vmem:[#allocation8 + $0x348] sm:$0xf] }
 0x1f6   :  { %v6040_v7 = vor.u32 %v7000_v20, %v6039_v18  ;;  %v6175_v20 = vld [vmem:[#allocation13 + $0x60] sm:$0xf] }
 0x1f9   :  { %3222 = vmatpush.bf16.msra.mxu3 %v6104_v5 }
 0x1fa   :  { %v3102_v14 = vpop.f32.mrf.mxu1 }
 0x1fb   :  { %v6191_v14 = vld [vmem:[#allocation13 + $0x80] sm:$0xf] }
 0x1fd   :  { %3223 = vmatpush.bf16.msra.mxu3 %v6088_v8  ;;  %v7051_v8 = vld [vmem:[#allocation13 + $0xec] sm:$0xf0] }
 0x1fe   :  { %v6240_v9 = vor.u32 %v7051_v8, %v6239_v41  ;;  %v6287_v8 = vld [vmem:[#allocation13 + $0x140] sm:$0xf] }
 0x200   :  { %4202 = vmatpush.bf16.msra.mxu0 %v6240_v9  ;;  %v7063_v9 = vld [vmem:[#allocation13 + $0x14c] sm:$0xf0] }
 0x201   :  { %3224 = vmatpush.bf16.msra.mxu3 %v6072_v52  ;;  %v6224_v52 = vor.u32 %v7047_v11, %v6223_v59  ;;  %v6479_v59 = vld [vmem:[#allocation13 + $0x2c0] sm:$0xf]  ;;  %v6288_v11 = vor.u32 %v7063_v9, %v6287_v8  ;;  %v6145_v8 = vld [vmem:[#allocation13 + $0x30] sm:$0xf0]  ;;  %v7073_v9 = vld [vmem:[#allocation13 + $0x1a4] sm:$0xf] }
 0x202   :  { %v3152_v24 = vpop.f32.mrf.mxu1 }
 0x203   :  { %v7716_v3 = vadd.f32 %v3152_v24, %v3139_v30 }
 0x204   :  { %3177 = vmatmul.bf16.vlgmr.msrb.gmra.mxu3 %v7708_v54  ;;  %4203 = vmatpush.bf16.msra.mxu0 %v6224_v52  ;;  %v7111_v52 = vld [vmem:[#allocation13 + $0x2cc] sm:$0xf0] }
 0x205   :  { %3225 = vmatpush.bf16.msra.mxu3 %v6056_v58 }
 0x209   :  { %v3191_v15 = vpop.f32.mrf.mxu0  ;;  %3226 = vmatpush.bf16.msra.mxu3 %v6040_v7  ;;  %v7035_v7 = vld [vmem:[#allocation13 + $0x6c] sm:$0xf0] }
 0x20a   :  { %v3154_v19 = vpop.f32.mrf.mxu1  ;;  %v6176_v25 = vor.u32 %v7035_v7, %v6175_v20  ;;  %v7059_v20 = vld [vmem:[#allocation13 + $0x12c] sm:$0xf0]  ;;  %v6463_v7 = vld [vmem:[#allocation13 + $0x2a0] sm:$0xf] }
 0x20d   :  { %3227 = vmatpush.bf16.msra.mxu3 %v6024_v12  ;;  %v7083_v12 = vld [vmem:[#allocation13 + $0x1ec] sm:$0xf0] }
 0x20e   :  { %v6368_v24 = vor.u32 %v7083_v12, %v6367_v23  ;;  %v7037_v12 = vld [vmem:[#allocation13 + $0x84] sm:$0xf] }
 0x210   :  { %4215 = vmatpush.bf16.msra.mxu1 %v6368_v24  ;;  %v6193_v24 = vld [vmem:[#allocation13 + $0x90] sm:$0xf0] }
 0x211   :  { %v3193_v26 = vpop.f32.mrf.mxu0  ;;  %3228 = vmatpush.bf16.msra.mxu3 %v6008_v33  ;;  %v6352_v33 = vor.u32 %v7079_v31, %v6351_v28 }
 0x212   :  { %v3204_v30 = vpop.f32.mrf.mxu1  ;;  %v6159_v26 = vld [vmem:[#allocation13 + $0x40] sm:$0xf] }
 0x213   :  { %v7719_v37 = vadd.f32 %v3204_v30, %v3191_v15  ;;  %v7039_v15 = vld [vmem:[#allocation13 + $0x8c] sm:$0xf0]  ;;  %v6160_v29 = vor.u32 %v7031_v27, %v6159_v26  ;;  %v6127_v30 = vld [vmem:[#allocation13] sm:$0xf] }
 0x214   :  { %3229 = vmatmul.bf16.vlgmr.msra.gmra.mxu3 %v7708_v54  ;;  %v6192_v18 = vor.u32 %v7039_v15, %v6191_v14  ;;  %4216 = vmatpush.bf16.msra.mxu1 %v6352_v33 }
 0x215   :  { %3273 = vmatpush.bf16.msrb.mxu3 %v6124_v34  ;;  %v6143_v34 = vld [vmem:[#allocation13 + $0x20] sm:$0xf] }
 0x216   :  { %v6144_v19 = vor.u32 %v7027_v35, %v6143_v34  ;;  %v6255_v35 = vld [vmem:[#allocation13 + $0x100] sm:$0xf] }
 0x219   :  { %3274 = vmatpush.bf16.msrb.mxu3 %v6108_v36  ;;  %v7075_v36 = vld [vmem:[#allocation13 + $0x1ac] sm:$0xf0] }
 0x21a   :  { %v3206_v32 = vpop.f32.mrf.mxu1  ;;  %v6336_v38 = vor.u32 %v7075_v36, %v6335_v42  ;;  %v7055_v42 = vld [vmem:[#allocation13 + $0x10c] sm:$0xf0] }
 0x21b   :  { %v6256_v36 = vor.u32 %v7055_v42, %v6255_v35 }
 0x21c   :  { %4217 = vmatpush.bf16.msra.mxu1 %v6336_v38  ;;  %v7033_v38 = vld [vmem:[#allocation13 + $0x64] sm:$0xf] }
 0x21d   :  { %3275 = vmatpush.bf16.msrb.mxu3 %v6092_v43 }
 0x221   :  { %3276 = vmatpush.bf16.msrb.mxu3 %v6076_v50  ;;  %v7023_v50 = vld [vmem:[#allocation13 + $0xc] sm:$0xf0] }
 0x222   :  { %v6128_v51 = vor.u32 %v7023_v50, %v6127_v30  ;;  %v7081_v50 = vld [vmem:[#allocation13 + $0x1e4] sm:$0xf] }
 0x225   :  { %3277 = vmatpush.bf16.msrb.mxu3 %v6060_v44  ;;  %v7071_v44 = vld [vmem:[#allocation13 + $0x18c] sm:$0xf0] }
 0x226   :  { %v6320_v32 = vor.u32 %v7071_v44, %v6319_v39  ;;  %v6369_v39 = vld [vmem:[#allocation13 + $0x1f0] sm:$0xf0] }
 0x228   :  { %4218 = vmatpush.bf16.msra.mxu1 %v6320_v32 }
 0x229   :  { %v3243_v55 = vpop.f32.mrf.mxu0  ;;  %3278 = vmatpush.bf16.msrb.mxu3 %v6044_v57 }
 0x22d   :  { %3279 = vmatpush.bf16.msrb.mxu3 %v6028_v47  ;;  %v6495_v47 = vld [vmem:[#allocation13 + $0x2e0] sm:$0xf] }
 0x231   :  { %v3245_v61 = vpop.f32.mrf.mxu0  ;;  %3280 = vmatpush.bf16.msrb.mxu3 %v6012_v63  ;;  %v6225_v63 = vld [vmem:[#allocation13 + $0xd0] sm:$0xf0] }
 0x232   :  { %v3256_v10 = vpop.f32.mrf.mxu1 }
 0x233   :  { %v7722_v40 = vadd.f32 %v3256_v10, %v3243_v55  ;;  %v7049_v55 = vld [vmem:[#allocation13 + $0xe4] sm:$0xf] }
 0x234   :  { %3281 = vmatmul.bf16.vlgmr.msrb.gmra.mxu3 %v7708_v54  ;;  %v6207_v54 = vld [vmem:[#allocation13 + $0xa0] sm:$0xf]  ;;  %v6244_v57 = vor.u32 %v7049_v55, %v6241_v56 }
 0x235   :  { %v6208_v58 = vor.u32 %v7043_v2, %v6207_v54  ;;  %v6209_v54 = vld [vmem:[#allocation13 + $0xb0] sm:$0xf0]  ;;  %v6431_v56 = vld [vmem:[#allocation13 + $0x260] sm:$0xf] }
 0x237   :  { %4204 = vmatpush.bf16.msra.mxu0 %v6208_v58  ;;  %v6480_v58 = vor.u32 %v7111_v52, %v6479_v59 }
 0x238   :  { %v3113_v13 = vpop.f32.mrf.mxu2 }
 0x239   :  { %v3114_v21 = vadd.f32 %v3113_v13, %v7713_v22  ;;  %v6303_v22 = vld [vmem:[#allocation13 + $0x160] sm:$0xf]  ;;  %v6496_v13 = vor.u32 %v7115_v62, %v6495_v47  ;;  %v6353_v62 = vld [vmem:[#allocation13 + $0x1d0] sm:$0xf0] }
 0x23a   :  { %v3258_v1 = vpop.f32.mrf.mxu1  ;;  %v6304_v61 = vor.u32 %v7067_v60, %v6303_v22  ;;  %v7077_v22 = vld [vmem:[#allocation13 + $0x1c4] sm:$0xf] }
 0x23b   :  { %4205 = vmatpush.bf16.msra.mxu0 %v6192_v18  ;;  %v6228_v1 = vor.u32 %v7045_v53, %v6225_v63  ;;  %4228 = vmatpush.bf16.msra.mxu2 %v6496_v13  ;;  %v6271_v18 = vld [vmem:[#allocation13 + $0x120] sm:$0xf]  ;;  %v6356_v63 = vor.u32 %v7077_v22, %v6353_v62  ;;  %v7109_v22 = vld [vmem:[#allocation13 + $0x2c4] sm:$0xf]  ;;  %v6481_v62 = vld [vmem:[#allocation13 + $0x2d0] sm:$0xf0] }
 0x23c   :  { %4219 = vmatpush.bf16.msra.mxu1 %v6304_v61  ;;  %v6272_v23 = vor.u32 %v7059_v20, %v6271_v18  ;;  %v7021_v20 = vld [vmem:[#allocation13 + $0x4] sm:$0xf] }
 0x23f   :  { %4206 = vmatpush.bf16.msra.mxu0 %v6176_v25  ;;  %4229 = vmatpush.bf16.msra.mxu2 %v6480_v58  ;;  %v7107_v25 = vld [vmem:[#allocation13 + $0x2ac] sm:$0xf0] }
 0x240   :  { %v3115_v4 = vpop.f32.mrf.mxu2  ;;  %4220 = vmatpush.bf16.msra.mxu1 %v6288_v11  ;;  %v6464_v28 = vor.u32 %v7107_v25, %v6463_v7  ;;  %v6129_v7 = vld [vmem:[#allocation13 + $0x10] sm:$0xf0] }
 0x243   :  { %4207 = vmatpush.bf16.msra.mxu0 %v6160_v29  ;;  %v6196_v29 = vor.u32 %v7037_v12, %v6193_v24  ;;  %4230 = vmatpush.bf16.msra.mxu2 %v6464_v28 }
 0x244   :  { %4221 = vmatpush.bf16.msra.mxu1 %v6272_v23  ;;  %v7069_v23 = vld [vmem:[#allocation13 + $0x184] sm:$0xf] }
 0x247   :  { %4208 = vmatpush.bf16.msra.mxu0 %v6144_v19  ;;  %v6447_v19 = vld [vmem:[#allocation13 + $0x280] sm:$0xf] }
 0x248   :  { %v7724_v45 = vpop.f32.mrf.mxu2  ;;  %4222 = vmatpush.bf16.msra.mxu1 %v6256_v36  ;;  %v7087_v36 = vld [vmem:[#allocation13 + $0x20c] sm:$0xf0] }
 0x249   :  { %v3166_v26 = vadd.f32 %v7724_v45, %v7716_v3 }
 0x24b   :  { %4209 = vmatpush.bf16.msra.mxu0 %v6128_v51  ;;  %v6372_v51 = vor.u32 %v7081_v50, %v6369_v39  ;;  %v6497_v39 = vld [vmem:[#allocation13 + $0x2f0] sm:$0xf0] }
 0x24d   :  { %4267 = vmatpush.bf16.msrb.mxu1 %v6372_v51 }
 0x24f   :  { %4254 = vmatpush.bf16.msrb.mxu0 %v6244_v57  ;;  %v7029_v57 = vld [vmem:[#allocation13 + $0x44] sm:$0xf] }
 0x250   :  { %v3167_v5 = vpop.f32.mrf.mxu2 }
 0x251   :  { %4268 = vmatpush.bf16.msrb.mxu1 %v6356_v63  ;;  %v6484_v63 = vor.u32 %v7109_v22, %v6481_v62  ;;  %v6417_v22 = vld [vmem:[#allocation13 + $0x250] sm:$0xf0] }
 0x253   :  { %4255 = vmatpush.bf16.msrb.mxu0 %v6228_v1  ;;  %v6415_v1 = vld [vmem:[#allocation13 + $0x240] sm:$0xf] }
 0x258   :  { %v7726_v0 = vpop.f32.mrf.mxu2 }
 0x259   :  { %v3218_v25 = vadd.f32 %v7726_v0, %v7719_v37  ;;  %v7147_v0 = vld [vmem:[#allocation13 + $0x3ec] sm:$0xf0] }
 0x260   :  { %v3219_v6 = vpop.f32.mrf.mxu2 }
 0x261   :  { %v7041_v6 = vld [vmem:[#allocation13 + $0xa4] sm:$0xf] }
 0x262   :  { %v6212_v14 = vor.u32 %v7041_v6, %v6209_v54  ;;  %v6337_v6 = vld [vmem:[#allocation13 + $0x1b0] sm:$0xf0] }
 0x263   :  { %v6340_v54 = vor.u32 %v7073_v9, %v6337_v6  ;;  %v7105_v9 = vld [vmem:[#allocation13 + $0x2a4] sm:$0xf] }
 0x264   :  { %4256 = vmatpush.bf16.msrb.mxu0 %v6212_v14  ;;  %v6399_v14 = vld [vmem:[#allocation13 + $0x220] sm:$0xf] }
 0x265   :  { %4269 = vmatpush.bf16.msrb.mxu1 %v6340_v54  ;;  %v6465_v54 = vld [vmem:[#allocation13 + $0x2b0] sm:$0xf0] }
 0x268   :  { %4257 = vmatpush.bf16.msrb.mxu0 %v6196_v29 }
 0x277   :  { %v3126_v43 = vpop.f32.mrf.mxu3 }
 0x278   :  { %v3127_v17 = vadd.f32 %v3126_v43, %v3114_v21  ;;  %v7729_v46 = vpop.f32.mrf.mxu2  ;;  %v7103_v21 = vld [vmem:[#allocation13 + $0x28c] sm:$0xf0]  ;;  %v6177_v43 = vld [vmem:[#allocation13 + $0x70] sm:$0xf0] }
 0x279   :  { %v6448_v30 = vor.u32 %v7103_v21, %v6447_v19  ;;  %v6383_v19 = vld [vmem:[#allocation13 + $0x200] sm:$0xf] }
 0x27a   :  { %v3288_v16 = vrot.slane %v3127_v17, 4  ;;  %v6623_v21 = vld [vmem:[#allocation13 + $0x3e0] sm:$0xf]  ;;  %v6384_v37 = vor.u32 %v7087_v36, %v6383_v19  ;;  %v7760_v36 = vld [vmem:[#allocation10] sm:$0xf] }
 0x27b   :  { %4231 = vmatpush.bf16.msra.mxu2 %v6448_v30  ;;  %v6624_v30 = vor.u32 %v7147_v0, %v6623_v21  ;;  %v6559_v0 = vld [vmem:[#allocation13 + $0x360] sm:$0xf] }
 0x27c   :  { %v3289_v49 = vadd.f32 %v3288_v16, %v3127_v17  ;;  %v7099_v16 = vld [vmem:[#allocation13 + $0x26c] sm:$0xf0] }
 0x27d   :  { %v6432_v32 = vor.u32 %v7099_v16, %v6431_v56  ;;  %4241 = vmatpush.bf16.msra.mxu3 %v6624_v30  ;;  %v7143_v56 = vld [vmem:[#allocation13 + $0x3cc] sm:$0xf0]  ;;  %v6433_v30 = vld [vmem:[#allocation13 + $0x270] sm:$0xf0] }
 0x27e   :  { %v3290_v10 = vrot.slane %v3289_v49, 2 }
 0x27f   :  { %v3128_v4 = vpop.f32.mrf.mxu3  ;;  %4232 = vmatpush.bf16.msra.mxu2 %v6432_v32 }
 0x280   :  { %v3291_v5 = vadd.f32 %v3290_v10, %v3289_v49  ;;  %v3271_v41 = vpop.f32.mrf.mxu2  ;;  %v6161_v49 = vld [vmem:[#allocation13 + $0x50] sm:$0xf0]  ;;  %v7095_v4 = vld [vmem:[#allocation13 + $0x24c] sm:$0xf0] }
 0x281   :  { %v6164_v61 = vor.u32 %v7029_v57, %v6161_v49  ;;  %v7025_v41 = vld [vmem:[#allocation13 + $0x24] sm:$0xf]  ;;  %v6289_v49 = vld [vmem:[#allocation13 + $0x150] sm:$0xf0] }
 0x282   :  { %v3292_v2 = vrot.slane %v3291_v5, 1  ;;  %v6148_v52 = vor.u32 %v7025_v41, %v6145_v8  ;;  %v7061_v57 = vld [vmem:[#allocation13 + $0x144] sm:$0xf]  ;;  %v6273_v8 = vld [vmem:[#allocation13 + $0x130] sm:$0xf0] }
 0x283   :  { %v7057_v41 = vld [vmem:[#allocation13 + $0x124] sm:$0xf] }
 0x284   :  { %v3293_v15 = vadd.f32 %v3292_v2, %v3291_v5  ;;  %v6416_v5 = vor.u32 %v7095_v4, %v6415_v1  ;;  %v6591_v1 = vld [vmem:[#allocation13 + $0x3a0] sm:$0xf]  ;;  %v7139_v4 = vld [vmem:[#allocation13 + $0x3ac] sm:$0xf0]  ;;  %v6276_v6 = vor.u32 %v7057_v41, %v6273_v8 }
 0x286   :  { %v3312_v27 = vmul.f32 %v3293_v15, %v7597_v48  ;;  %4233 = vmatpush.bf16.msra.mxu2 %v6416_v5  ;;  %v7091_v15 = vld [vmem:[#allocation13 + $0x22c] sm:$0xf0]  ;;  %v6592_v5 = vor.u32 %v7139_v4, %v6591_v1  ;;  %v7089_v1 = vld [vmem:[#allocation13 + $0x224] sm:$0xf]  ;;  %v6401_v4 = vld [vmem:[#allocation13 + $0x230] sm:$0xf0] }
 0x287   :  { %v3178_v31 = vpop.f32.mrf.mxu3  ;;  %v6400_v18 = vor.u32 %v7091_v15, %v6399_v14 }
 0x288   :  { %v7734_v33 = vsub.f32 %v3127_v17, %v3312_v27  ;;  %v7736_v34 = vadd.f32 %v3178_v31, %v3166_v26  ;;  %v6180_v17 = vor.u32 %v7033_v38, %v6177_v43  ;;  %v6132_v26 = vor.u32 %v7021_v20, %v6129_v7  ;;  %v6321_v27 = vld [vmem:[#allocation13 + $0x190] sm:$0xf0]  ;;  %v7065_v38 = vld [vmem:[#allocation13 + $0x164] sm:$0xf]  ;;  %v7135_v20 = vld [vmem:[#allocation13 + $0x38c] sm:$0xf0] }
 0x289   :  { %v6324_v29 = vor.u32 %v7069_v23, %v6321_v27  ;;  %v6305_v43 = vld [vmem:[#allocation13 + $0x170] sm:$0xf0] }
 0x28a   :  { %v3320_v3 = vmul.f32 %v7734_v33, %v7734_v33  ;;  %v3294_v45 = vrot.slane %v7736_v34, 4  ;;  %4258 = vmatpush.bf16.msrb.mxu0 %v6180_v17  ;;  %4234 = vmatpush.bf16.msra.mxu2 %v6400_v18  ;;  %v7113_v17 = vld [vmem:[#allocation13 + $0x2e4] sm:$0xf]  ;;  %v6308_v50 = vor.u32 %v7065_v38, %v6305_v43  ;;  %v6575_v18 = vld [vmem:[#allocation13 + $0x380] sm:$0xf] }
 0x28b   :  { %4270 = vmatpush.bf16.msrb.mxu1 %v6324_v29  ;;  %v6500_v16 = vor.u32 %v7113_v17, %v6497_v39  ;;  %v6576_v23 = vor.u32 %v7135_v20, %v6575_v18  ;;  %v6449_v29 = vld [vmem:[#allocation13 + $0x290] sm:$0xf0]  ;;  %v7131_v38 = vld [vmem:[#allocation13 + $0x36c] sm:$0xf0]  ;;  %v7770_v39 = vld [vmem:[#allocation11] sm:$0xf] }
 0x28c   :  { %v3324_v44 = vrot.slane %v3320_v3, 4  ;;  %v3295_v55 = vadd.f32 %v3294_v45, %v7736_v34 }
 0x28e   :  { %v3325_v60 = vadd.f32 %v3324_v44, %v3320_v3  ;;  %v3296_v47 = vrot.slane %v3295_v55, 2  ;;  %4259 = vmatpush.bf16.msrb.mxu0 %v6164_v61  ;;  %4235 = vmatpush.bf16.msra.mxu2 %v6384_v37  ;;  %v6292_v61 = vor.u32 %v7061_v57, %v6289_v49  ;;  %v7093_v49 = vld [vmem:[#allocation13 + $0x244] sm:$0xf] }
 0x28f   :  { %v3180_v53 = vpop.f32.mrf.mxu3  ;;  %4271 = vmatpush.bf16.msrb.mxu1 %v6308_v50 }
 0x290   :  { %v3326_v10 = vrot.slane %v3325_v60, 2  ;;  %v3297_v13 = vadd.f32 %v3296_v47, %v3295_v55  ;;  %v6607_v55 = vld [vmem:[#allocation13 + $0x3c0] sm:$0xf] }
 0x291   :  { %v6608_v32 = vor.u32 %v7143_v56, %v6607_v55  ;;  %v6543_v56 = vld [vmem:[#allocation13 + $0x340] sm:$0xf] }
 0x292   :  { %v3327_v59 = vadd.f32 %v3326_v10, %v3325_v60  ;;  %v3298_v11 = vrot.slane %v3297_v13, 1  ;;  %4260 = vmatpush.bf16.msrb.mxu0 %v6148_v52  ;;  %4280 = vmatpush.bf16.msrb.mxu2 %v6500_v16  ;;  %v7127_v16 = vld [vmem:[#allocation13 + $0x34c] sm:$0xf0] }
 0x293   :  { %4242 = vmatpush.bf16.msra.mxu3 %v6608_v32  ;;  %4272 = vmatpush.bf16.msrb.mxu1 %v6292_v61  ;;  %v6544_v57 = vor.u32 %v7127_v16, %v6543_v56  ;;  %v6420_v61 = vor.u32 %v7093_v49, %v6417_v22  ;;  %v3402_v56 = vperm.slane %v7760_v36, 1 }
 0x294   :  { %v3328_v2 = vrot.slane %v3327_v59, 1  ;;  %v3299_v58 = vadd.f32 %v3298_v11, %v3297_v13 }
 0x296   :  { %v3329_v12 = vadd.f32 %v3328_v2, %v3327_v59  ;;  %v3313_v24 = vmul.f32 %v3299_v58, %v7597_v48  ;;  %4261 = vmatpush.bf16.msrb.mxu0 %v6132_v26  ;;  %4281 = vmatpush.bf16.msrb.mxu2 %v6484_v63  ;;  %v6468_v58 = vor.u32 %v7105_v9, %v6465_v54  ;;  %v6527_v63 = vld [vmem:[#allocation13 + $0x320] sm:$0xf]  ;;  %v6247_v9 = vld [vmem:[#allocation13 + $0xe8] sm:$0xf] }
 0x297   :  { %v3230_v28 = vpop.f32.mrf.mxu3  ;;  %4243 = vmatpush.bf16.msra.mxu3 %v6592_v5  ;;  %4273 = vmatpush.bf16.msrb.mxu1 %v6276_v6 }
 0x298   :  { %v3348_v31 = vmul.f32 %v3329_v12, %v7597_v48  ;;  %v7747_v35 = vsub.f32 %v7736_v34, %v3313_v24  ;;  %v7749_v42 = vadd.f32 %v3230_v28, %v3218_v25  ;;  %v7053_v25 = vld [vmem:[#allocation13 + $0x104] sm:$0xf]  ;;  %v6257_v12 = vld [vmem:[#allocation13 + $0x110] sm:$0xf0] }
 0x299   :  { %v7101_v24 = vld [vmem:[#allocation13 + $0x284] sm:$0xf]  ;;  %v6260_v28 = vor.u32 %v7053_v25, %v6257_v12  ;;  %v6385_v25 = vld [vmem:[#allocation13 + $0x210] sm:$0xf0] }
 0x29a   :  { %v7751_v3 = vadd.f32 1e-05, %v3348_v31  ;;  %v3321_v45 = vmul.f32 %v7747_v35, %v7747_v35  ;;  %v3300_v34 = vrot.slane %v7749_v42, 4  ;;  %4282 = vmatpush.bf16.msrb.mxu2 %v6468_v58  ;;  %v6452_v19 = vor.u32 %v7101_v24, %v6449_v29  ;;  %v6511_v58 = vld [vmem:[#allocation13 + $0x300] sm:$0xf] }
 0x29b   :  { %4244 = vmatpush.bf16.msra.mxu3 %v6576_v23  ;;  %4274 = vmatpush.bf16.msrb.mxu1 %v6260_v28  ;;  %v7085_v23 = vld [vmem:[#allocation13 + $0x204] sm:$0xf]  ;;  %v6231_v24 = vld [vmem:[#allocation13 + $0xc8] sm:$0xf] }
 0x29c   :  { %7172 = vrsqrt.f32 %v7751_v3  ;;  %v3330_v51 = vrot.slane %v3321_v45, 4  ;;  %v3301_v44 = vadd.f32 %v3300_v34, %v7749_v42  ;;  %v7097_v34 = vld [vmem:[#allocation13 + $0x264] sm:$0xf]  ;;  %vm3362_vm14 = vweird.f32 %v7751_v3 }
 0x29e   :  { %v3331_v60 = vadd.f32 %v3330_v51, %v3321_v45  ;;  %v3302_v47 = vrot.slane %v3301_v44, 2  ;;  %v6560_v45 = vor.u32 %v7131_v38, %v6559_v0  ;;  %4283 = vmatpush.bf16.msrb.mxu2 %v6452_v19 }
 0x29f   :  { %v3232_v53 = vpop.f32.mrf.mxu3 }
 0x2a0   :  { %v3332_v10 = vrot.slane %v3331_v60, 2  ;;  %v3303_v13 = vadd.f32 %v3302_v47, %v3301_v44  ;;  %v3401_v44 = vperm.slane %v7760_v36, 0  ;;  %4245 = vmatpush.bf16.msra.mxu3 %v6560_v45  ;;  %v3414_v47 = vperm.slane %v7770_v39, 0  ;;  %v6215_v45 = vld [vmem:[#allocation13 + $0xa8] sm:$0xf] }
 0x2a2   :  { %v7173_v59 = vpop.eup %7172  ;;  %v3333_v11 = vadd.f32 %v3332_v10, %v3331_v60  ;;  %v3304_v52 = vrot.slane %v3303_v13, 1  ;;  %v7123_v10 = vld [vmem:[#allocation13 + $0x32c] sm:$0xf0] }
 0x2a3   :  { %v3357_v2 = vmul.f32 %v7173_v59, %v7751_v3  ;;  %vm3363_vm13 = vweird.f32 %v7173_v59 }
 0x2a4   :  { %v3334_v14 = vrot.slane %v3333_v11, 1  ;;  %v3305_v15 = vadd.f32 %v3304_v52, %v3303_v13  ;;  %vm3364_vm15 = vmor %vm3362_vm14, %vm3363_vm13  ;;  %4246 = vmatpush.bf16.msra.mxu3 %v6544_v57  ;;  %v6528_v13 = vor.u32 %v7123_v10, %v6527_v63  ;;  %v6404_v52 = vor.u32 %v7089_v1, %v6401_v4  ;;  %v6183_v1 = vld [vmem:[#allocation13 + $0x68] sm:$0xf]  ;;  %v7036_v4 = vld [vmem:[#allocation13 + $0x74] sm:$0xf0] }
 0x2a5   :  { %v3358_v7 = vmul.f32 %v7173_v59, %v3357_v2  ;;  %v3415_v57 = vperm.slane %v7770_v39, 1 }
 0x2a6   :  { %v3335_v26 = vadd.f32 %v3334_v14, %v3333_v11  ;;  %v3314_v27 = vmul.f32 %v3305_v15, %v7597_v48  ;;  %v7119_v14 = vld [vmem:[#allocation13 + $0x30c] sm:$0xf0] }
 0x2a7   :  { %v3359_v31 = vmul.f32 0.5, %v3358_v7  ;;  %v6512_v7 = vor.u32 %v7119_v14, %v6511_v58 }
 0x2a8   :  { %v3349_v21 = vmul.f32 %v3335_v26, %v7597_v48  ;;  %v7764_v37 = vsub.f32 %v7749_v42, %v3314_v27  ;;  %v6436_v42 = vor.u32 %v7097_v34, %v6433_v30  ;;  %4247 = vmatpush.bf16.msra.mxu3 %v6528_v13  ;;  %v7048_v26 = vld [vmem:[#allocation13 + $0xd4] sm:$0xf0]  ;;  %v6625_v27 = vld [vmem:[#allocation13 + $0x3f0] sm:$0xf0] }
 0x2a9   :  { %v3360_v43 = vsub.f32 1.5, %v3359_v31  ;;  %v6388_v31 = vor.u32 %v7085_v23, %v6385_v25  ;;  %v7044_v34 = vld [vmem:[#allocation13 + $0xb4] sm:$0xf0] }
 0x2aa   :  { %v7766_v17 = vadd.f32 1e-05, %v3349_v21  ;;  %v3322_v50 = vmul.f32 %v7764_v37, %v7764_v37  ;;  %4284 = vmatpush.bf16.msrb.mxu2 %v6436_v42  ;;  %v6216_v22 = vor.u32 %v7044_v34, %v6215_v45  ;;  %v7080_v25 = vld [vmem:[#allocation13 + $0x1d4] sm:$0xf0]  ;;  %v6545_v45 = vld [vmem:[#allocation13 + $0x350] sm:$0xf0] }
 0x2ab   :  { %v3361_v51 = vmul.f32 %v7173_v59, %v3360_v43  ;;  %v6232_v43 = vor.u32 %v7048_v26, %v6231_v24 }
 0x2ac   :  { %7174 = vrsqrt.f32 %v7766_v17  ;;  %v3336_v55 = vrot.slane %v3322_v50, 4  ;;  %4248 = vmatpush.bf16.msra.mxu3 %v6512_v7  ;;  %vm3372_vm1 = vweird.f32 %v7766_v17  ;;  %v6359_v7 = vld [vmem:[#allocation13 + $0x1c8] sm:$0xf] }
 0x2ad   :  { %v3365_v32 = vsel %vm3364_vm15, %v7173_v59, %v3361_v51  ;;  %v7052_v59 = vld [vmem:[#allocation13 + $0xf4] sm:$0xf0]  ;;  %v6609_v51 = vld [vmem:[#allocation13 + $0x3d0] sm:$0xf0] }
 0x2ae   :  { %v3396_v60 = vmul.f32 %v3365_v32, %v7734_v33  ;;  %v3337_v3 = vadd.f32 %v3336_v55, %v3322_v50  ;;  %v3270_v33 = vadd.f32 %v7729_v46, %v7722_v40  ;;  %4285 = vmatpush.bf16.msrb.mxu2 %v6420_v61  ;;  %v6248_v20 = vor.u32 %v7052_v59, %v6247_v9  ;;  %v7145_v40 = vld [vmem:[#allocation13 + $0x3e4] sm:$0xf]  ;;  %v6593_v61 = vld [vmem:[#allocation13 + $0x3b0] sm:$0xf0]  ;;  %v7084_v9 = vld [vmem:[#allocation13 + $0x1f4] sm:$0xf0] }
 0x2af   :  { %v6628_v19 = vor.u32 %v7145_v40, %v6625_v27  ;;  %v7141_v50 = vld [vmem:[#allocation13 + $0x3c4] sm:$0xf] }
 0x2b0   :  { %v3409_v62 = vmul.f32 %v3401_v44, %v3396_v60  ;;  %v3338_v53 = vrot.slane %v3337_v3, 2  ;;  %v6612_v55 = vor.u32 %v7141_v50, %v6609_v51  ;;  %v6199_v60 = vld [vmem:[#allocation13 + $0x88] sm:$0xf]  ;;  %v7133_v59 = vld [vmem:[#allocation13 + $0x384] sm:$0xf] }
 0x2b1   :  { %4293 = vmatpush.bf16.msrb.mxu3 %v6628_v19  ;;  %v7129_v40 = vld [vmem:[#allocation13 + $0x364] sm:$0xf]  ;;  %v6360_v19 = vor.u32 %v7080_v25, %v6359_v7 }
 0x2b2   :  { %v7777_v5 = vpop.eup %7174  ;;  %v3422_v41 = vadd.f32 %v3414_v47, %v3409_v62  ;;  %v3339_v8 = vadd.f32 %v3338_v53, %v3337_v3  ;;  %4286 = vmatpush.bf16.msrb.mxu2 %v6404_v52  ;;  %v7040_v47 = vld [vmem:[#allocation13 + $0x94] sm:$0xf0]  ;;  %v7137_v3 = vld [vmem:[#allocation13 + $0x3a4] sm:$0xf] }
 0x2b3   :  { %v3367_v11 = vmul.f32 %v7777_v5, %v7766_v17  ;;  %vm3373_vm0 = vweird.f32 %v7777_v5  ;;  %v6596_v53 = vor.u32 %v7137_v3, %v6593_v61  ;;  %v6200_v13 = vor.u32 %v7040_v47, %v6199_v60  ;;  %v6529_v47 = vld [vmem:[#allocation13 + $0x330] sm:$0xf0]  ;;  %v7050_v61 = vld [vmem:[#allocation13 + $0xec] sm:$0xf] }
 0x2b4   :  { %v3426_v6 = vmax.f32 %v3422_v41, 0.0  ;;  %v3340_v54 = vrot.slane %v3339_v8, 1  ;;  %vm3374_vm2 = vmor %vm3372_vm1, %vm3373_vm0 }
 0x2b5   :  { %v3368_v15 = vmul.f32 %v7777_v5, %v3367_v11  ;;  %4294 = vmatpush.bf16.msrb.mxu3 %v6612_v55  ;;  %v6135_v55 = vld [vmem:[#allocation13 + $0x8] sm:$0xf] }
 0x2b6   :  { %v3341_v46 = vadd.f32 %v3340_v54, %v3339_v8  ;;  %v7786_v12 = vpack.c.bf16 %v3426_v6, %v3426_v6  ;;  %4287 = vmatpush.bf16.msrb.mxu2 %v6388_v31  ;;  %v6184_v54 = vor.u32 %v7036_v4, %v6183_v1  ;;  %v6311_v4 = vld [vmem:[#allocation13 + $0x168] sm:$0xf] }
 0x2b7   :  { %v3282_v2 = vpop.f32.mrf.mxu3  ;;  %v3369_v28 = vmul.f32 0.5, %v3368_v15  ;;  %v6167_v15 = vld [vmem:[#allocation13 + $0x48] sm:$0xf] }
 0x2b8   :  { %v7784_v18 = vadd.f32 %v3282_v2, %v3270_v33  ;;  %v3350_v21 = vmul.f32 %v3341_v46, %v7597_v48  ;;  %4210 = vmatmul.bf16.vlgmr.msra.gmra.mxu0 %v7786_v12  ;;  %v6577_v33 = vld [vmem:[#allocation13 + $0x390] sm:$0xf0] }
 0x2b9   :  { %v3370_v0 = vsub.f32 1.5, %v3369_v28  ;;  %4306 = vmatpush.bf16.msra.mxu0 %v6248_v20  ;;  %4295 = vmatpush.bf16.msrb.mxu3 %v6596_v53  ;;  %v6580_v52 = vor.u32 %v7133_v59, %v6577_v33  ;;  %v7032_v20 = vld [vmem:[#allocation13 + $0x54] sm:$0xf0]  ;;  %v6561_v46 = vld [vmem:[#allocation13 + $0x370] sm:$0xf0] }
 0x2ba   :  { %v3306_v29 = vrot.slane %v7784_v18, 4  ;;  %v7793_v30 = vadd.f32 1e-05, %v3350_v21  ;;  %v6564_v27 = vor.u32 %v7129_v40, %v6561_v46  ;;  %v6151_v28 = vld [vmem:[#allocation13 + $0x28] sm:$0xf] }
 0x2bb   :  { %v3371_v42 = vmul.f32 %v7777_v5, %v3370_v0  ;;  %v7028_v21 = vld [vmem:[#allocation13 + $0x34] sm:$0xf0]  ;;  %v6343_v0 = vld [vmem:[#allocation13 + $0x1a8] sm:$0xf]  ;;  %v6513_v59 = vld [vmem:[#allocation13 + $0x310] sm:$0xf0] }
 0x2bc   :  { %v3307_v38 = vadd.f32 %v3306_v29, %v7784_v18  ;;  %7176 = vrsqrt.f32 %v7793_v30  ;;  %vm3382_vm4 = vweird.f32 %v7793_v30  ;;  %v7064_v40 = vld [vmem:[#allocation13 + $0x154] sm:$0xf0]  ;;  %v6487_v46 = vld [vmem:[#allocation13 + $0x2c8] sm:$0xf] }
 0x2bd   :  { %v3375_v32 = vsel %vm3374_vm2, %v7777_v5, %v3371_v42  ;;  %4307 = vmatpush.bf16.msra.mxu0 %v6232_v43  ;;  %v6375_v5 = vld [vmem:[#allocation13 + $0x1e8] sm:$0xf]  ;;  %4296 = vmatpush.bf16.msrb.mxu3 %v6580_v52  ;;  %v7125_v43 = vld [vmem:[#allocation13 + $0x344] sm:$0xf]  ;;  %v3403_v42 = vperm.slane %v7760_v36, 2 }
 0x2be   :  { %v3308_v44 = vrot.slane %v3307_v38, 2  ;;  %v3397_v17 = vmul.f32 %v3375_v32, %v7747_v35  ;;  %v6376_v14 = vor.u32 %v7084_v9, %v6375_v5  ;;  %v6548_v51 = vor.u32 %v7125_v43, %v6545_v45  ;;  %v7068_v5 = vld [vmem:[#allocation13 + $0x174] sm:$0xf0]  ;;  %v6503_v9 = vld [vmem:[#allocation13 + $0x2e8] sm:$0xf] }
 0x2bf   :  { %v3284_v16 = vpop.f32.mrf.mxu3  ;;  %v6233_v52 = vld [vmem:[#allocation13 + $0xd8] sm:$0xf0]  ;;  %v7038_v43 = vld [vmem:[#allocation13 + $0x8c] sm:$0xf] }
 0x2c0   :  { %v3309_v49 = vadd.f32 %v3308_v44, %v3307_v38  ;;  %v3410_v63 = vmul.f32 %v3402_v56, %v3397_v17  ;;  %v7076_v38 = vld [vmem:[#allocation13 + $0x1b4] sm:$0xf0]  ;;  %v6152_v44 = vor.u32 %v7028_v21, %v6151_v28  ;;  %v3416_v16 = vperm.slane %v7770_v39, 2  ;;  %v7121_v17 = vld [vmem:[#allocation13 + $0x324] sm:$0xf] }
 0x2c1   :  { %4308 = vmatpush.bf16.msra.mxu0 %v6216_v22  ;;  %4297 = vmatpush.bf16.msrb.mxu3 %v6564_v27  ;;  %v6327_v22 = vld [vmem:[#allocation13 + $0x188] sm:$0xf]  ;;  %v6532_v53 = vor.u32 %v7121_v17, %v6529_v47  ;;  %v7042_v27 = vld [vmem:[#allocation13 + $0xac] sm:$0xf]  ;;  %v7060_v21 = vld [vmem:[#allocation13 + $0x134] sm:$0xf0] }
 0x2c2   :  { %v3310_v62 = vrot.slane %v3309_v49, 1  ;;  %v7177_v41 = vpop.eup %7176  ;;  %v3423_v8 = vadd.f32 %v3415_v57, %v3410_v63  ;;  %v6344_v57 = vor.u32 %v7076_v38, %v6343_v0  ;;  %v6471_v0 = vld [vmem:[#allocation13 + $0x2a8] sm:$0xf]  ;;  %v7108_v38 = vld [vmem:[#allocation13 + $0x2b4] sm:$0xf0] }
 0x2c3   :  { %v3377_v35 = vmul.f32 %v7177_v41, %v7793_v30  ;;  %vm3383_vm3 = vweird.f32 %v7177_v41  ;;  %v7072_v30 = vld [vmem:[#allocation13 + $0x194] sm:$0xf0]  ;;  %v6201_v45 = vld [vmem:[#allocation13 + $0x98] sm:$0xf0] }
 0x2c4   :  { %v3311_v10 = vadd.f32 %v3310_v62, %v3309_v49  ;;  %v3427_v6 = vmax.f32 %v3423_v8, 0.0  ;;  %vm3384_vm5 = vmor %vm3382_vm4, %vm3383_vm3  ;;  %v7024_v49 = vld [vmem:[#allocation13 + $0x14] sm:$0xf0]  ;;  %v6249_v62 = vld [vmem:[#allocation13 + $0xf8] sm:$0xf0]  ;;  %v6328_v1 = vor.u32 %v7072_v30, %v6327_v22 }
 0x2c5   :  { %v3378_v2 = vmul.f32 %v7177_v41, %v3377_v35  ;;  %4309 = vmatpush.bf16.msra.mxu0 %v6200_v13  ;;  %4298 = vmatpush.bf16.msrb.mxu3 %v6548_v51  ;;  %v6136_v13 = vor.u32 %v7024_v49, %v6135_v55  ;;  %v6252_v8 = vor.u32 %v7050_v61, %v6249_v62  ;;  %v7116_v35 = vld [vmem:[#allocation13 + $0x2f4] sm:$0xf0]  ;;  %v6455_v55 = vld [vmem:[#allocation13 + $0x288] sm:$0xf]  ;;  %v7082_v22 = vld [vmem:[#allocation13 + $0x1ec] sm:$0xf] }
 0x2c6   :  { %v3315_v11 = vmul.f32 %v3311_v10, %v7597_v48  ;;  %v7809_v23 = vpack.c.bf16 %v3427_v6, %v3427_v6  ;;  %v6504_v7 = vor.u32 %v7116_v35, %v6503_v9  ;;  %v6204_v51 = vor.u32 %v7038_v43, %v6201_v45  ;;  %v6439_v61 = vld [vmem:[#allocation13 + $0x268] sm:$0xf]  ;;  %v6153_v35 = vld [vmem:[#allocation13 + $0x38] sm:$0xf0]  ;;  %v7148_v43 = vld [vmem:[#allocation13 + $0x3f4] sm:$0xf0] }
 0x2c7   :  { %v3379_v24 = vmul.f32 0.5, %v3378_v2  ;;  %v6423_v9 = vld [vmem:[#allocation13 + $0x248] sm:$0xf]  ;;  %v6313_v45 = vld [vmem:[#allocation13 + $0x178] sm:$0xf0] }
 0x2c8   :  { %v7807_v58 = vsub.f32 %v7784_v18, %v3315_v11  ;;  %4223 = vmatmul.bf16.vlgmr.msra.gmra.mxu1 %v7809_v23  ;;  %4262 = vmatmul.bf16.vlgmr.msrb.gmra.mxu0 %v7786_v12  ;;  %v6168_v18 = vor.u32 %v7032_v20, %v6167_v15  ;;  %v7046_v11 = vld [vmem:[#allocation13 + $0xcc] sm:$0xf]  ;;  %v6295_v15 = vld [vmem:[#allocation13 + $0x148] sm:$0xf] }
 0x2c9   :  { %v3380_v29 = vsub.f32 1.5, %v3379_v24  ;;  %4310 = vmatpush.bf16.msra.mxu0 %v6184_v54  ;;  %4319 = vmatpush.bf16.msra.mxu1 %v6376_v14  ;;  %v6312_v14 = vor.u32 %v7068_v5, %v6311_v4  ;;  %v6236_v25 = vor.u32 %v7046_v11, %v6233_v52  ;;  %v7112_v24 = vld [vmem:[#allocation13 + $0x2d4] sm:$0xf0]  ;;  %v6296_v28 = vor.u32 %v7064_v40, %v6295_v15  ;;  %v6361_v4 = vld [vmem:[#allocation13 + $0x1d8] sm:$0xf0] }
 0x2ca   :  { %v3323_v26 = vmul.f32 %v7807_v58, %v7807_v58  ;;  %4299 = vmatpush.bf16.msrb.mxu3 %v6532_v53  ;;  %v7100_v53 = vld [vmem:[#allocation13 + $0x274] sm:$0xf0]  ;;  %v7074_v52 = vld [vmem:[#allocation13 + $0x1ac] sm:$0xf] }
 0x2cb   :  { %v3381_v34 = vmul.f32 %v7177_v41, %v3380_v29  ;;  %v6488_v29 = vor.u32 %v7112_v24, %v6487_v46  ;;  %v7092_v24 = vld [vmem:[#allocation13 + $0x234] sm:$0xf0] }
 0x2cc   :  { %v3342_v31 = vrot.slane %v3323_v26, 4 }
 0x2cd   :  { %v3385_v56 = vsel %vm3384_vm5, %v7177_v41, %v3381_v34  ;;  %4311 = vmatpush.bf16.msra.mxu0 %v6168_v18  ;;  %4320 = vmatpush.bf16.msra.mxu1 %v6360_v19  ;;  %v6217_v18 = vld [vmem:[#allocation13 + $0xb8] sm:$0xf0]  ;;  %v6279_v19 = vld [vmem:[#allocation13 + $0x128] sm:$0xf]  ;;  %vm4578_vm5 = vcmask 7168  }
 0x2ce   :  { %v3343_v50 = vadd.f32 %v3342_v31, %v3323_v26  ;;  %v3398_v60 = vmul.f32 %v3385_v56, %v7764_v37  ;;  %v7117_v37 = vld [vmem:[#allocation13 + $0x304] sm:$0xf]  ;;  %v6220_v31 = vor.u32 %v7042_v27, %v6217_v18  ;;  %v6280_v34 = vor.u32 %v7060_v21, %v6279_v19  ;;  %v6137_v27 = vld [vmem:[#allocation13 + $0x18] sm:$0xf0]  ;;  %v7070_v18 = vld [vmem:[#allocation13 + $0x18c] sm:$0xf] }
 0x2cf   :  { %v6516_v6 = vor.u32 %v7117_v37, %v6513_v59  ;;  %v7096_v59 = vld [vmem:[#allocation13 + $0x254] sm:$0xf0] }
 0x2d0   :  { %v3344_v32 = vrot.slane %v3343_v50, 2  ;;  %v3411_v63 = vmul.f32 %v3403_v42, %v3398_v60  ;;  %v6263_v42 = vld [vmem:[#allocation13 + $0x108] sm:$0xf]  ;;  %v6377_v60 = vld [vmem:[#allocation13 + $0x1f8] sm:$0xf0]  ;;  %v6424_v15 = vor.u32 %v7096_v59, %v6423_v9 }
 0x2d1   :  { %4312 = vmatpush.bf16.msra.mxu0 %v6152_v44  ;;  %4321 = vmatpush.bf16.msra.mxu1 %v6344_v57  ;;  %v7056_v44 = vld [vmem:[#allocation13 + $0x114] sm:$0xf0]  ;;  %v6185_v57 = vld [vmem:[#allocation13 + $0x78] sm:$0xf0]  ;;  %v6380_v62 = vor.u32 %v7082_v22, %v6377_v60  ;;  %v7110_v60 = vld [vmem:[#allocation13 + $0x2cc] sm:$0xf] }
 0x2d2   :  { %v3345_v3 = vadd.f32 %v3344_v32, %v3343_v50  ;;  %v3424_v41 = vadd.f32 %v3416_v16, %v3411_v63  ;;  %4300 = vmatpush.bf16.msrb.mxu3 %v6516_v6  ;;  %v6472_v50 = vor.u32 %v7108_v38, %v6471_v0  ;;  %v7104_v16 = vld [vmem:[#allocation13 + $0x294] sm:$0xf0]  ;;  %v7034_v32 = vld [vmem:[#allocation13 + $0x6c] sm:$0xf]  ;;  %v6264_v30 = vor.u32 %v7056_v44, %v6263_v42  ;;  %v6345_v6 = vld [vmem:[#allocation13 + $0x1b8] sm:$0xf0] }
 0x2d3   :  { %v6456_v47 = vor.u32 %v7104_v16, %v6455_v55  ;;  %v7030_v63 = vld [vmem:[#allocation13 + $0x4c] sm:$0xf]  ;;  %v6348_v46 = vor.u32 %v7074_v52, %v6345_v6  ;;  %v7088_v19 = vld [vmem:[#allocation13 + $0x214] sm:$0xf0]  ;;  %v6631_v38 = vld [vmem:[#allocation13 + $0x3e8] sm:$0xf] }
 0x2d4   :  { %v3346_v10 = vrot.slane %v3345_v3, 1  ;;  %v3428_v54 = vmax.f32 %v3424_v41, 0.0  ;;  %v6440_v41 = vor.u32 %v7100_v53, %v6439_v61  ;;  %v6632_v44 = vor.u32 %v7148_v43, %v6631_v38  ;;  %v6297_v22 = vld [vmem:[#allocation13 + $0x158] sm:$0xf0]  ;;  %v6599_v61 = vld [vmem:[#allocation13 + $0x3a8] sm:$0xf] }
 0x2d5   :  { %4313 = vmatpush.bf16.msra.mxu0 %v6136_v13  ;;  %4322 = vmatpush.bf16.msra.mxu1 %v6328_v1  ;;  %v7078_v1 = vld [vmem:[#allocation13 + $0x1cc] sm:$0xf]  ;;  %v6265_v9 = vld [vmem:[#allocation13 + $0x118] sm:$0xf0]  ;;  %v6567_v52 = vld [vmem:[#allocation13 + $0x368] sm:$0xf] }
 0x2d6   :  { %v3347_v33 = vadd.f32 %v3346_v10, %v3345_v3  ;;  %v7821_v20 = vpack.c.bf16 %v3428_v54, %v3428_v54  ;;  %v6188_v3 = vor.u32 %v7034_v32, %v6185_v57  ;;  %v6169_v10 = vld [vmem:[#allocation13 + $0x58] sm:$0xf0]  ;;  %v6364_v37 = vor.u32 %v7078_v1, %v6361_v4  ;;  %v6615_v32 = vld [vmem:[#allocation13 + $0x3c8] sm:$0xf]  ;;  %v7144_v57 = vld [vmem:[#allocation13 + $0x3d4] sm:$0xf0] }
 0x2d7   :  { %v3404_v54 = vperm.slane %v7760_v36, 3  ;;  %v7058_v53 = vld [vmem:[#allocation13 + $0x12c] sm:$0xf]  ;;  %v6457_v59 = vld [vmem:[#allocation13 + $0x298] sm:$0xf0] }
 0x2d8   :  { %v3351_v2 = vmul.f32 %v3347_v33, %v7597_v48  ;;  %4236 = vmatmul.bf16.vlgmr.msra.gmra.mxu2 %v7821_v20  ;;  %4275 = vmatmul.bf16.vlgmr.msrb.gmra.mxu1 %v7809_v23  ;;  %v7026_v33 = vld [vmem:[#allocation13 + $0x2c] sm:$0xf]  ;;  %v7132_v6 = vld [vmem:[#allocation13 + $0x374] sm:$0xf0]  ;;  %v6633_v43 = vld [vmem:[#allocation13 + $0x3f8] sm:$0xf0] }
 0x2d9   :  { %4358 = vmatpush.bf16.msrb.mxu0 %v6252_v8  ;;  %4323 = vmatpush.bf16.msra.mxu1 %v6312_v14  ;;  %v6172_v8 = vor.u32 %v7030_v63, %v6169_v10  ;;  %v3417_v14 = vperm.slane %v7770_v39, 3  ;;  %v6391_v39 = vld [vmem:[#allocation13 + $0x208] sm:$0xf]  ;;  %v6281_v63 = vld [vmem:[#allocation13 + $0x138] sm:$0xf0] }
 0x2da   :  { %v7823_v26 = vadd.f32 1e-05, %v3351_v2  ;;  %4314 = vmatmul.bf16.vlgmr.msra.gmra.mxu0 %v7786_v12  ;;  %4332 = vmatpush.bf16.msra.mxu2 %v6504_v7  ;;  %v6156_v7 = vor.u32 %v7026_v33, %v6153_v35  ;;  %v6392_v42 = vor.u32 %v7088_v19, %v6391_v39  ;;  %v7106_v10 = vld [vmem:[#allocation13 + $0x2ac] sm:$0xf]  ;;  %v6519_v39 = vld [vmem:[#allocation13 + $0x308] sm:$0xf] }
 0x2db   :  { %v7120_v19 = vld [vmem:[#allocation13 + $0x314] sm:$0xf0]  ;;  %v7146_v38 = vld [vmem:[#allocation13 + $0x3ec] sm:$0xf] }
 0x2dc   :  { %7178 = vrsqrt.f32 %v7823_v26  ;;  %vm3392_vm7 = vweird.f32 %v7823_v26 }
 0x2dd   :  { %4359 = vmatpush.bf16.msrb.mxu0 %v6236_v25  ;;  %4324 = vmatpush.bf16.msra.mxu1 %v6296_v28  ;;  %v6407_v25 = vld [vmem:[#allocation13 + $0x228] sm:$0xf]  ;;  %v6329_v28 = vld [vmem:[#allocation13 + $0x198] sm:$0xf0] }
 0x2de   :  { %4333 = vmatpush.bf16.msra.mxu2 %v6488_v29  ;;  %v6408_v36 = vor.u32 %v7092_v24, %v6407_v25  ;;  %v6332_v0 = vor.u32 %v7070_v18, %v6329_v28  ;;  %v7128_v25 = vld [vmem:[#allocation13 + $0x354] sm:$0xf0]  ;;  %v7090_v28 = vld [vmem:[#allocation13 + $0x22c] sm:$0xf] }
 0x2df   :  { %v7124_v18 = vld [vmem:[#allocation13 + $0x334] sm:$0xf0] }
 0x2e1   :  { %4360 = vmatpush.bf16.msrb.mxu0 %v6220_v31  ;;  %4325 = vmatpush.bf16.msra.mxu1 %v6280_v34  ;;  %v7114_v34 = vld [vmem:[#allocation13 + $0x2ec] sm:$0xf] }
 0x2e2   :  { %v7179_v56 = vpop.eup %7178  ;;  %4334 = vmatpush.bf16.msra.mxu2 %v6472_v50  ;;  %v6505_v50 = vld [vmem:[#allocation13 + $0x2f8] sm:$0xf0] }
 0x2e3   :  { %v3387_v49 = vmul.f32 %v7179_v56, %v7823_v26  ;;  %vm3393_vm6 = vweird.f32 %v7179_v56  ;;  %v7022_v26 = vld [vmem:[#allocation13 + $0xc] sm:$0xf]  ;;  %v6508_v16 = vor.u32 %v7114_v34, %v6505_v50  ;;  %v6617_v50 = vld [vmem:[#allocation13 + $0x3d8] sm:$0xf0] }
 0x2e4   :  { %vm3394_vm8 = vmor %vm3392_vm7, %vm3393_vm6  ;;  %v6140_v31 = vor.u32 %v7022_v26, %v6137_v27  ;;  %v6535_v27 = vld [vmem:[#allocation13 + $0x328] sm:$0xf]  ;;  %v7142_v34 = vld [vmem:[#allocation13 + $0x3cc] sm:$0xf] }
 0x2e5   :  { %v3388_v17 = vmul.f32 %v7179_v56, %v3387_v49  ;;  %4361 = vmatpush.bf16.msrb.mxu0 %v6204_v51  ;;  %4326 = vmatpush.bf16.msra.mxu1 %v6264_v30  ;;  %v7062_v49 = vld [vmem:[#allocation13 + $0x14c] sm:$0xf]  ;;  %v6489_v30 = vld [vmem:[#allocation13 + $0x2d8] sm:$0xf0] }
 0x2e6   :  { %4335 = vmatpush.bf16.msra.mxu2 %v6456_v47  ;;  %v6300_v47 = vor.u32 %v7062_v49, %v6297_v22  ;;  %v7130_v49 = vld [vmem:[#allocation13 + $0x36c] sm:$0xf]  ;;  %v6569_v22 = vld [vmem:[#allocation13 + $0x378] sm:$0xf0] }
 0x2e7   :  { %v3389_v13 = vmul.f32 0.5, %v3388_v17  ;;  %v6616_v17 = vor.u32 %v7144_v57, %v6615_v32  ;;  %v6585_v32 = vld [vmem:[#allocation13 + $0x398] sm:$0xf0] }
 0x2e8   :  { %4288 = vmatmul.bf16.vlgmr.msrb.gmra.mxu2 %v7821_v20  ;;  %4327 = vmatmul.bf16.vlgmr.msra.gmra.mxu1 %v7809_v23 }
 0x2e9   :  { %v3390_v5 = vsub.f32 1.5, %v3389_v13  ;;  %4362 = vmatpush.bf16.msrb.mxu0 %v6188_v3  ;;  %4371 = vmatpush.bf16.msrb.mxu1 %v6380_v62  ;;  %v6492_v3 = vor.u32 %v7110_v60, %v6489_v30  ;;  %v7140_v62 = vld [vmem:[#allocation13 + $0x3b4] sm:$0xf0]  ;;  %v6473_v13 = vld [vmem:[#allocation13 + $0x2b8] sm:$0xf0]  ;;  %v6572_v60 = vor.u32 %v7130_v49, %v6569_v22 }
 0x2ea   :  { %4336 = vmatpush.bf16.msra.mxu2 %v6440_v41  ;;  %v6600_v1 = vor.u32 %v7140_v62, %v6599_v61  ;;  %v6476_v4 = vor.u32 %v7106_v10, %v6473_v13  ;;  %v7136_v41 = vld [vmem:[#allocation13 + $0x394] sm:$0xf0]  ;;  %v7126_v30 = vld [vmem:[#allocation13 + $0x34c] sm:$0xf]  ;;  %v6537_v61 = vld [vmem:[#allocation13 + $0x338] sm:$0xf0] }
 0x2eb   :  { %v3391_v11 = vmul.f32 %v7179_v56, %v3390_v5  ;;  %v6583_v5 = vld [vmem:[#allocation13 + $0x388] sm:$0xf] }
 0x2ec   :  { %v6584_v33 = vor.u32 %v7136_v41, %v6583_v5 }
 0x2ed   :  { %v3395_v2 = vsel %vm3394_vm8, %v7179_v56, %v3391_v11  ;;  %4363 = vmatpush.bf16.msrb.mxu0 %v6172_v8  ;;  %4372 = vmatpush.bf16.msrb.mxu1 %v6364_v37  ;;  %v7054_v8 = vld [vmem:[#allocation13 + $0x10c] sm:$0xf] }
 0x2ee   :  { %v3399_v40 = vmul.f32 %v3395_v2, %v7807_v58  ;;  %4337 = vmatpush.bf16.msra.mxu2 %v6424_v15  ;;  %v7066_v58 = vld [vmem:[#allocation13 + $0x16c] sm:$0xf]  ;;  %v6268_v35 = vor.u32 %v7054_v8, %v6265_v9  ;;  %v6441_v2 = vld [vmem:[#allocation13 + $0x278] sm:$0xf0] }
 0x2ef   :  { %v6316_v56 = vor.u32 %v7066_v58, %v6313_v45  ;;  %v7102_v37 = vld [vmem:[#allocation13 + $0x28c] sm:$0xf]  ;;  %v6520_v58 = vor.u32 %v7120_v19, %v6519_v39  ;;  %v6636_v45 = vor.u32 %v7146_v38, %v6633_v43 }
 0x2f0   :  { %v3412_v29 = vmul.f32 %v3404_v54, %v3399_v40  ;;  %v6460_v11 = vor.u32 %v7102_v37, %v6457_v59  ;;  %v7098_v54 = vld [vmem:[#allocation13 + $0x26c] sm:$0xf] }
 0x2f1   :  { %4364 = vmatpush.bf16.msrb.mxu0 %v6156_v7  ;;  %4373 = vmatpush.bf16.msrb.mxu1 %v6348_v46  ;;  %v6444_v15 = vor.u32 %v7098_v54, %v6441_v2  ;;  %v6551_v7 = vld [vmem:[#allocation13 + $0x348] sm:$0xf]  ;;  %v7094_v40 = vld [vmem:[#allocation13 + $0x24c] sm:$0xf]  ;;  %v6425_v46 = vld [vmem:[#allocation13 + $0x258] sm:$0xf0] }
 0x2f2   :  { %v3425_v21 = vadd.f32 %v3417_v14, %v3412_v29  ;;  %4338 = vmatpush.bf16.msra.mxu2 %v6408_v36  ;;  %v6568_v14 = vor.u32 %v7132_v6, %v6567_v52  ;;  %v6552_v24 = vor.u32 %v7128_v25, %v6551_v7  ;;  %v6428_v26 = vor.u32 %v7094_v40, %v6425_v46  ;;  %v6409_v29 = vld [vmem:[#allocation13 + $0x238] sm:$0xf0] }
 0x2f3   :  { %v6536_v36 = vor.u32 %v7124_v18, %v6535_v27 }
 0x2f4   :  { %v3429_v51 = vmax.f32 %v3425_v21, 0.0  ;;  %v7086_v21 = vld [vmem:[#allocation13 + $0x20c] sm:$0xf] }
 0x2f5   :  { %4365 = vmatpush.bf16.msrb.mxu0 %v6140_v31  ;;  %4374 = vmatpush.bf16.msrb.mxu1 %v6332_v0  ;;  %v6412_v31 = vor.u32 %v7090_v28, %v6409_v29  ;;  %v6393_v0 = vld [vmem:[#allocation13 + $0x218] sm:$0xf0] }
 0x2f6   :  { %v7837_v55 = vpack.c.bf16 %v3429_v51, %v3429_v51  ;;  %4339 = vmatpush.bf16.msra.mxu2 %v6392_v42  ;;  %v6620_v51 = vor.u32 %v7142_v34, %v6617_v50  ;;  %v7138_v42 = vld [vmem:[#allocation13 + $0x3ac] sm:$0xf] }
 0x2f8   :  { %4249 = vmatmul.bf16.vlgmr.msra.gmra.mxu3 %v7837_v55  ;;  %4366 = vmatmul.bf16.vlgmr.msrb.gmra.mxu0 %v7786_v12  ;;  %v6284_v12 = vor.u32 %v7058_v53, %v6281_v63  ;;  %v7118_v53 = vld [vmem:[#allocation13 + $0x30c] sm:$0xf] }
 0x2f9   :  { %4345 = vmatpush.bf16.msra.mxu3 %v6632_v44  ;;  %4375 = vmatpush.bf16.msrb.mxu1 %v6316_v56  ;;  %v6601_v44 = vld [vmem:[#allocation13 + $0x3b8] sm:$0xf0] }
 0x2fa   :  { %4384 = vmatpush.bf16.msrb.mxu2 %v6508_v16  ;;  %v6604_v56 = vor.u32 %v7138_v42, %v6601_v44  ;;  %v7134_v16 = vld [vmem:[#allocation13 + $0x38c] sm:$0xf] }
 0x2fb   :  { %4340 = vmatmul.bf16.vlgmr.msra.gmra.mxu2 %v7821_v20  ;;  %v6588_v57 = vor.u32 %v7134_v16, %v6585_v32 }
 0x2fd   :  { %4346 = vmatpush.bf16.msra.mxu3 %v6616_v17  ;;  %4376 = vmatpush.bf16.msrb.mxu1 %v6300_v47  ;;  %v6553_v17 = vld [vmem:[#allocation13 + $0x358] sm:$0xf0] }
 0x2fe   :  { %4385 = vmatpush.bf16.msrb.mxu2 %v6492_v3  ;;  %v6556_v47 = vor.u32 %v7126_v30, %v6553_v17  ;;  %v7122_v3 = vld [vmem:[#allocation13 + $0x32c] sm:$0xf] }
 0x2ff   :  { %v6540_v62 = vor.u32 %v7122_v3, %v6537_v61 }
 0x301   :  { %4347 = vmatpush.bf16.msra.mxu3 %v6600_v1  ;;  %4377 = vmatpush.bf16.msrb.mxu1 %v6284_v12 }
 0x302   :  { %4386 = vmatpush.bf16.msrb.mxu2 %v6476_v4 }
 0x305   :  { %4348 = vmatpush.bf16.msra.mxu3 %v6584_v33  ;;  %4378 = vmatpush.bf16.msrb.mxu1 %v6268_v35 }
 0x306   :  { %4387 = vmatpush.bf16.msrb.mxu2 %v6460_v11 }
 0x308   :  { %4301 = vmatmul.bf16.vlgmr.msrb.gmra.mxu3 %v7837_v55  ;;  %4379 = vmatmul.bf16.vlgmr.msrb.gmra.mxu1 %v7809_v23  ;;  %v6396_v23 = vor.u32 %v7086_v21, %v6393_v0 }
 0x309   :  { %4349 = vmatpush.bf16.msra.mxu3 %v6568_v14 }
 0x30a   :  { %4388 = vmatpush.bf16.msrb.mxu2 %v6444_v15 }
 0x30d   :  { %4350 = vmatpush.bf16.msra.mxu3 %v6552_v24 }
 0x30e   :  { %4389 = vmatpush.bf16.msrb.mxu2 %v6428_v26 }
 0x311   :  { %4351 = vmatpush.bf16.msra.mxu3 %v6536_v36 }
 0x312   :  { %4390 = vmatpush.bf16.msrb.mxu2 %v6412_v31 }
 0x315   :  { %4352 = vmatpush.bf16.msra.mxu3 %v6520_v58 }
 0x316   :  { %4391 = vmatpush.bf16.msrb.mxu2 %v6396_v23 }
 0x318   :  { %4353 = vmatmul.bf16.vlgmr.msra.gmra.mxu3 %v7837_v55 }
 0x319   :  { %4397 = vmatpush.bf16.msrb.mxu3 %v6636_v45  ;;  %4392 = vmatmul.bf16.vlgmr.msrb.gmra.mxu2 %v7821_v20  ;;  %v6521_v20 = vld [vmem:[#allocation13 + $0x318] sm:$0xf0] }
 0x31a   :  { %v6524_v63 = vor.u32 %v7118_v53, %v6521_v20 }
 0x31d   :  { %4398 = vmatpush.bf16.msrb.mxu3 %v6620_v51 }
 0x321   :  { %4399 = vmatpush.bf16.msrb.mxu3 %v6604_v56 }
 0x325   :  { %4400 = vmatpush.bf16.msrb.mxu3 %v6588_v57 }
 0x329   :  { %4401 = vmatpush.bf16.msrb.mxu3 %v6572_v60 }
 0x32d   :  { %4402 = vmatpush.bf16.msrb.mxu3 %v6556_v47 }
 0x331   :  { %4403 = vmatpush.bf16.msrb.mxu3 %v6540_v62 }
 0x335   :  { %4404 = vmatpush.bf16.msrb.mxu3 %v6524_v63  ;;  %v4211_v10 = vpop.f32.mrf.mxu0 }
 0x338   :  { %4405 = vmatmul.bf16.vlgmr.msrb.gmra.mxu3 %v7837_v55 }
 0x33d   :  { %v4213_v13 = vpop.f32.mrf.mxu0 }
 0x345   :  { %v4224_v1 = vpop.f32.mrf.mxu1  ;;  %v4263_v12 = vpop.f32.mrf.mxu0 }
 0x346   :  { %v4225_v4 = vadd.f32 %v4224_v1, %v4211_v10 }
 0x34d   :  { %v4226_v5 = vpop.f32.mrf.mxu1  ;;  %v4265_v41 = vpop.f32.mrf.mxu0 }
 0x355   :  { %v4276_v8 = vpop.f32.mrf.mxu1 }
 0x356   :  { %v4277_v9 = vadd.f32 %v4276_v8, %v4263_v12 }
 0x357   :  { %v4315_v37 = vpop.f32.mrf.mxu0 }
 0x35b   :  { %v4237_v59 = vpop.f32.mrf.mxu2 }
 0x35c   :  { %v4238_v33 = vadd.f32 %v4237_v59, %v4225_v4 }
 0x35d   :  { %v4278_v35 = vpop.f32.mrf.mxu1 }
 0x35f   :  { %v4317_v11 = vpop.f32.mrf.mxu0 }
 0x363   :  { %v4239_v52 = vpop.f32.mrf.mxu2 }
 0x365   :  { %v4328_v6 = vpop.f32.mrf.mxu1 }
 0x366   :  { %v4329_v54 = vadd.f32 %v4328_v6, %v4315_v37 }
 0x36b   :  { %v4289_v2 = vpop.f32.mrf.mxu2 }
 0x36c   :  { %v4290_v14 = vadd.f32 %v4289_v2, %v4277_v9 }
 0x36d   :  { %v4330_v55 = vpop.f32.mrf.mxu1 }
 0x373   :  { %v4291_v7 = vpop.f32.mrf.mxu2 }
 0x375   :  { %v7847_v15 = vpop.f32.mrf.mxu0 }
 0x37b   :  { %v4250_v25 = vpop.f32.mrf.mxu3 }
 0x37c   :  { %v4251_v40 = vadd.f32 %v4250_v25, %v4238_v33 }
 0x37d   :  { %v4369_v46 = vpop.f32.mrf.mxu0 }
 0x37e   :  { %v4412_v24 = vrot.slane %v4251_v40, 4  ;;  %v4341_v26 = vpop.f32.mrf.mxu2 }
 0x37f   :  { %v4342_v30 = vadd.f32 %v4341_v26, %v4329_v54 }
 0x380   :  { %v4413_v27 = vadd.f32 %v4412_v24, %v4251_v40 }
 0x382   :  { %v4414_v18 = vrot.slane %v4413_v27, 2 }
 0x383   :  { %v4252_v28 = vpop.f32.mrf.mxu3 }
 0x384   :  { %v4415_v29 = vadd.f32 %v4414_v18, %v4413_v27 }
 0x385   :  { %v7849_v31 = vpop.f32.mrf.mxu1 }
 0x386   :  { %v4416_v36 = vrot.slane %v4415_v29, 1  ;;  %v4343_v39 = vpop.f32.mrf.mxu2  ;;  %v4381_v28 = vadd.f32 %v7849_v31, %v7847_v15 }
 0x387   :  { %v7873_v39 = vld [vmem:[%s7902_s8] sm:$0xf] }
 0x388   :  { %v4417_v19 = vadd.f32 %v4416_v36, %v4415_v29 }
 0x38a   :  { %v4436_v21 = vmul.f32 %v4417_v19, %v7597_v48 }
 0x38b   :  { %v4302_v0 = vpop.f32.mrf.mxu3 }
 0x38c   :  { %v7852_v38 = vsub.f32 %v4251_v40, %v4436_v21  ;;  %v4303_v43 = vadd.f32 %v4302_v0, %v4290_v14 }
 0x38d   :  { %v4382_v45 = vpop.f32.mrf.mxu1 }
 0x38e   :  { %v4444_v58 = vmul.f32 %v7852_v38, %v7852_v38  ;;  %v4418_v23 = vrot.slane %v4303_v43, 4 }
 0x390   :  { %v4448_v34 = vrot.slane %v4444_v58, 4  ;;  %v4419_v50 = vadd.f32 %v4418_v23, %v4303_v43 }
 0x392   :  { %v4449_v51 = vadd.f32 %v4448_v34, %v4444_v58  ;;  %v4420_v42 = vrot.slane %v4419_v50, 2 }
 0x393   :  { %v4304_v44 = vpop.f32.mrf.mxu3 }
 0x394   :  { %v4450_v56 = vrot.slane %v4449_v51, 2  ;;  %v4421_v16 = vadd.f32 %v4420_v42, %v4419_v50  ;;  %v4525_v50 = vperm.slane %v7873_v39, 0  ;;  %v7877_v42 = vld [vmem:[#allocation14] sm:$0xf] }
 0x396   :  { %v4451_v32 = vadd.f32 %v4450_v56, %v4449_v51  ;;  %v4422_v57 = vrot.slane %v4421_v16, 1 }
 0x398   :  { %v4452_v49 = vrot.slane %v4451_v32, 1  ;;  %v4423_v22 = vadd.f32 %v4422_v57, %v4421_v16 }
 0x39a   :  { %v4453_v60 = vadd.f32 %v4452_v49, %v4451_v32  ;;  %v4437_v17 = vmul.f32 %v4423_v22, %v7597_v48  ;;  %v4538_v49 = vperm.slane %v7877_v42, 0 }
 0x39b   :  { %v4354_v47 = vpop.f32.mrf.mxu3 }
 0x39c   :  { %v4472_v3 = vmul.f32 %v4453_v60, %v7597_v48  ;;  %v7858_v61 = vsub.f32 %v4303_v43, %v4437_v17  ;;  %v4355_v62 = vadd.f32 %v4354_v47, %v4342_v30  ;;  %v4393_v53 = vpop.f32.mrf.mxu2 }
 0x39d   :  { %v4394_v0 = vadd.f32 %v4393_v53, %v4381_v28 }
 0x39e   :  { %v4476_v20 = vadd.f32 1e-05, %v4472_v3  ;;  %v4445_v63 = vmul.f32 %v7858_v61, %v7858_v61  ;;  %v4424_v10 = vrot.slane %v4355_v62, 4 }
 0x3a0   :  { %7180 = vrsqrt.f32 %v4476_v20  ;;  %v4454_v13 = vrot.slane %v4445_v63, 4  ;;  %v4425_v1 = vadd.f32 %v4424_v10, %v4355_v62  ;;  %vm4486_vm10 = vweird.f32 %v4476_v20 }
 0x3a2   :  { %v4455_v12 = vadd.f32 %v4454_v13, %v4445_v63  ;;  %v4426_v4 = vrot.slane %v4425_v1, 2  ;;  %v4554_v63 = vld [vmem:[#allocation16] sm:$0xf] }
 0x3a3   :  { %v4356_v5 = vpop.f32.mrf.mxu3 }
 0x3a4   :  { %v4456_v41 = vrot.slane %v4455_v12, 2  ;;  %v4427_v8 = vadd.f32 %v4426_v4, %v4425_v1  ;;  %v4395_v9 = vpop.f32.mrf.mxu2  ;;  %v4556_v5 = vperm.slane %v4554_v63, 0 }
 0x3a6   :  { %v7181_v37 = vpop.eup %7180  ;;  %v4457_v59 = vadd.f32 %v4456_v41, %v4455_v12  ;;  %v4428_v33 = vrot.slane %v4427_v8, 1  ;;  %v4557_v41 = vperm.slane %v4554_v63, 1 }
 0x3a7   :  { %v4481_v35 = vmul.f32 %v7181_v37, %v4476_v20  ;;  %vm4487_vm9 = vweird.f32 %v7181_v37 }
 0x3a8   :  { %v4458_v11 = vrot.slane %v4457_v59, 1  ;;  %v4429_v52 = vadd.f32 %v4428_v33, %v4427_v8  ;;  %vm4488_vm11 = vmor %vm4486_vm10, %vm4487_vm9 }
 0x3a9   :  { %v4482_v6 = vmul.f32 %v7181_v37, %v4481_v35 }
 0x3aa   :  { %v4459_v54 = vadd.f32 %v4458_v11, %v4457_v59  ;;  %v4438_v2 = vmul.f32 %v4429_v52, %v7597_v48 }
 0x3ab   :  { %v4483_v14 = vmul.f32 0.5, %v4482_v6 }
 0x3ac   :  { %v4473_v55 = vmul.f32 %v4459_v54, %v7597_v48  ;;  %v7864_v7 = vsub.f32 %v4355_v62, %v4438_v2  ;;  %v4539_v62 = vperm.slane %v7877_v42, 1 }
 0x3ad   :  { %v4484_v46 = vsub.f32 1.5, %v4483_v14 }
 0x3ae   :  { %v4477_v25 = vadd.f32 1e-05, %v4473_v55  ;;  %v4446_v40 = vmul.f32 %v7864_v7, %v7864_v7 }
 0x3af   :  { %v4485_v27 = vmul.f32 %v7181_v37, %v4484_v46 }
 0x3b0   :  { %7182 = vrsqrt.f32 %v4477_v25  ;;  %v4460_v24 = vrot.slane %v4446_v40, 4  ;;  %vm4496_vm13 = vweird.f32 %v4477_v25 }
 0x3b1   :  { %v4489_v19 = vsel %vm4488_vm11, %v7181_v37, %v4485_v27 }
 0x3b2   :  { %v4461_v26 = vadd.f32 %v4460_v24, %v4446_v40  ;;  %v4520_v34 = vmul.f32 %v4489_v19, %v7852_v38  ;;  %v4526_v38 = vperm.slane %v7873_v39, 1 }
 0x3b4   :  { %v4462_v18 = vrot.slane %v4461_v26, 2  ;;  %v4533_v32 = vmul.f32 %v4525_v50, %v4520_v34 }
 0x3b6   :  { %v7183_v29 = vpop.eup %7182  ;;  %v4463_v36 = vadd.f32 %v4462_v18, %v4461_v26  ;;  %v4546_v53 = vadd.f32 %v4538_v49, %v4533_v32  ;;  %v4540_v26 = vperm.slane %v7877_v42, 2 }
 0x3b7   :  { %v4491_v21 = vmul.f32 %v7183_v29, %v4477_v25  ;;  %vm4497_vm12 = vweird.f32 %v7183_v29  ;;  %v4527_v25 = vperm.slane %v7873_v39, 2 }
 0x3b8   :  { %v4464_v43 = vrot.slane %v4463_v36, 1  ;;  %vm4498_vm14 = vmor %vm4496_vm13, %vm4497_vm12  ;;  %v4550_v4 = vmax.f32 %v4546_v53, 0.0 }
 0x3b9   :  { %v4492_v23 = vmul.f32 %v7183_v29, %v4491_v21 }
 0x3ba   :  { %v4465_v15 = vadd.f32 %v4464_v43, %v4463_v36  ;;  %v4564_v35 = vmul.f32 %v4556_v5, %v4550_v4  ;;  %v4558_v36 = vperm.slane %v4554_v63, 2 }
 0x3bb   :  { %v4406_v58 = vpop.f32.mrf.mxu3  ;;  %v4493_v31 = vmul.f32 0.5, %v4492_v23 }
 0x3bc   :  { %v4407_v45 = vadd.f32 %v4406_v58, %v4394_v0  ;;  %v4474_v44 = vmul.f32 %v4465_v15, %v7597_v48 }
 0x3bd   :  { %v4494_v56 = vsub.f32 1.5, %v4493_v31 }
 0x3be   :  { %v4430_v51 = vrot.slane %v4407_v45, 4  ;;  %v4478_v57 = vadd.f32 1e-05, %v4474_v44 }
 0x3bf   :  { %v4495_v22 = vmul.f32 %v7183_v29, %v4494_v56 }
 0x3c0   :  { %v4431_v16 = vadd.f32 %v4430_v51, %v4407_v45  ;;  %7184 = vrsqrt.f32 %v4478_v57  ;;  %vm4506_vm0 = vweird.f32 %v4478_v57  ;;  %v4528_v51 = vperm.slane %v7873_v39, 3 }
 0x3c1   :  { %v4499_v17 = vsel %vm4498_vm14, %v7183_v29, %v4495_v22 }
 0x3c2   :  { %v4432_v60 = vrot.slane %v4431_v16, 2  ;;  %v4521_v3 = vmul.f32 %v4499_v17, %v7858_v61 }
 0x3c3   :  { %v4408_v30 = vpop.f32.mrf.mxu3 }
 0x3c4   :  { %v4433_v47 = vadd.f32 %v4432_v60, %v4431_v16  ;;  %v4534_v10 = vmul.f32 %v4526_v38, %v4521_v3  ;;  %v4541_v16 = vperm.slane %v7877_v42, 3  ;;  %v7161_v38 = vld [vmem:[#allocation2] ss:$0 sm:$0xff] }
 0x3c6   :  { %v4434_v20 = vrot.slane %v4433_v47, 1  ;;  %v7185_v1 = vpop.eup %7184  ;;  %v4547_v12 = vadd.f32 %v4539_v62, %v4534_v10 }
 0x3c7   :  { %v4501_v8 = vmul.f32 %v7185_v1, %v4478_v57  ;;  %vm4507_vm15 = vweird.f32 %v7185_v1  ;;  %v4559_v57 = vperm.slane %v4554_v63, 3 }
 0x3c8   :  { %v4435_v13 = vadd.f32 %v4434_v20, %v4433_v47  ;;  %v4551_v37 = vmax.f32 %v4547_v12, 0.0  ;;  %vm4508_vm1 = vmor %vm4506_vm0, %vm4507_vm15 }
 0x3c9   :  { %v4502_v59 = vmul.f32 %v7185_v1, %v4501_v8 }
 0x3ca   :  { %v4439_v9 = vmul.f32 %v4435_v13, %v7597_v48  ;;  %v4565_v61 = vmul.f32 %v4557_v41, %v4551_v37 }
 0x3cb   :  { %v4503_v11 = vmul.f32 0.5, %v4502_v59 }
 0x3cc   :  { %v4443_v33 = vsub.f32 %v4407_v45, %v4439_v9  ;;  %v4568_v6 = vadd.f32 %v4565_v61, %v4564_v35 }
 0x3cd   :  { %v4504_v54 = vsub.f32 1.5, %v4503_v11 }
 0x3ce   :  { %v4447_v52 = vmul.f32 %v4443_v33, %v4443_v33 }
 0x3cf   :  { %v4505_v14 = vmul.f32 %v7185_v1, %v4504_v54 }
 0x3d0   :  { %v4466_v2 = vrot.slane %v4447_v52, 4 }
 0x3d1   :  { %v4509_v40 = vsel %vm4508_vm1, %v7185_v1, %v4505_v14 }
 0x3d2   :  { %v4467_v55 = vadd.f32 %v4466_v2, %v4447_v52  ;;  %v4522_v24 = vmul.f32 %v4509_v40, %v7864_v7 }
 0x3d4   :  { %v4468_v46 = vrot.slane %v4467_v55, 2  ;;  %v4535_v18 = vmul.f32 %v4527_v25, %v4522_v24 }
 0x3d6   :  { %v4469_v27 = vadd.f32 %v4468_v46, %v4467_v55  ;;  %v4548_v29 = vadd.f32 %v4540_v26, %v4535_v18 }
 0x3d8   :  { %v4470_v28 = vrot.slane %v4469_v27, 1  ;;  %v4552_v21 = vmax.f32 %v4548_v29, 0.0 }
 0x3da   :  { %v4471_v19 = vadd.f32 %v4470_v28, %v4469_v27  ;;  %v4566_v43 = vmul.f32 %v4558_v36, %v4552_v21 }
 0x3dc   :  { %v4475_v0 = vmul.f32 %v4471_v19, %v7597_v48  ;;  %v4569_v23 = vadd.f32 %v4568_v6, %v4566_v43 }
 0x3de   :  { %v4479_v58 = vadd.f32 1e-05, %v4475_v0 }
 0x3e0   :  { %7186 = vrsqrt.f32 %v4479_v58  ;;  %vm4516_vm3 = vweird.f32 %v4479_v58 }
 0x3e6   :  { %v7187_v45 = vpop.eup %7186 }
 0x3e7   :  { %v4511_v34 = vmul.f32 %v7187_v45, %v4479_v58  ;;  %vm4517_vm2 = vweird.f32 %v7187_v45 }
 0x3e8   :  { %vm4518_vm4 = vmor %vm4516_vm3, %vm4517_vm2 }
 0x3e9   :  { %v4512_v50 = vmul.f32 %v7187_v45, %v4511_v34 }
 0x3eb   :  { %v4513_v15 = vmul.f32 0.5, %v4512_v50 }
 0x3ed   :  { %v4514_v7 = vsub.f32 1.5, %v4513_v15 }
 0x3ef   :  { %v4515_v31 = vmul.f32 %v7187_v45, %v4514_v7 }
 0x3f1   :  { %v4519_v44 = vsel %vm4518_vm4, %v7187_v45, %v4515_v31 }
 0x3f2   :  { %v4523_v56 = vmul.f32 %v4519_v44, %v4443_v33 }
 0x3f4   :  { %v4536_v48 = vmul.f32 %v4528_v51, %v4523_v56 }
 0x3f6   :  { %v4549_v32 = vadd.f32 %v4541_v16, %v4536_v48 }
 0x3f8   :  { %v4553_v49 = vmax.f32 %v4549_v32, 0.0 }
 0x3fa   :  { %v4567_v22 = vmul.f32 %v4559_v57, %v4553_v49 }
 0x3fc   :  { %v4570_v60 = vadd.f32 %v4569_v23, %v4567_v22 }
 0x3fe   :  { %4571 = vadd.xlane.f32.xlu0 %v4570_v60 }
 0x471   :  { %v4572_v30 = vpop.xlane.xlu0 %4571 }
 0x472   :  { %v4577_v17 = vadd.f32 %v7161_v38, %v4572_v30 }
 0x474   :  { %4579 = vst.msk [vmem:[%s7906_s12] sm:$0xff] %vm4578_vm5, %v4577_v17 }
 0x475   :  { %4584 = vsyncpa [#allocation4], 1 }
 0x476   :  { %4585 = vsyncpa [#allocation6], 1 }
 0x477   :  { %4586 = vsyncpa [#allocation9], 1 }
 0x478   :  { %4587 = vsyncpa [#allocation12], 1 }
 0x479   :  { %4588 = vsyncpa [#allocation15], 1 }

</bundles_post_ra>
